<compile_context>
chip_gen: v5e
topology: v5e:2x2
jax: 0.10.0
libtpu: 0.0.40
codegen_flags: <defaults>
</compile_context>

<pallas_src>
import functools

import jax
import jax.numpy as jnp
from jax import lax
from jax.experimental import pallas as pl
from jax.experimental.pallas import tpu as pltpu


def _ccf_kernel(rgb_ref, flow_ref,
                wg_rgb_ref, bg_rgb_ref, wg_flow_ref, bg_flow_ref,
                wo_rgb_ref, bo_rgb_ref, wo_flow_ref, bo_flow_ref,
                rgb_z_ref, flow_z_ref,
                f_emb_ref, m_f_ref, l_f_ref, acc_f_ref,
                *, exp_dtype):
    bf16 = jnp.bfloat16
    f32 = jnp.float32

    t = pl.program_id(1)
    last_t = pl.num_programs(1) - 1

    x_r = rgb_ref[0]                       # (C, TQ) f32 — rgb row tile
    x_f = flow_ref[0]                      # (C, N)  f32 — full flow (constant over t)

    # ---- per-batch init (tile 0): flow embedding + online flow-softmax state
    @pl.when(t == 0)
    def _init():
        fe = jnp.dot(wg_flow_ref[...], x_f.astype(bf16),
                     preferred_element_type=f32) + bg_flow_ref[...]    # (IC, N) f32
        f_emb_ref[...] = fe.astype(bf16)
        m_f_ref[...] = jnp.full_like(m_f_ref, -jnp.inf)
        l_f_ref[...] = jnp.zeros_like(l_f_ref)
        acc_f_ref[...] = jnp.zeros_like(acc_f_ref)

    f_emb_bf = f_emb_ref[...]                                          # (IC, N) bf16

    # ---- rgb embedding for this row tile (1x1 conv as MXU matmul) ----------
    r_emb = jnp.dot(wg_rgb_ref[...], x_r.astype(bf16),
                    preferred_element_type=f32) + bg_rgb_ref[...]      # (IC, TQ) f32
    r_emb_bf = r_emb.astype(bf16)                                      # (IC, TQ)
    # Small f32 transpose (IC x TQ, IC << N).  Kept in f32: this is the
    # transpose pattern production TPU kernels use and is known to lower.
    r_emb_t_bf = r_emb.T.astype(bf16)                                  # (TQ, IC)

    # ---- scores for this row tile: S_t[i, j] = <rgb_emb[:, i], flow_emb[:, j]>
    s = jnp.dot(r_emb_t_bf, f_emb_bf, preferred_element_type=f32)      # (TQ, N) f32

    # ---- rgb branch: full rows available -> local row softmax --------------
    m_r = jnp.max(s, axis=-1, keepdims=True)                           # (TQ, 1)
    e_r = jnp.exp((s - m_r).astype(exp_dtype))                         # (TQ, N)
    l_r = jnp.sum(e_r.astype(f32), axis=-1, keepdims=True)             # (TQ, 1) f32
    y_r = lax.dot_general(e_r.astype(bf16), f_emb_bf,
                          (((1,), (1,)), ((), ())),
                          preferred_element_type=f32)                  # (TQ, IC)
    y_r = y_r * pl.reciprocal(l_r, approx=True)
    out_r = lax.dot_general(wo_rgb_ref[...], y_r.astype(bf16),
                            (((1,), (1,)), ((), ())),
                            preferred_element_type=f32)                # (C, TQ)
    rgb_z_ref[0] = (out_r + bo_rgb_ref[...] + x_r).astype(rgb_z_ref.dtype)

    # ---- flow branch: online softmax over rows of S (i.e. softmax(S^T)) ----
    m_old = m_f_ref[...]                                               # (1, N)
    m_new = jnp.maximum(m_old, jnp.max(s, axis=0, keepdims=True))      # (1, N)
    alpha = jnp.exp(m_old - m_new)                                     # (1, N) f32
    e_f = jnp.exp((s - m_new).astype(exp_dtype))                       # (TQ, N)
    l_f_ref[...] = alpha * l_f_ref[...] + jnp.sum(e_f.astype(f32),
                                                  axis=0, keepdims=True)
    acc_f_ref[...] = alpha * acc_f_ref[...] + jnp.dot(
        r_emb_bf, e_f.astype(bf16), preferred_element_type=f32)        # (IC, N)
    m_f_ref[...] = m_new

    # ---- finalize flow branch at the last row tile --------------------------
    @pl.when(t == last_t)
    def _finalize():
        y_f = acc_f_ref[...] * pl.reciprocal(l_f_ref[...], approx=True)  # (IC, N)
        out_f = jnp.dot(wo_flow_ref[...], y_f.astype(bf16),
                        preferred_element_type=f32)                      # (C, N)
        flow_z_ref[0] = (out_f + bo_flow_ref[...] + x_f).astype(flow_z_ref.dtype)


def _pick_row_tile(n):
    """Largest of (512, 256, 128) dividing N, else the full N."""
    for t in (512, 256, 128):
        if n % t == 0:
            return t
    return n


def _tpu_vmem_limit_bytes(default_limit=64 * 1024 * 1024):
    """Generation-aware VMEM budget (~15% headroom for Mosaic scratch)."""
    try:
        cap = int(pltpu.get_tpu_info().vmem_capacity_bytes)
        return int(cap * 0.85)          # ~54 MiB on v7x (64), ~108 MiB on v5e/v6e (128)
    except Exception:
        return default_limit


def _use_bf16_exp():
    """bf16 VPU/EUP exists on v6e and newer; keep f32 exp on v5e / unknown HW."""
    try:
        kind = jax.devices()[0].device_kind.lower()
    except Exception:
        return False
    return any(tag in kind for tag in ("v6", "v7", "7x"))


def ccf_block_forward(rgb_nchw, flow_nchw, params):
    """rgb_nchw, flow_nchw: (B, C, H, W) float32. Returns (rgb_z, flow_z) NCHW."""
    B, C, H, W = rgb_nchw.shape
    N = H * W
    IC = params["wg_rgb"].shape[0]
    TQ = _pick_row_tile(N)
    T = N // TQ

    bf16 = jnp.bfloat16
    # NCHW -> (B, C, N): pure reshape, no transpose / HBM round-trip.
    rgb = rgb_nchw.reshape(B, C, N)
    flow = flow_nchw.reshape(B, C, N)

    # Weights are bf16 MXU operands anyway: cast once in the wrapper to halve
    # their HBM traffic and (double-buffered) VMEM footprint.  Biases stay f32.
    wg_rgb = params["wg_rgb"].astype(bf16)
    wg_flow = params["wg_flow"].astype(bf16)
    wo_rgb = params["wo_rgb"].astype(bf16)
    wo_flow = params["wo_flow"].astype(bf16)

    exp_dtype = bf16 if _use_bf16_exp() else jnp.float32

    rgb_tile_spec = pl.BlockSpec((1, C, TQ), lambda b, t: (b, 0, t))
    flow_full_spec = pl.BlockSpec((1, C, N), lambda b, t: (b, 0, 0))
    w_spec = lambda shape: pl.BlockSpec(shape, lambda b, t: (0,) * len(shape))

    cost = pl.CostEstimate(
        flops=2 * B * (3 * N * N * IC + 4 * C * IC * N),
        transcendentals=2 * B * N * N,
        bytes_accessed=16 * B * C * N)

    kernel = functools.partial(_ccf_kernel, exp_dtype=exp_dtype)

    rgb_z, flow_z = pl.pallas_call(
        kernel,
        out_shape=(jax.ShapeDtypeStruct((B, C, N), rgb.dtype),
                   jax.ShapeDtypeStruct((B, C, N), flow.dtype)),
        grid=(B, T),
        in_specs=[
            rgb_tile_spec, flow_full_spec,
            w_spec((IC, C)), w_spec((IC, 1)),
            w_spec((IC, C)), w_spec((IC, 1)),
            w_spec((C, IC)), w_spec((C, 1)),
            w_spec((C, IC)), w_spec((C, 1)),
        ],
        out_specs=(rgb_tile_spec, flow_full_spec),
        scratch_shapes=[
            pltpu.VMEM((IC, N), bf16),          # f_emb (flow embedding, per batch)
            pltpu.VMEM((1, N), jnp.float32),    # running column max of S
            pltpu.VMEM((1, N), jnp.float32),    # running column sum of exp
            pltpu.VMEM((IC, N), jnp.float32),   # unnormalized flow_y accumulator
        ],
        compiler_params=pltpu.CompilerParams(
            dimension_semantics=("parallel", "arbitrary"),
            vmem_limit_bytes=_tpu_vmem_limit_bytes()),
        cost_estimate=cost,
    )(rgb, flow,
      wg_rgb, params["bg_rgb"], wg_flow, params["bg_flow"],
      wo_rgb, params["bo_rgb"], wo_flow, params["bo_flow"])

    # (B, C, N) -> NCHW: pure reshape.
    return rgb_z.reshape(B, C, H, W), flow_z.reshape(B, C, H, W)


def make_params(key, in_channels, inter_channels=None):
    """Deterministic synthetic parameters matching the module's shapes.

    Conv-style layouts: wg (IC, C), wo (C, IC); biases as column vectors so
    they broadcast over the lane (spatial) axis.  BatchNorm (bn_layer=True,
    eval mode: gamma=1, beta=0, running_mean=0, running_var=1, eps=1e-5) is
    folded into the output-projection conv.
    """
    if inter_channels is None:
        inter_channels = max(in_channels // 2, 1)
    C, IC = in_channels, inter_channels
    k = jax.random.split(key, 8)
    scale = 0.1
    wg_rgb = scale * jax.random.normal(k[0], (IC, C), jnp.float32)
    bg_rgb = scale * jax.random.normal(k[1], (IC, 1), jnp.float32)
    wg_flow = scale * jax.random.normal(k[2], (IC, C), jnp.float32)
    bg_flow = scale * jax.random.normal(k[3], (IC, 1), jnp.float32)

    wo_rgb_conv = scale * jax.random.normal(k[4], (C, IC), jnp.float32)
    bo_rgb_conv = scale * jax.random.normal(k[5], (C, 1), jnp.float32)
    wo_flow_conv = scale * jax.random.normal(k[6], (C, IC), jnp.float32)
    bo_flow_conv = scale * jax.random.normal(k[7], (C, 1), jnp.float32)

    eps = 1e-5
    bn_scale = 1.0 / jnp.sqrt(1.0 + eps)   # gamma=1, running_var=1
    bn_shift = 0.0                         # beta=0, running_mean=0

    return {
        "wg_rgb": wg_rgb, "bg_rgb": bg_rgb,
        "wg_flow": wg_flow, "bg_flow": bg_flow,
        "wo_rgb": wo_rgb_conv * bn_scale,
        "bo_rgb": bo_rgb_conv * bn_scale + bn_shift,
        "wo_flow": wo_flow_conv * bn_scale,
        "bo_flow": bo_flow_conv * bn_scale + bn_shift,
    }


def _ref_forward(rgb_nchw, flow_nchw, params):
    """Pure-JAX f32 reference mirroring the PyTorch forward."""
    B, C, H, W = rgb_nchw.shape
    N = H * W
    x = rgb_nchw.reshape(B, C, N)
    y = flow_nchw.reshape(B, C, N)
    r_emb = jnp.einsum("oc,bcn->bon", params["wg_rgb"], x) + params["bg_rgb"]
    f_emb = jnp.einsum("oc,bcn->bon", params["wg_flow"], y) + params["bg_flow"]
    s = jnp.einsum("bci,bcj->bij", r_emb, f_emb)
    p_r = jax.nn.softmax(s, axis=-1)
    p_f = jax.nn.softmax(jnp.swapaxes(s, 1, 2), axis=-1)
    y_r = jnp.einsum("bij,bcj->bci", p_r, f_emb)
    y_f = jnp.einsum("bji,bci->bcj", p_f, r_emb)
    rgb_z = jnp.einsum("co,bon->bcn", params["wo_rgb"], y_r) + params["bo_rgb"] + x
    flow_z = jnp.einsum("co,bon->bcn", params["wo_flow"], y_f) + params["bo_flow"] + y
    return rgb_z.reshape(B, C, H, W), flow_z.reshape(B, C, H, W)


if __name__ == "__main__":
    key = jax.random.PRNGKey(0)
    k_rgb, k_flow, k_params = jax.random.split(key, 3)

    B, C, H, W = 2, 4, 16, 16
    rgb = jax.random.normal(k_rgb, (B, C, H, W), jnp.float32)
    flow = jax.random.normal(k_flow, (B, C, H, W), jnp.float32)
    params = make_params(k_params, in_channels=C)

    rgb_z, flow_z = ccf_block_forward(rgb, flow, params)
    jax.block_until_ready((rgb_z, flow_z))

    rgb_ref, flow_ref = _ref_forward(rgb, flow, params)
    # bf16 MXU operands (f32 accumulation) + approx reciprocal -> looser tolerance.
    assert jnp.allclose(rgb_z, rgb_ref, atol=2e-2, rtol=2e-2), \
        float(jnp.max(jnp.abs(rgb_z - rgb_ref)))
    assert jnp.allclose(flow_z, flow_ref, atol=2e-2, rtol=2e-2), \
        float(jnp.max(jnp.abs(flow_z - flow_ref)))

    print("KERNEL_OK")
</pallas_src>

<mosaic_0001>
module attributes {stable_mosaic.version = 11 : i64} {
  func.func @_ccf_kernel(%arg0: i32, %arg1: i32, %arg2: memref<1x4x256xf32, #tpu.memory_space<vmem>>, %arg3: memref<1x4x256xf32, #tpu.memory_space<vmem>>, %arg4: memref<2x4xbf16, #tpu.memory_space<vmem>>, %arg5: memref<2x1xf32, #tpu.memory_space<vmem>>, %arg6: memref<2x4xbf16, #tpu.memory_space<vmem>>, %arg7: memref<2x1xf32, #tpu.memory_space<vmem>>, %arg8: memref<4x2xbf16, #tpu.memory_space<vmem>>, %arg9: memref<4x1xf32, #tpu.memory_space<vmem>>, %arg10: memref<4x2xbf16, #tpu.memory_space<vmem>>, %arg11: memref<4x1xf32, #tpu.memory_space<vmem>>, %arg12: memref<1x4x256xf32, #tpu.memory_space<vmem>>, %arg13: memref<1x4x256xf32, #tpu.memory_space<vmem>>, %arg14: memref<2x256xbf16, #tpu.memory_space<vmem>>, %arg15: memref<1x256xf32, #tpu.memory_space<vmem>>, %arg16: memref<1x256xf32, #tpu.memory_space<vmem>>, %arg17: memref<2x256xf32, #tpu.memory_space<vmem>>) attributes {dimension_semantics = [#tpu.dimension_semantics<parallel>, #tpu.dimension_semantics<arbitrary>], iteration_bounds = array<i64: 2, 1>, scalar_prefetch = 0 : i64, scratch_operands = 4 : i64, tpu.core_type = #tpu.core_type<tc>, window_params = [{transform_indices = @transform_0, window_bounds = array<i64: 1, 4, 256>}, {transform_indices = @transform_1, window_bounds = array<i64: 1, 4, 256>}, {pipeline_mode = #tpu.pipeline_mode<synchronous>, transform_indices = @transform_2, window_bounds = array<i64: 2, 4>}, {pipeline_mode = #tpu.pipeline_mode<synchronous>, transform_indices = @transform_3, window_bounds = array<i64: 2, 1>}, {pipeline_mode = #tpu.pipeline_mode<synchronous>, transform_indices = @transform_4, window_bounds = array<i64: 2, 4>}, {pipeline_mode = #tpu.pipeline_mode<synchronous>, transform_indices = @transform_5, window_bounds = array<i64: 2, 1>}, {pipeline_mode = #tpu.pipeline_mode<synchronous>, transform_indices = @transform_6, window_bounds = array<i64: 4, 2>}, {pipeline_mode = #tpu.pipeline_mode<synchronous>, transform_indices = @transform_7, window_bounds = array<i64: 4, 1>}, {pipeline_mode = #tpu.pipeline_mode<synchronous>, transform_indices = @transform_8, window_bounds = array<i64: 4, 2>}, {pipeline_mode = #tpu.pipeline_mode<synchronous>, transform_indices = @transform_9, window_bounds = array<i64: 4, 1>}, {transform_indices = @transform_10, window_bounds = array<i64: 1, 4, 256>}, {transform_indices = @transform_11, window_bounds = array<i64: 1, 4, 256>}]} {
    %c0 = arith.constant 0 : index
    %c0_0 = arith.constant 0 : index
    %c0_1 = arith.constant 0 : index
    %0 = vector.load %arg2[%c0, %c0_0, %c0_1] : memref<1x4x256xf32, #tpu.memory_space<vmem>>, vector<1x4x256xf32>
    %1 = vector.shape_cast %0 : vector<1x4x256xf32> to vector<4x256xf32>
    %c0_2 = arith.constant 0 : index
    %c0_3 = arith.constant 0 : index
    %c0_4 = arith.constant 0 : index
    %2 = vector.load %arg3[%c0_2, %c0_3, %c0_4] : memref<1x4x256xf32, #tpu.memory_space<vmem>>, vector<1x4x256xf32>
    %3 = vector.shape_cast %2 : vector<1x4x256xf32> to vector<4x256xf32>
    %c0_i32 = arith.constant 0 : i32
    %4 = arith.cmpi eq, %arg1, %c0_i32 : i32
    %5 = arith.extui %4 : i1 to i32
    %c0_i32_5 = arith.constant 0 : i32
    %6 = arith.cmpi ne, %5, %c0_i32_5 : i32
    scf.if %6 {
      %c0_41 = arith.constant 0 : index
      %c0_42 = arith.constant 0 : index
      %66 = vector.load %arg6[%c0_41, %c0_42] : memref<2x4xbf16, #tpu.memory_space<vmem>>, vector<2x4xbf16>
      %67 = arith.truncf %3 : vector<4x256xf32> to vector<4x256xbf16>
      %cst_43 = arith.constant dense<0.000000e+00> : vector<2x256xf32>
      %68 = tpu.matmul %66, %67, %cst_43 {dimension_numbers = #tpu.dot_dimension_numbers<[1], [0], [0], [1], [0, 0, 1, 1], [], []>} : vector<2x4xbf16>, vector<4x256xbf16>, vector<2x256xf32> -> vector<2x256xf32>
      %c0_44 = arith.constant 0 : index
      %c0_45 = arith.constant 0 : index
      %69 = vector.load %arg7[%c0_44, %c0_45] : memref<2x1xf32, #tpu.memory_space<vmem>>, vector<2x1xf32>
      %70 = vector.broadcast %69 : vector<2x1xf32> to vector<2x256xf32>
      %71 = arith.addf %68, %70 : vector<2x256xf32>
      %72 = arith.truncf %71 : vector<2x256xf32> to vector<2x256xbf16>
      %c0_46 = arith.constant 0 : index
      %c0_47 = arith.constant 0 : index
      %73 = vector.load %arg14[%c0_46, %c0_47] : memref<2x256xbf16, #tpu.memory_space<vmem>>, vector<2x256xbf16>
      tpu.vector_store %arg14[%c0_46, %c0_47], %72 {strides = array<i32>} : memref<2x256xbf16, #tpu.memory_space<vmem>>, vector<2x256xbf16>,
      %cst_48 = arith.constant 0xFF800000 : f32
      %74 = vector.broadcast %cst_48 : f32 to vector<1x256xf32>
      %c0_49 = arith.constant 0 : index
      %c0_50 = arith.constant 0 : index
      %75 = vector.load %arg15[%c0_49, %c0_50] : memref<1x256xf32, #tpu.memory_space<vmem>>, vector<1x256xf32>
      tpu.vector_store %arg15[%c0_49, %c0_50], %74 {strides = array<i32>} : memref<1x256xf32, #tpu.memory_space<vmem>>, vector<1x256xf32>,
      %cst_51 = arith.constant 0.000000e+00 : f32
      %76 = vector.broadcast %cst_51 : f32 to vector<1x256xf32>
      %c0_52 = arith.constant 0 : index
      %c0_53 = arith.constant 0 : index
      %77 = vector.load %arg16[%c0_52, %c0_53] : memref<1x256xf32, #tpu.memory_space<vmem>>, vector<1x256xf32>
      tpu.vector_store %arg16[%c0_52, %c0_53], %76 {strides = array<i32>} : memref<1x256xf32, #tpu.memory_space<vmem>>, vector<1x256xf32>,
      %cst_54 = arith.constant 0.000000e+00 : f32
      %78 = vector.broadcast %cst_54 : f32 to vector<2x256xf32>
      %c0_55 = arith.constant 0 : index
      %c0_56 = arith.constant 0 : index
      %79 = vector.load %arg17[%c0_55, %c0_56] : memref<2x256xf32, #tpu.memory_space<vmem>>, vector<2x256xf32>
      tpu.vector_store %arg17[%c0_55, %c0_56], %78 {strides = array<i32>} : memref<2x256xf32, #tpu.memory_space<vmem>>, vector<2x256xf32>,
    } else {
    }
    %c0_6 = arith.constant 0 : index
    %c0_7 = arith.constant 0 : index
    %7 = vector.load %arg14[%c0_6, %c0_7] : memref<2x256xbf16, #tpu.memory_space<vmem>>, vector<2x256xbf16>
    %c0_8 = arith.constant 0 : index
    %c0_9 = arith.constant 0 : index
    %8 = vector.load %arg4[%c0_8, %c0_9] : memref<2x4xbf16, #tpu.memory_space<vmem>>, vector<2x4xbf16>
    %9 = arith.truncf %1 : vector<4x256xf32> to vector<4x256xbf16>
    %cst = arith.constant dense<0.000000e+00> : vector<2x256xf32>
    %10 = tpu.matmul %8, %9, %cst {dimension_numbers = #tpu.dot_dimension_numbers<[1], [0], [0], [1], [0, 0, 1, 1], [], []>} : vector<2x4xbf16>, vector<4x256xbf16>, vector<2x256xf32> -> vector<2x256xf32>
    %c0_10 = arith.constant 0 : index
    %c0_11 = arith.constant 0 : index
    %11 = vector.load %arg5[%c0_10, %c0_11] : memref<2x1xf32, #tpu.memory_space<vmem>>, vector<2x1xf32>
    %12 = vector.broadcast %11 : vector<2x1xf32> to vector<2x256xf32>
    %13 = arith.addf %10, %12 : vector<2x256xf32>
    %14 = arith.truncf %13 : vector<2x256xf32> to vector<2x256xbf16>
    %15 = tpu.transpose %13, [1, 0] : vector<2x256xf32> -> vector<256x2xf32>
    %16 = arith.truncf %15 : vector<256x2xf32> to vector<256x2xbf16>
    %cst_12 = arith.constant dense<0.000000e+00> : vector<256x256xf32>
    %17 = tpu.matmul %16, %7, %cst_12 {dimension_numbers = #tpu.dot_dimension_numbers<[1], [0], [0], [1], [0, 0, 1, 1], [], []>} : vector<256x2xbf16>, vector<2x256xbf16>, vector<256x256xf32> -> vector<256x256xf32>
    %cst_13 = arith.constant dense<0xFF800000> : vector<256xf32>
    %18 = vector.multi_reduction <maximumf>, %17, %cst_13 [1] : vector<256x256xf32> to vector<256xf32>
    %19 = vector.shape_cast %18 : vector<256xf32> to vector<256x1xf32>
    %20 = vector.broadcast %19 : vector<256x1xf32> to vector<256x256xf32>
    %21 = arith.subf %17, %20 : vector<256x256xf32>
    %22 = math.exp %21 : vector<256x256xf32>
    %cst_14 = arith.constant dense<0.000000e+00> : vector<256xf32>
    %23 = vector.multi_reduction <add>, %22, %cst_14 [1] : vector<256x256xf32> to vector<256xf32>
    %24 = vector.shape_cast %23 : vector<256xf32> to vector<256x1xf32>
    %25 = arith.truncf %22 : vector<256x256xf32> to vector<256x256xbf16>
    %cst_15 = arith.constant dense<0.000000e+00> : vector<256x2xf32>
    %26 = tpu.matmul %25, %7, %cst_15 {dimension_numbers = #tpu.dot_dimension_numbers<[1], [1], [0], [0], [0, 0, 1, 0], [], []>} : vector<256x256xbf16>, vector<2x256xbf16>, vector<256x2xf32> -> vector<256x2xf32>
    %27 = tpu.reciprocal %24 {approx = true} : vector<256x1xf32> -> vector<256x1xf32>
    %28 = vector.broadcast %27 : vector<256x1xf32> to vector<256x2xf32>
    %29 = arith.mulf %26, %28 : vector<256x2xf32>
    %c0_16 = arith.constant 0 : index
    %c0_17 = arith.constant 0 : index
    %30 = vector.load %arg8[%c0_16, %c0_17] : memref<4x2xbf16, #tpu.memory_space<vmem>>, vector<4x2xbf16>
    %31 = arith.truncf %29 : vector<256x2xf32> to vector<256x2xbf16>
    %cst_18 = arith.constant dense<0.000000e+00> : vector<4x256xf32>
    %32 = tpu.matmul %30, %31, %cst_18 {dimension_numbers = #tpu.dot_dimension_numbers<[1], [1], [0], [0], [0, 0, 1, 0], [], []>} : vector<4x2xbf16>, vector<256x2xbf16>, vector<4x256xf32> -> vector<4x256xf32>
    %c0_19 = arith.constant 0 : index
    %c0_20 = arith.constant 0 : index
    %33 = vector.load %arg9[%c0_19, %c0_20] : memref<4x1xf32, #tpu.memory_space<vmem>>, vector<4x1xf32>
    %34 = vector.broadcast %33 : vector<4x1xf32> to vector<4x256xf32>
    %35 = arith.addf %32, %34 : vector<4x256xf32>
    %36 = arith.addf %35, %1 : vector<4x256xf32>
    %c0_21 = arith.constant 0 : index
    %c0_22 = arith.constant 0 : index
    %c0_23 = arith.constant 0 : index
    %37 = vector.load %arg12[%c0_21, %c0_22, %c0_23] : memref<1x4x256xf32, #tpu.memory_space<vmem>>, vector<1x4x256xf32>
    %38 = vector.shape_cast %37 : vector<1x4x256xf32> to vector<4x256xf32>
    %39 = vector.shape_cast %36 : vector<4x256xf32> to vector<1x4x256xf32>
    tpu.vector_store %arg12[%c0_21, %c0_22, %c0_23], %39 {strides = array<i32>} : memref<1x4x256xf32, #tpu.memory_space<vmem>>, vector<1x4x256xf32>,
    %c0_24 = arith.constant 0 : index
    %c0_25 = arith.constant 0 : index
    %40 = vector.load %arg15[%c0_24, %c0_25] : memref<1x256xf32, #tpu.memory_space<vmem>>, vector<1x256xf32>
    %cst_26 = arith.constant dense<0xFF800000> : vector<256xf32>
    %41 = vector.multi_reduction <maximumf>, %17, %cst_26 [0] : vector<256x256xf32> to vector<256xf32>
    %42 = vector.shape_cast %41 : vector<256xf32> to vector<1x256xf32>
    %43 = arith.maximumf %40, %42 : vector<1x256xf32>
    %44 = arith.subf %40, %43 : vector<1x256xf32>
    %45 = math.exp %44 : vector<1x256xf32>
    %46 = vector.broadcast %43 : vector<1x256xf32> to vector<256x256xf32>
    %47 = arith.subf %17, %46 : vector<256x256xf32>
    %48 = math.exp %47 : vector<256x256xf32>
    %c0_27 = arith.constant 0 : index
    %c0_28 = arith.constant 0 : index
    %49 = vector.load %arg16[%c0_27, %c0_28] : memref<1x256xf32, #tpu.memory_space<vmem>>, vector<1x256xf32>
    %50 = arith.mulf %45, %49 : vector<1x256xf32>
    %cst_29 = arith.constant dense<0.000000e+00> : vector<256xf32>
    %51 = vector.multi_reduction <add>, %48, %cst_29 [0] : vector<256x256xf32> to vector<256xf32>
    %52 = vector.shape_cast %51 : vector<256xf32> to vector<1x256xf32>
    %53 = arith.addf %50, %52 : vector<1x256xf32>
    %c0_30 = arith.constant 0 : index
    %c0_31 = arith.constant 0 : index
    %54 = vector.load %arg16[%c0_30, %c0_31] : memref<1x256xf32, #tpu.memory_space<vmem>>, vector<1x256xf32>
    tpu.vector_store %arg16[%c0_30, %c0_31], %53 {strides = array<i32>} : memref<1x256xf32, #tpu.memory_space<vmem>>, vector<1x256xf32>,
    %c0_32 = arith.constant 0 : index
    %c0_33 = arith.constant 0 : index
    %55 = vector.load %arg17[%c0_32, %c0_33] : memref<2x256xf32, #tpu.memory_space<vmem>>, vector<2x256xf32>
    %56 = vector.broadcast %45 : vector<1x256xf32> to vector<2x256xf32>
    %57 = arith.mulf %56, %55 : vector<2x256xf32>
    %58 = arith.truncf %48 : vector<256x256xf32> to vector<256x256xbf16>
    %cst_34 = arith.constant dense<0.000000e+00> : vector<2x256xf32>
    %59 = tpu.matmul %14, %58, %cst_34 {dimension_numbers = #tpu.dot_dimension_numbers<[1], [0], [0], [1], [0, 0, 1, 1], [], []>} : vector<2x256xbf16>, vector<256x256xbf16>, vector<2x256xf32> -> vector<2x256xf32>
    %60 = arith.addf %57, %59 : vector<2x256xf32>
    %c0_35 = arith.constant 0 : index
    %c0_36 = arith.constant 0 : index
    %61 = vector.load %arg17[%c0_35, %c0_36] : memref<2x256xf32, #tpu.memory_space<vmem>>, vector<2x256xf32>
    tpu.vector_store %arg17[%c0_35, %c0_36], %60 {strides = array<i32>} : memref<2x256xf32, #tpu.memory_space<vmem>>, vector<2x256xf32>,
    %c0_37 = arith.constant 0 : index
    %c0_38 = arith.constant 0 : index
    %62 = vector.load %arg15[%c0_37, %c0_38] : memref<1x256xf32, #tpu.memory_space<vmem>>, vector<1x256xf32>
    tpu.vector_store %arg15[%c0_37, %c0_38], %43 {strides = array<i32>} : memref<1x256xf32, #tpu.memory_space<vmem>>, vector<1x256xf32>,
    %c0_i32_39 = arith.constant 0 : i32
    %63 = arith.cmpi eq, %arg1, %c0_i32_39 : i32
    %64 = arith.extui %63 : i1 to i32
    %c0_i32_40 = arith.constant 0 : i32
    %65 = arith.cmpi ne, %64, %c0_i32_40 : i32
    scf.if %65 {
      %c0_41 = arith.constant 0 : index
      %c0_42 = arith.constant 0 : index
      %66 = vector.load %arg17[%c0_41, %c0_42] : memref<2x256xf32, #tpu.memory_space<vmem>>, vector<2x256xf32>
      %c0_43 = arith.constant 0 : index
      %c0_44 = arith.constant 0 : index
      %67 = vector.load %arg16[%c0_43, %c0_44] : memref<1x256xf32, #tpu.memory_space<vmem>>, vector<1x256xf32>
      %68 = tpu.reciprocal %67 {approx = true} : vector<1x256xf32> -> vector<1x256xf32>
      %69 = vector.broadcast %68 : vector<1x256xf32> to vector<2x256xf32>
      %70 = arith.mulf %66, %69 : vector<2x256xf32>
      %c0_45 = arith.constant 0 : index
      %c0_46 = arith.constant 0 : index
      %71 = vector.load %arg10[%c0_45, %c0_46] : memref<4x2xbf16, #tpu.memory_space<vmem>>, vector<4x2xbf16>
      %72 = arith.truncf %70 : vector<2x256xf32> to vector<2x256xbf16>
      %cst_47 = arith.constant dense<0.000000e+00> : vector<4x256xf32>
      %73 = tpu.matmul %71, %72, %cst_47 {dimension_numbers = #tpu.dot_dimension_numbers<[1], [0], [0], [1], [0, 0, 1, 1], [], []>} : vector<4x2xbf16>, vector<2x256xbf16>, vector<4x256xf32> -> vector<4x256xf32>
      %c0_48 = arith.constant 0 : index
      %c0_49 = arith.constant 0 : index
      %74 = vector.load %arg11[%c0_48, %c0_49] : memref<4x1xf32, #tpu.memory_space<vmem>>, vector<4x1xf32>
      %75 = vector.broadcast %74 : vector<4x1xf32> to vector<4x256xf32>
      %76 = arith.addf %73, %75 : vector<4x256xf32>
      %77 = arith.addf %76, %3 : vector<4x256xf32>
      %c0_50 = arith.constant 0 : index
      %c0_51 = arith.constant 0 : index
      %c0_52 = arith.constant 0 : index
      %78 = vector.load %arg13[%c0_50, %c0_51, %c0_52] : memref<1x4x256xf32, #tpu.memory_space<vmem>>, vector<1x4x256xf32>
      %79 = vector.shape_cast %78 : vector<1x4x256xf32> to vector<4x256xf32>
      %80 = vector.shape_cast %77 : vector<4x256xf32> to vector<1x4x256xf32>
      tpu.vector_store %arg13[%c0_50, %c0_51, %c0_52], %80 {strides = array<i32>} : memref<1x4x256xf32, #tpu.memory_space<vmem>>, vector<1x4x256xf32>,
    } else {
    }
    return
  }
  func.func @transform_0(%arg0: i32, %arg1: i32) -> (i32, i32, i32) {
    %c0_i32 = arith.constant 0 : i32
    %c0_i32_0 = arith.constant 0 : i32
    return %arg0, %c0_i32, %arg1 : i32, i32, i32
  }
  func.func @transform_1(%arg0: i32, %arg1: i32) -> (i32, i32, i32) {
    %c0_i32 = arith.constant 0 : i32
    %c0_i32_0 = arith.constant 0 : i32
    %c0_i32_1 = arith.constant 0 : i32
    return %arg0, %c0_i32, %c0_i32_0 : i32, i32, i32
  }
  func.func @transform_2(%arg0: i32, %arg1: i32) -> (i32, i32) {
    %c0_i32 = arith.constant 0 : i32
    %c0_i32_0 = arith.constant 0 : i32
    %c0_i32_1 = arith.constant 0 : i32
    return %c0_i32, %c0_i32_0 : i32, i32
  }
  func.func @transform_3(%arg0: i32, %arg1: i32) -> (i32, i32) {
    %c0_i32 = arith.constant 0 : i32
    %c0_i32_0 = arith.constant 0 : i32
    %c0_i32_1 = arith.constant 0 : i32
    return %c0_i32, %c0_i32_0 : i32, i32
  }
  func.func @transform_4(%arg0: i32, %arg1: i32) -> (i32, i32) {
    %c0_i32 = arith.constant 0 : i32
    %c0_i32_0 = arith.constant 0 : i32
    %c0_i32_1 = arith.constant 0 : i32
    return %c0_i32, %c0_i32_0 : i32, i32
  }
  func.func @transform_5(%arg0: i32, %arg1: i32) -> (i32, i32) {
    %c0_i32 = arith.constant 0 : i32
    %c0_i32_0 = arith.constant 0 : i32
    %c0_i32_1 = arith.constant 0 : i32
    return %c0_i32, %c0_i32_0 : i32, i32
  }
  func.func @transform_6(%arg0: i32, %arg1: i32) -> (i32, i32) {
    %c0_i32 = arith.constant 0 : i32
    %c0_i32_0 = arith.constant 0 : i32
    %c0_i32_1 = arith.constant 0 : i32
    return %c0_i32, %c0_i32_0 : i32, i32
  }
  func.func @transform_7(%arg0: i32, %arg1: i32) -> (i32, i32) {
    %c0_i32 = arith.constant 0 : i32
    %c0_i32_0 = arith.constant 0 : i32
    %c0_i32_1 = arith.constant 0 : i32
    return %c0_i32, %c0_i32_0 : i32, i32
  }
  func.func @transform_8(%arg0: i32, %arg1: i32) -> (i32, i32) {
    %c0_i32 = arith.constant 0 : i32
    %c0_i32_0 = arith.constant 0 : i32
    %c0_i32_1 = arith.constant 0 : i32
    return %c0_i32, %c0_i32_0 : i32, i32
  }
  func.func @transform_9(%arg0: i32, %arg1: i32) -> (i32, i32) {
    %c0_i32 = arith.constant 0 : i32
    %c0_i32_0 = arith.constant 0 : i32
    %c0_i32_1 = arith.constant 0 : i32
    return %c0_i32, %c0_i32_0 : i32, i32
  }
  func.func @transform_10(%arg0: i32, %arg1: i32) -> (i32, i32, i32) {
    %c0_i32 = arith.constant 0 : i32
    %c0_i32_0 = arith.constant 0 : i32
    return %arg0, %c0_i32, %arg1 : i32, i32, i32
  }
  func.func @transform_11(%arg0: i32, %arg1: i32) -> (i32, i32, i32) {
    %c0_i32 = arith.constant 0 : i32
    %c0_i32_0 = arith.constant 0 : i32
    %c0_i32_1 = arith.constant 0 : i32
    return %arg0, %c0_i32, %c0_i32_0 : i32, i32, i32
  }
}

</mosaic_0001>

<bundles_post_ra>
// kernel: tpu_custom_call.1
= control target key start
LH: loop header
LB: loop body
LE: loop exit
PB: predicated region body
PF: predicated region fallthrough
CT: control target
= control target key end

     0   :  { %s4640_s0 = inlined_call_operand.hbm [shape: f32[2,4,256], index: 0, kind: input, shape index: {}]   ;;  %s4641_s1 = inlined_call_operand.hbm [shape: f32[2,4,256], index: 1, kind: input, shape index: {}]   ;;  %s4642_s2 = inlined_call_operand.vmem [shape: bf16[2,4], index: 2, kind: input, shape index: {}]   ;;  %s4643_s3 = inlined_call_operand.vmem [shape: f32[2,1], index: 3, kind: input, shape index: {}]   ;;  %s4644_s4 = inlined_call_operand.vmem [shape: bf16[2,4], index: 4, kind: input, shape index: {}]   ;;  %s4645_s5 = inlined_call_operand.vmem [shape: f32[2,1], index: 5, kind: input, shape index: {}]   ;;  %s4646_s6 = inlined_call_operand.vmem [shape: bf16[4,2], index: 6, kind: input, shape index: {}]   ;;  %s4647_s7 = inlined_call_operand.vmem [shape: f32[4,1], index: 7, kind: input, shape index: {}]   ;;  %s4648_s8 = inlined_call_operand.vmem [shape: bf16[4,2], index: 8, kind: input, shape index: {}]   ;;  %s4649_s9 = inlined_call_operand.vmem [shape: f32[4,1], index: 9, kind: input, shape index: {}]   ;;  %s4650_s10 = inlined_call_operand.hbm [shape: f32[2,4,256], index: 10, kind: output, shape index: {0}]   ;;  %s4651_s11 = inlined_call_operand.hbm [shape: f32[2,4,256], index: 11, kind: output, shape index: {1}]  }
   0x1   :  { %4801 = sst [smem:[#allocation106_spill]] %s4650_s10 }
   0x2   :  { %4802 = sst [smem:[#allocation107_spill]] %s4651_s11 }
   0x3   :  { %17 = vsyncpa [#allocation7], 0 }
   0x4   :  { %19 = vsyncpa [#allocation7 + $0x1], 0 }
   0x5   :  { %20 = vsyncpa [#allocation10], 0 }
   0x6   :  { %22 = vsyncpa [#allocation10 + $0x1], 0 }
   0x7   :  { %23 = vsyncpa [#allocation8], 0 }
   0x8   :  { %25 = vsyncpa [#allocation8 + $0x1], 0 }
   0x9   :  { %26 = vsyncpa [#allocation13], 0 }
   0xa   :  { %28 = vsyncpa [#allocation13 + $0x1], 0  ;;  %s3141_s17 = smov 0   ;;  %s3143_s18 = smov 0  }
   0xb   :  { %s3145_s19 = smov 0   ;;  %s3147_s20 = smov 0  }
   0xc   :  { %s3149_s21 = smov 0   ;;  %s3151_s22 = smov 0  }
   0xd LB: > { %4803 = sst [smem:[#allocation18_spill]] %s3056_s17  ;;  %s2430_s23 = sadd.s32 4294967295, %s3076_s22   ;;  %s3076_s22 = sphi %s3151_s22, %s34_s22   ;;  %s3072_s21 = sphi %s3149_s21, %s5102_s21   ;;  %s3068_s20 = sphi %s3147_s20, %s5101_s20   ;;  %s3064_s19 = sphi %s3145_s19, %s5100_s19   ;;  %s3060_s18 = sphi %s3143_s18, %s5104_s18   ;;  %s3056_s17 = sphi %s3141_s17, %s5103_s17  }
   0xe   : > { %4804 = sst [smem:[#allocation19_spill]] %s3064_s19  ;;  %s2431_s24 = sadd.s32 4294967294, %s3076_s22  }
   0xf   : > { %4805 = sst [smem:[#allocation20_spill]] %s3072_s21  ;;  %s46_s25 = sadd.s32 1, %s3072_s21 }
  0x10   : > { %s55_s26 = sadd.s32 1, %s3064_s19  ;;  %p48_p0 = scmp.ge.s32.totalorder %s46_s25, 2 }
  0x11   : > { %p62_p1 = scmp.ne.s32.totalorder %s3064_s19, %s3060_s18  ;;  %p63_p2 = scmp.eq.s32.totalorder %s3076_s22, 0 }
  0x12   : > { %p68_p3 = scmp.ne.s32.totalorder %s3060_s18, %s3056_s17  ;;  %s5106_s25 = smov (%p48_p0, %s46_s25), 0 }
  0x13   : > { %4806 = sst [smem:[#allocation21_spill]] %s5106_s25  ;;  %p3182_p4 = por %p63_p2, %p62_p1 }
  0x14   : > { %p69_p5 = scmp.eq.s32.totalorder %s2430_s23, 0  ;;  %s50_s28 = ssub.s32 %s3072_s21, %s5106_s25 }
  0x15   : > { %p288_p6 = scmp.eq.s32.totalorder %s2430_s23, 1  ;;  %p53_p7 = scmp.eq.s32.totalorder %s50_s28, 0 }
  0x16   : > { %p3188_p8 = por %p69_p5, %p68_p3  ;;  %p294_p10 = scmp.eq.s32.totalorder %s2431_s24, 1 }
  0x17   : > { %p3192_p9 = por %p288_p6, %p62_p1  ;;  %p2433_p12 = scmp.ge.s32.totalorder %s3076_s22, 2 }
  0x18   : > { %s3197_s12 = scalar_select %p53_p7, %s3064_s19, %s55_s26  }
  0x19   : > { %p3199_p11 = por %p294_p10, %p68_p3  ;;  %p2519_p13 = scmp.lt.s32.totalorder %s3076_s22, 2 }
  0x1a   : > { %4810 = sst [smem:[#allocation22_spill]] %s3197_s12  ;;  %s364_s14 = sand.u32 1, %s3064_s19  }
  0x1b   : > { %s4811_s13 = scalar_select %p3199_p11, 1, 0 }
  0x1c   : > { %s2434_s15 = sshll.u32 %s364_s14, 3  ;;  %s2493_s16 = sshll.u32 %s3072_s21, 3 }
  0x1d   : > { %4812 = sst [smem:[#allocation23_spill]] %s4811_s13  ;;  %s375_s25 = scalar_lea.hbm %s4640_s0, %s2493_s16 }
  0x1e   : > { %s368_s17 = scalar_lea.vmem [#allocation6], %s2434_s15  ;;  %s377_s10 = sshll.u32 %s375_s25, 4  ;;  %s378_s10 = int_to_ptr.hbm [resolvable:$true] %s377_s10 }
  0x1f   : > { %s379_s11 = sshll.u32 %s368_s17, 4  ;;  %p2506_p0 = pnand %p2519_p13, %p3182_p4  ;;  %s380_s11 = int_to_ptr.vmem [resolvable:$true] %s379_s11 }
  0x20   : > { %p2440_p1 = scmp.ge.s32.totalorder %s3076_s22, 1  ;;  %p404_p2 = scmp.lt.s32.totalorder %s3076_s22, 3 }
  0x21   : > { %s365_s24 = scalar_lea.sflag [#allocation7], %s364_s14  ;;  %s395_s21 = scalar_lea.hbm %s4641_s1, %s2493_s16 }
  0x22   : > { %2508 = dma.hbm_to_vmem [thread:$0]  (!%p2506_p0), %s378_s10, 128, %s380_s11, %s365_s24  }
  0x23   : > { %p405_p3 = pnand %p2440_p1, %p404_p2  ;;  %s390_s19 = scalar_lea.vmem [#allocation9], %s2434_s15 }
  0x24   : > { %s399_s13 = sshll.u32 %s390_s19, 4  ;;  %s397_s23 = sshll.u32 %s395_s21, 4  ;;  %s400_s13 = int_to_ptr.vmem [resolvable:$true] %s399_s13  ;;  %s398_s23 = int_to_ptr.hbm [resolvable:$true] %s397_s23 }
  0x25   : > { %s387_s17 = scalar_lea.sflag [#allocation10], %s364_s14  ;;  %408 = sbr.rel (%p405_p3) target bundleno = 1511 (0x5e7), region = 60 }
  0x26   : > { %2511 = dma.hbm_to_vmem [thread:$0]  (!%p2506_p0), %s398_s23, 128, %s400_s13, %s387_s17  }
  0x2a   : > { %s3218_s25 = sand.u32 1, %s3060_s18  }
  0x2b   : > { %s3221_s10 = sshll.u32 %s3218_s25, 3  ;;  %s411_s11 = scalar_lea.sflag [#allocation7], %s3218_s25 }
  0x2c   : > { %s414_s27 = scalar_lea.vmem [#allocation6], %s3221_s10 }
  0x2d   : > { %3039 = dma.done.wait (%p3188_p8), %s411_s11, 128  }
  0x2e   : > { %3041 = vsyncadd (%p3188_p8), %s411_s11, 4294967168  ;;  %s421_s19 = scalar_lea.sflag [#allocation10], %s3218_s25  ;;  %s424_s21 = scalar_lea.vmem [#allocation9], %s3221_s10 }
  0x2f   : > { %3043 = dma.done.wait (%p3188_p8), %s421_s19, 128  }
  0x30   : > { %3045 = vsyncadd (%p3188_p8), %s421_s19, 4294967168  ;;  %v3078_v0 = vmov 0   ;;  %v3235_v1 = vld [vmem:[%s424_s21] sm:$0xff]  ;;  %v492_v2 = vld [vmem:[%s4645_s5] sm:$0x3]  ;;  %vm502_vm0 = vcmask 1041408  }
  0x31   : > { %2572 = vset.pattern.permute.xlu0 %v3078_v0  ;;  %2573 = vset.pattern.permute.xlu2 %v3078_v0  ;;  %4813 = vst [vmem:[#allocation24_spill] sm:$0xff] %v3235_v1  ;;  %v477_v3 = vld [vmem:[%s414_s27] sm:$0xff]  ;;  %vm498_vm1 = vcmask 31744   ;;  %v4659_v24 = vmov 0.0   ;;  %vm538_vm2 = vcmask 1040384   ;;  %vm690_vm3 = vcmask 15360  }
  0x32   : > { %485 = vst [vmem:[#allocation1] ss:$2 sm:$0xff] %v3235_v1  ;;  %495 = vperm.xlu0 %2572, %v492_v2   ;;  %v561_v4 = vld [vmem:[%s4643_s3] sm:$0x3]  ;;  %vm1695_vm5 = vcmask 1043456   ;;  %s466_s27 = scalar_lea.vmem [#allocation11], %s3221_s10 }
  0x33   : > { %v483_v11 = vld [vmem:[%s4644_s4] sm:$0x1]  ;;  %550 = vst [vmem:[#allocation5] sm:$0xf] %v4659_v24  ;;  %s2495_s14 = sshll.u32 %s3068_s20, 3  ;;  %s5095_s16 = sld [smem:[#allocation106_spill]] }
  0x34   : > { %v552_v18 = vld [vmem:[%s4642_s2] sm:$0x1]  ;;  %s2272_s24 = sshll.u32 %s466_s27, 4  ;;  %s2252_s23 = scalar_lea.sflag [#allocation8], %s3218_s25  ;;  %s2273_s24 = int_to_ptr.vmem [resolvable:$true] %s2272_s24 }
  0x39   : > { %v486_v5 = vld.sshfl [vmem:[#allocation1] sm:$0xff pattern:$0x75316420]  ;;  %v487_v6 = vld.sshfl [vmem:[#allocation1 + $0x8] sm:$0xff pattern:$0x75316420]  ;;  %s2270_s28 = scalar_lea.hbm %s5095_s16, %s2495_s14 }
  0x3a   : > { %v490_v7 = vpack.c.bf16 %v486_v5, %v486_v5  ;;  %v491_v8 = vpack.c.bf16 %v487_v6, %v487_v6  ;;  %554 = vst [vmem:[#allocation1] ss:$2 sm:$0xff] %v477_v3  ;;  %564 = vperm.xlu0 %2572, %v561_v4   ;;  %v2067_v45 = vld [vmem:[#allocation5] sm:$0xf]  ;;  %s2274_s26 = sshll.u32 %s2270_s28, 4  ;;  %s2978_s20 = scalar_lea.hbm %s5095_s16, 16  ;;  %s2275_s26 = int_to_ptr.hbm [resolvable:$true] %s2274_s26 }
  0x3b   : > { %s2972_s17 = sshra.s32 %s2275_s26, 4  ;;  %s2973_s17 = int_to_ptr.hbm [resolvable:$true] %s2972_s17 }
  0x3c   : > { %v504_v9 = vsel %vm502_vm0, %v490_v7, 0  ;;  %v507_v10 = vsel %vm502_vm0, %v491_v8, 0  ;;  %s2974_s11 = scalar_lea.hbm %s2973_s17, 8  ;;  %p2979_p7 = scmp.lt.s32.totalorder %s2973_s17, %s5095_s16 }
  0x3d   : > { %516 = vmatpush.bf16.msra.mxu0 %v504_v9  ;;  %529 = vmatpush.bf16.msra.mxu1 %v507_v10  ;;  %p2975_p4 = scmp.ne.s32.totalorder %s2973_s17, %s2974_s11  ;;  %p2980_p8 = scmp.lt.s32.totalorder %s2978_s20, %s2974_s11 }
  0x3f   : > { %p2976_p5 = pnand %p2975_p4, %p3192_p9  ;;  %p2981_p10 = por %p2980_p8, %p2979_p7 }
  0x40   : > { %2445 = vmatmul.msk.bf16.vlgmr.msra.gmra.mxu0 %vm498_vm1, %v483_v11  ;;  %2446 = vmatmul.msk.bf16.vlgmr.msra.gmra.mxu1 %vm498_vm1, %v483_v11 }
  0x41   : > { %v555_v12 = vld.sshfl [vmem:[#allocation1] sm:$0xff pattern:$0x75316420]  ;;  %v556_v13 = vld.sshfl [vmem:[#allocation1 + $0x8] sm:$0xff pattern:$0x75316420]  ;;  %p2977_p6 = pneg %p2976_p5 }
  0x42   : > { %v559_v14 = vpack.c.bf16 %v555_v12, %v555_v12  ;;  %v560_v15 = vpack.c.bf16 %v556_v13, %v556_v13 }
  0x43   : > { %p2982_p13 = pnand %p2981_p10, %p2977_p6 }
  0x44   : > { %v573_v16 = vsel %vm502_vm0, %v559_v14, 0  ;;  %v576_v17 = vsel %vm502_vm0, %v560_v15, 0 }
  0x45   : > { %585 = vmatpush.bf16.msra.mxu2 %v573_v16  ;;  %598 = vmatpush.bf16.msra.mxu3 %v576_v17 }
  0x48   : > { %2447 = vmatmul.msk.bf16.vlgmr.msra.gmra.mxu2 %vm498_vm1, %v552_v18  ;;  %2448 = vmatmul.msk.bf16.vlgmr.msra.gmra.mxu3 %vm498_vm1, %v552_v18 }
  0xa4   : > { %v496_v19 = vpop.permute.xlu0 %495 }
  0xac   : > { %v565_v30 = vpop.permute.xlu0 %564 }
  0xbd   : > { %v518_v20 = vpop.f32.mrf.mxu0  ;;  %v531_v21 = vpop.f32.mrf.mxu1 }
  0xbe   : > { %v519_v22 = vadd.f32 %v518_v20, %v496_v19  ;;  %v532_v23 = vadd.f32 %v531_v21, %v496_v19 }
  0xc0   : > { %v535_v25 = vpack.c.bf16 %v532_v23, %v519_v22 }
  0xc2   : > { %v537_v26 = vrot.slane %v535_v25, 3 }
  0xc4   : > { %v541_v27 = vsel %vm538_vm2, %v535_v25, %v537_v26 }
  0xc5   : > { %543 = vst [vmem:[#allocation2] sm:$0x3] %v541_v27  ;;  %v520_v28 = vpop.f32.mrf.mxu0  ;;  %v533_v29 = vpop.f32.mrf.mxu1 }
  0xcb   : > { %v587_v31 = vpop.f32.mrf.mxu2  ;;  %v600_v32 = vpop.f32.mrf.mxu3 }
  0xcc   : > { %v551_v33 = vld [vmem:[#allocation2] sm:$0x3]  ;;  %v3256_v34 = vadd.f32 %v587_v31, %v565_v30  ;;  %v3265_v46 = vadd.f32 %v600_v32, %v565_v30 }
  0xcd   : > { %687 = vst [vmem:[#allocation1] ss:$9 sm:$0xff] %v551_v33 }
  0xce   : > { %4814 = vst [vmem:[#allocation25_spill] sm:$0xff] %v3256_v34  ;;  %606 = vxpose.xlu1.b32.start.end [1/1] (short) %v3256_v34, 128 }
  0xcf   : > { %4817 = vst [vmem:[#allocation28_spill] sm:$0xff] %v3265_v46 }
  0xd3   : > { %v589_v35 = vpop.f32.mrf.mxu2  ;;  %v602_v36 = vpop.f32.mrf.mxu3 }
  0xd4   : > { %v688_v37 = vld [vmem:[#allocation1] sm:$0xff]  ;;  %v689_v38 = vld [vmem:[#allocation1 + $0x9] sm:$0xff] }
  0xd5   : > { %v740_v39 = vsel %vm538_vm2, %v688_v37, 0  ;;  %v742_v40 = vsel %vm538_vm2, %v689_v38, 0  ;;  %1338 = vst [vmem:[#allocation1] ss:$9 sm:$0xff] %v551_v33 }
  0xd6   : > { %751 = vmatpush.bf16.msrb.mxu0 %v740_v39  ;;  %840 = vmatpush.bf16.msrb.mxu1 %v742_v40 }
  0xdc   : > { %v1339_v41 = vld [vmem:[#allocation1] sm:$0xff]  ;;  %v1340_v42 = vld [vmem:[#allocation1 + $0x9] sm:$0xff] }
  0xdd   : > { %1350 = vmatpush.bf16.xpose.msrb.mxu2 %v1339_v41  ;;  %1439 = vmatpush.bf16.xpose.msrb.mxu3 %v1340_v42  ;;  %1685 = vst [vmem:[#allocation1] ss:$2 sm:$0xff] %v477_v3 }
  0xe4   : > { %v3261_v43 = vld.sshfl [vmem:[#allocation1] sm:$0xff pattern:$0x75316420]  ;;  %v3263_v44 = vld.sshfl [vmem:[#allocation1 + $0x8] sm:$0xff pattern:$0x75316420] }
  0xe5   : > { %4815 = vst [vmem:[#allocation26_spill] sm:$0xff] %v3261_v43 }
  0xe6   : > { %4816 = vst [vmem:[#allocation27_spill] sm:$0xff] %v3263_v44 }
  0xe7   : > { %2074 = vst [vmem:[#allocation1] ss:$4 sm:$0xff] %v2067_v45 }
 0x14e   : > { %638 = vxpose.xlu1.b32.start.end [1/1] (short) %v3265_v46, 128 }
 0x172   : > { %v622_v47 = vpop.trf.xlu1 }
 0x17a   : > { %v623_v48 = vpop.trf.xlu1 }
 0x17b   : > { %v670_v49 = vpack.c.bf16 %v623_v48, %v622_v47 }
 0x17d   : > { %2449 = vmatmul.msk.bf16.vlgmr.msrb.gmra.mxu0 %vm690_vm3, %v670_v49  ;;  %2465 = vmatmul.msk.bf16.vlgmr.msrb.gmra.mxu1 %vm690_vm3, %v670_v49 }
 0x182   : > { %v624_v50 = vpop.trf.xlu1 }
 0x18a   : > { %v625_v51 = vpop.trf.xlu1 }
 0x18b   : > { %v671_v52 = vpack.c.bf16 %v625_v51, %v624_v50 }
 0x18d   : > { %2450 = vmatmul.msk.bf16.gmra.mxu0 %vm690_vm3, %v671_v52  ;;  %2466 = vmatmul.msk.bf16.gmra.mxu1 %vm690_vm3, %v671_v52 }
 0x192   : > { %v626_v53 = vpop.trf.xlu1 }
 0x19a   : > { %v627_v54 = vpop.trf.xlu1 }
 0x19b   : > { %v672_v55 = vpack.c.bf16 %v627_v54, %v626_v53 }
 0x19d   : > { %2451 = vmatmul.msk.bf16.gmra.mxu0 %vm690_vm3, %v672_v55  ;;  %2467 = vmatmul.msk.bf16.gmra.mxu1 %vm690_vm3, %v672_v55 }
 0x1a2   : > { %v628_v56 = vpop.trf.xlu1 }
 0x1aa   : > { %v629_v57 = vpop.trf.xlu1 }
 0x1ab   : > { %v673_v58 = vpack.c.bf16 %v629_v57, %v628_v56 }
 0x1ad   : > { %2452 = vmatmul.msk.bf16.gmra.mxu0 %vm690_vm3, %v673_v58  ;;  %2468 = vmatmul.msk.bf16.gmra.mxu1 %vm690_vm3, %v673_v58 }
 0x1b2   : > { %v630_v59 = vpop.trf.xlu1 }
 0x1ba   : > { %v631_v60 = vpop.trf.xlu1 }
 0x1bb   : > { %v674_v61 = vpack.c.bf16 %v631_v60, %v630_v59 }
 0x1bd   : > { %2453 = vmatmul.msk.bf16.gmra.mxu0 %vm690_vm3, %v674_v61  ;;  %2469 = vmatmul.msk.bf16.gmra.mxu1 %vm690_vm3, %v674_v61 }
 0x1c2   : > { %v632_v62 = vpop.trf.xlu1 }
 0x1ca   : > { %v633_v63 = vpop.trf.xlu1 }
 0x1cb   : > { %v675_v0 = vpack.c.bf16 %v633_v63, %v632_v62 }
 0x1cd   : > { %2454 = vmatmul.msk.bf16.gmra.mxu0 %vm690_vm3, %v675_v0  ;;  %2470 = vmatmul.msk.bf16.gmra.mxu1 %vm690_vm3, %v675_v0 }
 0x1d2   : > { %v634_v2 = vpop.trf.xlu1 }
 0x1da   : > { %v635_v3 = vpop.trf.xlu1 }
 0x1db   : > { %v676_v4 = vpack.c.bf16 %v635_v3, %v634_v2 }
 0x1dd   : > { %2455 = vmatmul.msk.bf16.gmra.mxu0 %vm690_vm3, %v676_v4  ;;  %2471 = vmatmul.msk.bf16.gmra.mxu1 %vm690_vm3, %v676_v4 }
 0x1e2   : > { %v636_v5 = vpop.trf.xlu1 }
 0x1ea   : > { %v637_v6 = vpop.trf.xlu1 }
 0x1eb   : > { %v677_v7 = vpack.c.bf16 %v637_v6, %v636_v5 }
 0x1ed   : > { %2456 = vmatmul.msk.bf16.gmra.mxu0 %vm690_vm3, %v677_v7  ;;  %2472 = vmatmul.msk.bf16.gmra.mxu1 %vm690_vm3, %v677_v7 }
 0x1f2   : > { %v654_v8 = vpop.trf.xlu1 }
 0x1fa   : > { %v3284_v9 = vpop.f32.mrf.mxu0  ;;  %v3286_v10 = vpop.f32.mrf.mxu1 }
 0x1fb   : > { %v655_v11 = vpop.trf.xlu1  ;;  %v922_v12 = vmax.f32 %v3284_v9, %v3286_v10 }
 0x1fc   : > { %v678_v13 = vpack.c.bf16 %v655_v11, %v654_v8 }
 0x1fd   : > { %923 = vmax.xlane.f32.xlu2 %v922_v12 }
 0x1fe   : > { %2457 = vmatmul.msk.bf16.gmra.mxu0 %vm690_vm3, %v678_v13  ;;  %2473 = vmatmul.msk.bf16.gmra.mxu1 %vm690_vm3, %v678_v13 }
 0x202   : > { %v3292_v14 = vpop.f32.mrf.mxu0  ;;  %v3294_v15 = vpop.f32.mrf.mxu1 }
 0x203   : > { %v656_v16 = vpop.trf.xlu1  ;;  %v925_v17 = vmax.f32 %v3292_v14, %v3294_v15 }
 0x205   : > { %926 = vmax.xlane.f32.xlu2 %v925_v17 }
 0x20a   : > { %v3298_v18 = vpop.f32.mrf.mxu0  ;;  %v3300_v19 = vpop.f32.mrf.mxu1 }
 0x20b   : > { %4818 = vst [vmem:[#allocation29_spill] sm:$0xff] %v3298_v18  ;;  %v657_v20 = vpop.trf.xlu1  ;;  %v928_v21 = vmax.f32 %v3298_v18, %v3300_v19 }
 0x20c   : > { %4819 = vst [vmem:[#allocation30_spill] sm:$0xff] %v3300_v19  ;;  %v679_v22 = vpack.c.bf16 %v657_v20, %v656_v16 }
 0x20d   : > { %929 = vmax.xlane.f32.xlu0 %v928_v21 }
 0x20e   : > { %2458 = vmatmul.msk.bf16.gmra.mxu0 %vm690_vm3, %v679_v22  ;;  %2474 = vmatmul.msk.bf16.gmra.mxu1 %vm690_vm3, %v679_v22 }
 0x212   : > { %v3306_v23 = vpop.f32.mrf.mxu0  ;;  %v3308_v25 = vpop.f32.mrf.mxu1 }
 0x213   : > { %4820 = vst [vmem:[#allocation31_spill] sm:$0xff] %v3308_v25  ;;  %v658_v26 = vpop.trf.xlu1  ;;  %v931_v27 = vmax.f32 %v3306_v23, %v3308_v25 }
 0x215   : > { %932 = vmax.xlane.f32.xlu2 %v931_v27 }
 0x21a   : > { %v3312_v28 = vpop.f32.mrf.mxu0  ;;  %v3314_v29 = vpop.f32.mrf.mxu1 }
 0x21b   : > { %4821 = vst [vmem:[#allocation32_spill] sm:$0xff] %v3312_v28  ;;  %v659_v30 = vpop.trf.xlu1  ;;  %v934_v31 = vmax.f32 %v3312_v28, %v3314_v29 }
 0x21c   : > { %v680_v32 = vpack.c.bf16 %v659_v30, %v658_v26 }
 0x21d   : > { %935 = vmax.xlane.f32.xlu2 %v934_v31 }
 0x21e   : > { %2459 = vmatmul.msk.bf16.gmra.mxu0 %vm690_vm3, %v680_v32  ;;  %2475 = vmatmul.msk.bf16.gmra.mxu1 %vm690_vm3, %v680_v32 }
 0x222   : > { %v3320_v33 = vpop.f32.mrf.mxu0  ;;  %v3322_v35 = vpop.f32.mrf.mxu1 }
 0x223   : > { %4822 = vst [vmem:[#allocation33_spill] sm:$0xff] %v3320_v33  ;;  %v660_v36 = vpop.trf.xlu1  ;;  %v937_v37 = vmax.f32 %v3320_v33, %v3322_v35 }
 0x225   : > { %938 = vmax.xlane.f32.xlu2 %v937_v37 }
 0x22a   : > { %v3326_v38 = vpop.f32.mrf.mxu0  ;;  %v3328_v39 = vpop.f32.mrf.mxu1 }
 0x22b   : > { %v661_v40 = vpop.trf.xlu1  ;;  %v940_v41 = vmax.f32 %v3326_v38, %v3328_v39 }
 0x22c   : > { %v681_v42 = vpack.c.bf16 %v661_v40, %v660_v36 }
 0x22d   : > { %941 = vmax.xlane.f32.xlu2 %v940_v41 }
 0x22e   : > { %2460 = vmatmul.msk.bf16.gmra.mxu0 %vm690_vm3, %v681_v42  ;;  %2476 = vmatmul.msk.bf16.gmra.mxu1 %vm690_vm3, %v681_v42 }
 0x232   : > { %v3334_v45 = vpop.f32.mrf.mxu0  ;;  %v3336_v47 = vpop.f32.mrf.mxu1 }
 0x233   : > { %v662_v48 = vpop.trf.xlu1  ;;  %v943_v49 = vmax.f32 %v3334_v45, %v3336_v47 }
 0x235   : > { %944 = vmax.xlane.f32.xlu2 %v943_v49 }
 0x23a   : > { %v3340_v50 = vpop.f32.mrf.mxu0  ;;  %v3342_v51 = vpop.f32.mrf.mxu1 }
 0x23b   : > { %v663_v52 = vpop.trf.xlu1  ;;  %v946_v53 = vmax.f32 %v3340_v50, %v3342_v51 }
 0x23c   : > { %v682_v54 = vpack.c.bf16 %v663_v52, %v662_v48 }
 0x23d   : > { %947 = vmax.xlane.f32.xlu2 %v946_v53 }
 0x23e   : > { %2461 = vmatmul.msk.bf16.gmra.mxu0 %vm690_vm3, %v682_v54  ;;  %2477 = vmatmul.msk.bf16.gmra.mxu1 %vm690_vm3, %v682_v54 }
 0x242   : > { %v3348_v55 = vpop.f32.mrf.mxu0  ;;  %v3350_v56 = vpop.f32.mrf.mxu1 }
 0x243   : > { %v664_v57 = vpop.trf.xlu1  ;;  %v949_v58 = vmax.f32 %v3348_v55, %v3350_v56 }
 0x245   : > { %950 = vmax.xlane.f32.xlu0 %v949_v58 }
 0x24a   : > { %v3354_v59 = vpop.f32.mrf.mxu0  ;;  %v3356_v60 = vpop.f32.mrf.mxu1 }
 0x24b   : > { %v665_v61 = vpop.trf.xlu1  ;;  %v952_v62 = vmax.f32 %v3354_v59, %v3356_v60 }
 0x24c   : > { %v683_v63 = vpack.c.bf16 %v665_v61, %v664_v57 }
 0x24d   : > { %953 = vmax.xlane.f32.xlu2 %v952_v62 }
 0x24e   : > { %2462 = vmatmul.msk.bf16.gmra.mxu0 %vm690_vm3, %v683_v63  ;;  %2478 = vmatmul.msk.bf16.gmra.mxu1 %vm690_vm3, %v683_v63 }
 0x252   : > { %v3362_v0 = vpop.f32.mrf.mxu0  ;;  %v3364_v2 = vpop.f32.mrf.mxu1 }
 0x253   : > { %v666_v3 = vpop.trf.xlu1  ;;  %v955_v4 = vmax.f32 %v3362_v0, %v3364_v2 }
 0x255   : > { %956 = vmax.xlane.f32.xlu0 %v955_v4 }
 0x25a   : > { %v3368_v5 = vpop.f32.mrf.mxu0  ;;  %v3370_v6 = vpop.f32.mrf.mxu1 }
 0x25b   : > { %4823 = vst [vmem:[#allocation34_spill] sm:$0xff] %v3370_v6  ;;  %v667_v7 = vpop.trf.xlu1  ;;  %v958_v8 = vmax.f32 %v3368_v5, %v3370_v6 }
 0x25c   : > { %v684_v11 = vpack.c.bf16 %v667_v7, %v666_v3 }
 0x25d   : > { %959 = vmax.xlane.f32.xlu2 %v958_v8 }
 0x25e   : > { %2463 = vmatmul.msk.bf16.gmra.mxu0 %vm690_vm3, %v684_v11  ;;  %2479 = vmatmul.msk.bf16.gmra.mxu1 %vm690_vm3, %v684_v11 }
 0x262   : > { %v3376_v12 = vpop.f32.mrf.mxu0  ;;  %v3378_v13 = vpop.f32.mrf.mxu1 }
 0x263   : > { %4824 = vst [vmem:[#allocation35_spill] sm:$0xff] %v3376_v12  ;;  %v668_v16 = vpop.trf.xlu1  ;;  %v961_v17 = vmax.f32 %v3376_v12, %v3378_v13 }
 0x264   : > { %4825 = vst [vmem:[#allocation36_spill] sm:$0xff] %v3378_v13 }
 0x265   : > { %962 = vmax.xlane.f32.xlu0 %v961_v17 }
 0x26a   : > { %v3382_v20 = vpop.f32.mrf.mxu0  ;;  %v3384_v21 = vpop.f32.mrf.mxu1 }
 0x26b   : > { %v669_v22 = vpop.trf.xlu1  ;;  %v964_v26 = vmax.f32 %v3382_v20, %v3384_v21 }
 0x26c   : > { %v685_v27 = vpack.c.bf16 %v669_v22, %v668_v16 }
 0x26d   : > { %965 = vmax.xlane.f32.xlu2 %v964_v26 }
 0x26e   : > { %2464 = vmatmul.msk.bf16.gmra.mxu0 %vm690_vm3, %v685_v27  ;;  %2480 = vmatmul.msk.bf16.gmra.mxu1 %vm690_vm3, %v685_v27 }
 0x270   : > { %v924_v30 = vpop.xlane.xlu2 %923 }
 0x271   : > { %v1018_v36 = vsub.f32 %v3284_v9, %v924_v30  ;;  %v1019_v37 = vsub.f32 %v3286_v10, %v924_v30 }
 0x272   : > { %v3390_v31 = vpop.f32.mrf.mxu0  ;;  %v3392_v32 = vpop.f32.mrf.mxu1 }
 0x273   : > { %v967_v40 = vmax.f32 %v3390_v31, %v3392_v32  ;;  %v1082_v41 = vmul.f32 1.442695, %v1018_v36  ;;  %v1084_v42 = vmul.f32 1.442695, %v1019_v37 }
 0x275   : > { %968 = vmax.xlane.f32.xlu0 %v967_v40  ;;  %2574 = vpow2.f32 %v1082_v41 }
 0x276   : > { %2576 = vpow2.f32 %v1084_v42 }
 0x278   : > { %v927_v48 = vpop.xlane.xlu2 %926 }
 0x279   : > { %v1020_v49 = vsub.f32 %v3292_v14, %v927_v48  ;;  %v1021_v52 = vsub.f32 %v3294_v15, %v927_v48 }
 0x27b   : > { %v1086_v53 = vmul.f32 1.442695, %v1020_v49  ;;  %v1088_v54 = vmul.f32 1.442695, %v1021_v52  ;;  %v3400_v57 = vpop.f32.mrf.mxu0  ;;  %v3402_v58 = vpop.f32.mrf.mxu1 }
 0x27c   : > { %v970_v61 = vmax.f32 %v3400_v57, %v3402_v58  ;;  %v3406_v63 = vpop.eup %2574 }
 0x27d   : > { %2578 = vpow2.f32 %v1086_v53  ;;  %v3408_v3 = vpop.eup %2576 }
 0x27e   : > { %2580 = vpow2.f32 %v1088_v54  ;;  %971 = vmax.xlane.f32.xlu2 %v970_v61 }
 0x280   : > { %v930_v62 = vpop.xlane.xlu0 %929 }
 0x281   : > { %v1022_v7 = vsub.f32 %v3298_v18, %v930_v62  ;;  %v1023_v17 = vsub.f32 %v3300_v19, %v930_v62 }
 0x283   : > { %v3410_v4 = vpop.eup %2578  ;;  %v3413_v8 = vpop.f32.mrf.mxu0  ;;  %v1090_v30 = vmul.f32 1.442695, %v1022_v7  ;;  %v1092_v36 = vmul.f32 1.442695, %v1023_v17 }
 0x284   : > { %4826 = vst [vmem:[#allocation37_spill] sm:$0xff] %v3410_v4  ;;  %v3415_v11 = vpop.f32.mrf.mxu1  ;;  %v3417_v16 = vpop.eup %2580  ;;  %v1306_v26 = vpack.c.bf16 %v3410_v4, %v3406_v63 }
 0x285   : > { %4827 = vst [vmem:[#allocation38_spill] sm:$0xff] %v3413_v8  ;;  %v973_v22 = vmax.f32 %v3413_v8, %v3415_v11  ;;  %v1307_v27 = vpack.c.bf16 %v3417_v16, %v3408_v3  ;;  %2582 = vpow2.f32 %v1090_v30 }
 0x286   : > { %4828 = vst [vmem:[#allocation39_spill] sm:$0xff] %v3415_v11  ;;  %1351 = vmatmul.bf16.vlgmr.msrb.gmra.mxu2 %v1306_v26  ;;  %2584 = vpow2.f32 %v1092_v36 }
 0x287   : > { %4829 = vst [vmem:[#allocation40_spill] sm:$0xff] %v3417_v16  ;;  %974 = vmax.xlane.f32.xlu0 %v973_v22  ;;  %1440 = vmatmul.bf16.vlgmr.msrb.gmra.mxu3 %v1307_v27 }
 0x288   : > { %v933_v37 = vpop.xlane.xlu2 %932 }
 0x289   : > { %v1024_v40 = vsub.f32 %v3306_v23, %v933_v37  ;;  %v1025_v41 = vsub.f32 %v3308_v25, %v933_v37 }
 0x28b   : > { %v1094_v42 = vmul.f32 1.442695, %v1024_v40  ;;  %v1096_v48 = vmul.f32 1.442695, %v1025_v41  ;;  %v3428_v49 = vpop.f32.mrf.mxu0  ;;  %v3434_v61 = vpop.eup %2582 }
 0x28c   : > { %4830 = vst [vmem:[#allocation41_spill] sm:$0xff] %v3428_v49  ;;  %v3430_v52 = vpop.f32.mrf.mxu1  ;;  %v3436_v62 = vpop.eup %2584 }
 0x28d   : > { %4831 = vst [vmem:[#allocation42_spill] sm:$0xff] %v3430_v52  ;;  %v976_v53 = vmax.f32 %v3428_v49, %v3430_v52  ;;  %2586 = vpow2.f32 %v1094_v42 }
 0x28e   : > { %2588 = vpow2.f32 %v1096_v48 }
 0x28f   : > { %977 = vmax.xlane.f32.xlu2 %v976_v53 }
 0x290   : > { %v936_v54 = vpop.xlane.xlu2 %935 }
 0x291   : > { %v1026_v17 = vsub.f32 %v3312_v28, %v936_v54  ;;  %v1027_v30 = vsub.f32 %v3314_v29, %v936_v54 }
 0x293   : > { %v3438_v7 = vpop.eup %2586  ;;  %v3441_v22 = vpop.f32.mrf.mxu0  ;;  %v1098_v41 = vmul.f32 1.442695, %v1026_v17  ;;  %v1100_v42 = vmul.f32 1.442695, %v1027_v30 }
 0x294   : > { %4832 = vst [vmem:[#allocation43_spill] sm:$0xff] %v3438_v7  ;;  %v3443_v26 = vpop.f32.mrf.mxu1  ;;  %v3445_v27 = vpop.eup %2588  ;;  %v1308_v37 = vpack.c.bf16 %v3438_v7, %v3434_v61 }
 0x295   : > { %4833 = vst [vmem:[#allocation44_spill] sm:$0xff] %v3441_v22  ;;  %v979_v36 = vmax.f32 %v3441_v22, %v3443_v26  ;;  %v1309_v40 = vpack.c.bf16 %v3445_v27, %v3436_v62  ;;  %2590 = vpow2.f32 %v1098_v41 }
 0x296   : > { %4834 = vst [vmem:[#allocation45_spill] sm:$0xff] %v3443_v26  ;;  %1356 = vmatmul.bf16.gmra.mxu2 %v1308_v37  ;;  %2592 = vpow2.f32 %v1100_v42 }
 0x297   : > { %4835 = vst [vmem:[#allocation46_spill] sm:$0xff] %v3445_v27  ;;  %980 = vmax.xlane.f32.xlu0 %v979_v36  ;;  %1445 = vmatmul.bf16.gmra.mxu3 %v1309_v40 }
 0x298   : > { %v939_v48 = vpop.xlane.xlu2 %938 }
 0x299   : > { %v1028_v53 = vsub.f32 %v3320_v33, %v939_v48  ;;  %v1029_v24 = vsub.f32 %v3322_v35, %v939_v48 }
 0x29b   : > { %v1102_v54 = vmul.f32 1.442695, %v1028_v53  ;;  %v1104_v1 = vmul.f32 1.442695, %v1029_v24  ;;  %v3456_v43 = vpop.f32.mrf.mxu0  ;;  %v3462_v30 = vpop.eup %2590 }
 0x29c   : > { %4836 = vst [vmem:[#allocation47_spill] sm:$0xff] %v3456_v43  ;;  %v3458_v44 = vpop.f32.mrf.mxu1  ;;  %v3464_v37 = vpop.eup %2592 }
 0x29d   : > { %4837 = vst [vmem:[#allocation48_spill] sm:$0xff] %v3458_v44  ;;  %v982_v36 = vmax.f32 %v3456_v43, %v3458_v44  ;;  %2594 = vpow2.f32 %v1102_v54 }
 0x29e   : > { %2596 = vpow2.f32 %v1104_v1 }
 0x29f   : > { %983 = vmax.xlane.f32.xlu2 %v982_v36 }
 0x2a0   : > { %v942_v17 = vpop.xlane.xlu2 %941 }
 0x2a1   : > { %v1030_v24 = vsub.f32 %v3326_v38, %v942_v17  ;;  %v1031_v53 = vsub.f32 %v3328_v39, %v942_v17 }
 0x2a3   : > { %v3466_v40 = vpop.eup %2594  ;;  %v3469_v41 = vpop.f32.mrf.mxu0  ;;  %v1106_v16 = vmul.f32 1.442695, %v1030_v24  ;;  %v1108_v4 = vmul.f32 1.442695, %v1031_v53 }
 0x2a4   : > { %4838 = vst [vmem:[#allocation49_spill] sm:$0xff] %v3466_v40  ;;  %v3471_v48 = vpop.f32.mrf.mxu1  ;;  %v3473_v42 = vpop.eup %2596  ;;  %v1310_v54 = vpack.c.bf16 %v3466_v40, %v3462_v30 }
 0x2a5   : > { %4839 = vst [vmem:[#allocation50_spill] sm:$0xff] %v3469_v41  ;;  %v985_v1 = vmax.f32 %v3469_v41, %v3471_v48  ;;  %v1311_v36 = vpack.c.bf16 %v3473_v42, %v3464_v37  ;;  %2598 = vpow2.f32 %v1106_v16 }
 0x2a6   : > { %4840 = vst [vmem:[#allocation51_spill] sm:$0xff] %v3471_v48  ;;  %1361 = vmatmul.bf16.gmra.mxu2 %v1310_v54  ;;  %2600 = vpow2.f32 %v1108_v4 }
 0x2a7   : > { %4841 = vst [vmem:[#allocation52_spill] sm:$0xff] %v3473_v42  ;;  %986 = vmax.xlane.f32.xlu0 %v985_v1  ;;  %1450 = vmatmul.bf16.gmra.mxu3 %v1311_v36 }
 0x2a8   : > { %v945_v46 = vpop.xlane.xlu2 %944 }
 0x2a9   : > { %v1032_v34 = vsub.f32 %v3334_v45, %v945_v46  ;;  %v1033_v27 = vsub.f32 %v3336_v47, %v945_v46 }
 0x2ab   : > { %v1110_v17 = vmul.f32 1.442695, %v1032_v34  ;;  %v1112_v7 = vmul.f32 1.442695, %v1033_v27  ;;  %v3484_v48 = vpop.f32.mrf.mxu0  ;;  %v3490_v53 = vpop.eup %2598 }
 0x2ac   : > { %4842 = vst [vmem:[#allocation53_spill] sm:$0xff] %v3484_v48  ;;  %v3486_v41 = vpop.f32.mrf.mxu1  ;;  %v3492_v54 = vpop.eup %2600 }
 0x2ad   : > { %4843 = vst [vmem:[#allocation54_spill] sm:$0xff] %v3486_v41  ;;  %v988_v1 = vmax.f32 %v3484_v48, %v3486_v41  ;;  %2602 = vpow2.f32 %v1110_v17 }
 0x2ae   : > { %2604 = vpow2.f32 %v1112_v7 }
 0x2af   : > { %989 = vmax.xlane.f32.xlu2 %v988_v1 }
 0x2b0   : > { %v948_v24 = vpop.xlane.xlu2 %947 }
 0x2b1   : > { %v1034_v34 = vsub.f32 %v3340_v50, %v948_v24  ;;  %v1035_v36 = vsub.f32 %v3342_v51, %v948_v24 }
 0x2b3   : > { %v3494_v46 = vpop.eup %2602  ;;  %v3497_v16 = vpop.f32.mrf.mxu0  ;;  %v1114_v42 = vmul.f32 1.442695, %v1034_v34  ;;  %v1116_v40 = vmul.f32 1.442695, %v1035_v36  ;;  %v3520_v34 = vadd.f32 %v3408_v3, %v3406_v63 }
 0x2b4   : > { %4844 = vst [vmem:[#allocation55_spill] sm:$0xff] %v3494_v46  ;;  %v3499_v27 = vpop.f32.mrf.mxu1  ;;  %v3501_v4 = vpop.eup %2604  ;;  %v1312_v17 = vpack.c.bf16 %v3494_v46, %v3490_v53 }
 0x2b5   : > { %4845 = vst [vmem:[#allocation56_spill] sm:$0xff] %v3497_v16  ;;  %v991_v7 = vmax.f32 %v3497_v16, %v3499_v27  ;;  %v1313_v1 = vpack.c.bf16 %v3501_v4, %v3492_v54  ;;  %2606 = vpow2.f32 %v1114_v42 }
 0x2b6   : > { %4846 = vst [vmem:[#allocation57_spill] sm:$0xff] %v3499_v27  ;;  %1366 = vmatmul.bf16.gmra.mxu2 %v1312_v17  ;;  %2608 = vpow2.f32 %v1116_v40 }
 0x2b7   : > { %4847 = vst [vmem:[#allocation58_spill] sm:$0xff] %v3501_v4  ;;  %992 = vmax.xlane.f32.xlu0 %v991_v7  ;;  %1455 = vmatmul.bf16.gmra.mxu3 %v1313_v1 }
 0x2b8   : > { %v951_v41 = vpop.xlane.xlu0 %950  ;;  %4850 = vst [vmem:[#allocation61_spill] sm:$0xff] %v3520_v34 }
 0x2b9   : > { %v1036_v48 = vsub.f32 %v3348_v55, %v951_v41  ;;  %v1037_v44 = vsub.f32 %v3350_v56, %v951_v41 }
 0x2bb   : > { %v1118_v24 = vmul.f32 1.442695, %v1036_v48  ;;  %v1120_v43 = vmul.f32 1.442695, %v1037_v44  ;;  %v3512_v27 = vpop.f32.mrf.mxu0  ;;  %v3522_v41 = vpop.eup %2606 }
 0x2bc   : > { %4848 = vst [vmem:[#allocation59_spill] sm:$0xff] %v3512_v27  ;;  %v3514_v16 = vpop.f32.mrf.mxu1  ;;  %v3524_v48 = vpop.eup %2608 }
 0x2bd   : > { %4849 = vst [vmem:[#allocation60_spill] sm:$0xff] %v3514_v16  ;;  %v994_v7 = vmax.f32 %v3512_v27, %v3514_v16  ;;  %2610 = vpow2.f32 %v1118_v24 }
 0x2be   : > { %2612 = vpow2.f32 %v1120_v43 }
 0x2bf   : > { %995 = vmax.xlane.f32.xlu2 %v994_v7 }
 0x2c0   : > { %v954_v36 = vpop.xlane.xlu2 %953 }
 0x2c1   : > { %v1038_v42 = vsub.f32 %v3354_v59, %v954_v36  ;;  %v1039_v63 = vsub.f32 %v3356_v60, %v954_v36 }
 0x2c3   : > { %v3526_v44 = vpop.eup %2610  ;;  %v3529_v40 = vpop.f32.mrf.mxu0  ;;  %v1122_v7 = vmul.f32 1.442695, %v1038_v42  ;;  %v1124_v34 = vmul.f32 1.442695, %v1039_v63  ;;  %v3552_v42 = vadd.f32 %v3436_v62, %v3434_v61 }
 0x2c4   : > { %4851 = vst [vmem:[#allocation62_spill] sm:$0xff] %v3526_v44  ;;  %v3531_v17 = vpop.f32.mrf.mxu1  ;;  %v3533_v1 = vpop.eup %2612  ;;  %v1314_v3 = vpack.c.bf16 %v3526_v44, %v3522_v41  ;;  %v1738_v44 = vmax.f32 %v3294_v15, %v3308_v25 }
 0x2c5   : > { %4852 = vst [vmem:[#allocation63_spill] sm:$0xff] %v3529_v40  ;;  %v997_v43 = vmax.f32 %v3529_v40, %v3531_v17  ;;  %v1315_v24 = vpack.c.bf16 %v3533_v1, %v3524_v48  ;;  %2614 = vpow2.f32 %v1122_v7 }
 0x2c6   : > { %4853 = vst [vmem:[#allocation64_spill] sm:$0xff] %v3531_v17  ;;  %1371 = vmatmul.bf16.gmra.mxu2 %v1314_v3  ;;  %2616 = vpow2.f32 %v1124_v34 }
 0x2c7   : > { %4854 = vst [vmem:[#allocation65_spill] sm:$0xff] %v3533_v1  ;;  %998 = vmax.xlane.f32.xlu0 %v997_v43  ;;  %1460 = vmatmul.bf16.gmra.mxu3 %v1315_v24 }
 0x2c8   : > { %v957_v4 = vpop.xlane.xlu0 %956  ;;  %4857 = vst [vmem:[#allocation68_spill] sm:$0xff] %v3552_v42  ;;  %v1737_v42 = vmax.f32 %v3286_v10, %v3300_v19 }
 0x2c9   : > { %v1040_v46 = vsub.f32 %v3362_v0, %v957_v4  ;;  %v1041_v16 = vsub.f32 %v3364_v2, %v957_v4 }
 0x2cb   : > { %v1126_v36 = vmul.f32 1.442695, %v1040_v46  ;;  %v1128_v27 = vmul.f32 1.442695, %v1041_v16  ;;  %v3544_v17 = vpop.f32.mrf.mxu0  ;;  %v3554_v4 = vpop.eup %2614 }
 0x2cc   : > { %4855 = vst [vmem:[#allocation66_spill] sm:$0xff] %v3544_v17  ;;  %v3546_v40 = vpop.f32.mrf.mxu1  ;;  %v3556_v46 = vpop.eup %2616 }
 0x2cd   : > { %4856 = vst [vmem:[#allocation67_spill] sm:$0xff] %v3546_v40  ;;  %v1000_v43 = vmax.f32 %v3544_v17, %v3546_v40  ;;  %2618 = vpow2.f32 %v1126_v36 }
 0x2ce   : > { %2620 = vpow2.f32 %v1128_v27  ;;  %4858 = vst [vmem:[#allocation69_spill] sm:$0xff] %v3554_v4 }
 0x2cf   : > { %1001 = vmax.xlane.f32.xlu2 %v1000_v43  ;;  %4859 = vst [vmem:[#allocation70_spill] sm:$0xff] %v3556_v46  ;;  %v1700_v43 = vmax.f32 %v3284_v9, %v3298_v18 }
 0x2d0   : > { %v960_v63 = vpop.xlane.xlu2 %959 }
 0x2d1   : > { %v1042_v3 = vsub.f32 %v3368_v5, %v960_v63  ;;  %v1043_v61 = vsub.f32 %v3370_v6, %v960_v63  ;;  %v1701_v63 = vmax.f32 %v3292_v14, %v3306_v23 }
 0x2d3   : > { %v3558_v16 = vpop.eup %2618  ;;  %v3561_v34 = vpop.f32.mrf.mxu0  ;;  %v1130_v1 = vmul.f32 1.442695, %v1042_v3  ;;  %v1703_v18 = vmax.f32 %v1701_v63, %v3320_v33 }
 0x2d4   : > { %4860 = vst [vmem:[#allocation71_spill] sm:$0xff] %v3558_v16  ;;  %v3563_v24 = vpop.f32.mrf.mxu1  ;;  %v3565_v7 = vpop.eup %2620  ;;  %v1316_v27 = vpack.c.bf16 %v3558_v16, %v3554_v4  ;;  %v1702_v16 = vmax.f32 %v1700_v43, %v3312_v28 }
 0x2d5   : > { %4861 = vst [vmem:[#allocation72_spill] sm:$0xff] %v3561_v34  ;;  %v1003_v62 = vmax.f32 %v3561_v34, %v3563_v24  ;;  %v1317_v36 = vpack.c.bf16 %v3565_v7, %v3556_v46  ;;  %v1132_v46 = vmul.f32 1.442695, %v1043_v61  ;;  %v1705_v25 = vmax.f32 %v1703_v18, %v3334_v45 }
 0x2d6   : > { %4862 = vst [vmem:[#allocation73_spill] sm:$0xff] %v3563_v24  ;;  %1376 = vmatmul.bf16.gmra.mxu2 %v1316_v27  ;;  %v1740_v27 = vmax.f32 %v1738_v44, %v3322_v35  ;;  %v1704_v3 = vmax.f32 %v1702_v16, %v3326_v38  ;;  %2622 = vpow2.f32 %v1130_v1  ;;  %v544_v16 = vlaneseq }
 0x2d7   : > { %4863 = vst [vmem:[#allocation74_spill] sm:$0xff] %v3565_v7  ;;  %1004 = vmax.xlane.f32.xlu0 %v1003_v62  ;;  %1465 = vmatmul.bf16.gmra.mxu3 %v1317_v36  ;;  %v1739_v7 = vmax.f32 %v1737_v42, %v3314_v29  ;;  %2624 = vpow2.f32 %v1132_v46  ;;  %v3602_v18 = vadd.f32 %v3464_v37, %v3462_v30  ;;  %v3080_v30 = vmov -inf  }
 0x2d8   : > { %v963_v4 = vpop.xlane.xlu0 %962  ;;  %v1742_v63 = vmax.f32 %v1740_v27, %v3336_v47  ;;  %v1706_v33 = vmax.f32 %v1704_v3, %v3340_v50  ;;  %vm3608_vm4 = vcmp.lt.s32.totalorder %v544_v16, 256  ;;  %v4871_v37 = vmov 0.0  }
 0x2d9   : > { %v1044_v19 = vsub.f32 %v3376_v12, %v963_v4  ;;  %v1045_v62 = vsub.f32 %v3378_v13, %v963_v4  ;;  %v1741_v36 = vmax.f32 %v1739_v7, %v3328_v39  ;;  %4866 = vst [vmem:[#allocation77_spill] sm:$0xff] %v3602_v18 }
 0x2da   : > { %v1744_v1 = vmax.f32 %v1742_v63, %v3350_v56  ;;  %v1708_v7 = vmax.f32 %v1706_v33, %v3354_v59  ;;  %548 = vst.msk [vmem:[#allocation3] sm:$0x3] %vm3608_vm4, %v3080_v30 }
 0x2db   : > { %v1134_v43 = vmul.f32 1.442695, %v1044_v19  ;;  %v1136_v28 = vmul.f32 1.442695, %v1045_v62  ;;  %v3591_v42 = vpop.f32.mrf.mxu0  ;;  %v1743_v4 = vmax.f32 %v1741_v36, %v3342_v51  ;;  %v1707_v19 = vmax.f32 %v1705_v25, %v3348_v55  ;;  %549 = vst.msk [vmem:[#allocation4] sm:$0x3] %vm3608_vm4, %v4871_v37 }
 0x2dc   : > { %4864 = vst [vmem:[#allocation75_spill] sm:$0xff] %v3591_v42  ;;  %v3593_v61 = vpop.f32.mrf.mxu1  ;;  %v4867_v62 = vmov 0  ;;  %v1746_v3 = vmax.f32 %v1744_v1, %v3364_v2  ;;  %v3616_v25 = vpop.eup %2622 }
 0x2dd   : > { %4865 = vst [vmem:[#allocation76_spill] sm:$0xff] %v3593_v61  ;;  %v1006_v44 = vmax.f32 %v3591_v42, %v3593_v61  ;;  %2626 = vpow2.f32 %v1134_v43  ;;  %v1745_v46 = vmax.f32 %v1743_v4, %v3356_v60  ;;  %v4868_v62 = vsel %vm3608_vm4, 4294967295, %v4867_v62  ;;  %v3623_v36 = vpop.eup %2624 }
 0x2de   : > { %2628 = vpow2.f32 %v1136_v28  ;;  %4869 = vst [vmem:[#allocation78_spill] sm:$0xff] %v4868_v62  ;;  %v1709_v27 = vmax.f32 %v1707_v19, %v3362_v0  ;;  %v1710_v28 = vmax.f32 %v1708_v7, %v3368_v5  ;;  %v1748_v63 = vmax.f32 %v1746_v3, %v3378_v13 }
 0x2df   : > { %1007 = vmax.xlane.f32.xlu1 %v1006_v44  ;;  %4870 = vst [vmem:[#allocation79_spill] sm:$0xff] %v3616_v25  ;;  %v1747_v33 = vmax.f32 %v1745_v46, %v3370_v6 }
 0x2e0   : > { %4872 = vst [vmem:[#allocation80_spill] sm:$0xff] %v3623_v36  ;;  %v1711_v43 = vmax.f32 %v1709_v27, %v3376_v12  ;;  %v1712_v4 = vmax.f32 %v1710_v28, %v3382_v20  ;;  %v1750_v30 = vmax.f32 %v1748_v63, %v3392_v32  ;;  %v4877_v12 = vld [vmem:[#allocation47_spill] sm:$0xff] }
 0x2e1   : > { %v1749_v16 = vmax.f32 %v1747_v33, %v3384_v21 }
 0x2e2   : > { %v1713_v46 = vmax.f32 %v1711_v43, %v3390_v31  ;;  %v1714_v28 = vmax.f32 %v1712_v4, %v3400_v57  ;;  %v1752_v13 = vmax.f32 %v1750_v30, %v3415_v11 }
 0x2e3   : > { %v3627_v44 = vpop.eup %2626  ;;  %v3631_v19 = vpop.f32.mrf.mxu0  ;;  %v1751_v37 = vmax.f32 %v1749_v16, %v3402_v58  ;;  %v4879_v16 = vld [vmem:[#allocation50_spill] sm:$0xff] }
 0x2e4   : > { %4873 = vst [vmem:[#allocation81_spill] sm:$0xff] %v3627_v44  ;;  %v3633_v1 = vpop.f32.mrf.mxu1  ;;  %v3635_v7 = vpop.eup %2628  ;;  %v1318_v3 = vpack.c.bf16 %v3627_v44, %v3616_v25  ;;  %v1715_v18 = vmax.f32 %v1713_v46, %v3413_v8  ;;  %v1716_v43 = vmax.f32 %v1714_v28, %v3428_v49  ;;  %v1754_v4 = vmax.f32 %v1752_v13, %v3443_v26  ;;  %v4880_v46 = vld [vmem:[#allocation51_spill] sm:$0xff] }
 0x2e5   : > { %4874 = vst [vmem:[#allocation82_spill] sm:$0xff] %v3631_v19  ;;  %v1009_v27 = vmax.f32 %v3631_v19, %v3633_v1  ;;  %v1319_v33 = vpack.c.bf16 %v3635_v7, %v3623_v36  ;;  %v1753_v63 = vmax.f32 %v1751_v37, %v3430_v52  ;;  %v4885_v52 = vld [vmem:[#allocation56_spill] sm:$0xff] }
 0x2e6   : > { %4875 = vst [vmem:[#allocation83_spill] sm:$0xff] %v3633_v1  ;;  %1381 = vmatmul.bf16.gmra.mxu2 %v1318_v3  ;;  %v1717_v44 = vmax.f32 %v1715_v18, %v3441_v22  ;;  %v1718_v25 = vmax.f32 %v1716_v43, %v4877_v12  ;;  %v1756_v8 = vmax.f32 %v1754_v4, %v4880_v46  ;;  %v4883_v3 = vld [vmem:[#allocation53_spill] sm:$0xff]  ;;  %v4889_v46 = vld [vmem:[#allocation60_spill] sm:$0xff] }
 0x2e7   : > { %4876 = vst [vmem:[#allocation84_spill] sm:$0xff] %v3635_v7  ;;  %1010 = vmax.xlane.f32.xlu2 %v1009_v27  ;;  %1470 = vmatmul.bf16.gmra.mxu3 %v1319_v33  ;;  %v4878_v7 = vld [vmem:[#allocation48_spill] sm:$0xff]  ;;  %v4884_v33 = vld [vmem:[#allocation54_spill] sm:$0xff]  ;;  %v4886_v22 = vld [vmem:[#allocation57_spill] sm:$0xff] }
 0x2e8   : > { %v1755_v36 = vmax.f32 %v1753_v63, %v4878_v7  ;;  %v1719_v6 = vmax.f32 %v1717_v44, %v4879_v16  ;;  %v1720_v28 = vmax.f32 %v1718_v25, %v4883_v3  ;;  %v1758_v13 = vmax.f32 %v1756_v8, %v4886_v22  ;;  %v4888_v63 = vld [vmem:[#allocation59_spill] sm:$0xff]  ;;  %v4891_v25 = vld [vmem:[#allocation64_spill] sm:$0xff] }
 0x2e9   : > { %v3669_v44 = vadd.f32 %v3492_v54, %v3490_v53  ;;  %v4890_v7 = vld [vmem:[#allocation63_spill] sm:$0xff] }
 0x2ea   : > { %v1757_v37 = vmax.f32 %v1755_v36, %v4884_v33  ;;  %v1721_v18 = vmax.f32 %v1719_v6, %v4885_v52  ;;  %v1722_v4 = vmax.f32 %v1720_v28, %v4888_v63  ;;  %v1760_v3 = vmax.f32 %v1758_v13, %v4891_v25 }
 0x2eb   : > { %v3657_v30 = vpop.f32.mrf.mxu0  ;;  %4887 = vst [vmem:[#allocation87_spill] sm:$0xff] %v3669_v44 }
 0x2ec   : > { %4881 = vst [vmem:[#allocation85_spill] sm:$0xff] %v3657_v30  ;;  %v3659_v27 = vpop.f32.mrf.mxu1  ;;  %v1759_v16 = vmax.f32 %v1757_v37, %v4889_v46  ;;  %v1723_v12 = vmax.f32 %v1721_v18, %v4890_v7  ;;  %v1724_v6 = vmax.f32 %v1722_v4, %v3544_v17  ;;  %v1762_v22 = vmax.f32 %v1760_v3, %v3563_v24  ;;  %v3695_v24 = vld [vmem:[#allocation3] sm:$0x3] }
 0x2ed   : > { %4882 = vst [vmem:[#allocation86_spill] sm:$0xff] %v3659_v27  ;;  %v1012_v43 = vmax.f32 %v3657_v30, %v3659_v27 }
 0x2ee   : > { %v1761_v8 = vmax.f32 %v1759_v16, %v3546_v40  ;;  %v1725_v36 = vmax.f32 %v1723_v12, %v3561_v34  ;;  %v1726_v53 = vmax.f32 %v1724_v6, %v3591_v42  ;;  %v1764_v37 = vmax.f32 %v1762_v22, %v3633_v1  ;;  %4894 = vst [vmem:[#allocation90_spill] sm:$0xff] %v3695_v24 }
 0x2ef   : > { %1013 = vmax.xlane.f32.xlu0 %v1012_v43  ;;  %v3693_v1 = vadd.f32 %v3524_v48, %v3522_v41 }
 0x2f0   : > { %v1763_v54 = vmax.f32 %v1761_v8, %v3593_v61  ;;  %v1727_v28 = vmax.f32 %v1725_v36, %v3631_v19  ;;  %v1728_v43 = vmax.f32 %v1726_v53, %v3657_v30 }
 0x2f2   : > { %v1765_v16 = vmax.f32 %v1763_v54, %v3659_v27 }
 0x2f3   : > { %v3683_v18 = vpop.f32.mrf.mxu0 }
 0x2f4   : > { %4892 = vst [vmem:[#allocation88_spill] sm:$0xff] %v3683_v18  ;;  %v3685_v13 = vpop.f32.mrf.mxu1  ;;  %v1729_v12 = vmax.f32 %v1727_v28, %v3683_v18 }
 0x2f5   : > { %4893 = vst [vmem:[#allocation89_spill] sm:$0xff] %v3685_v13  ;;  %v1766_v3 = vmax.f32 %v1764_v37, %v3685_v13 }
 0x2f6   : > { %v1730_v4 = vmax.f32 %v1728_v43, %v1729_v12  ;;  %v966_v43 = vpop.xlane.xlu2 %965 }
 0x2f7   : > { %v1767_v6 = vmax.f32 %v1765_v16, %v1766_v3  ;;  %v1046_v12 = vsub.f32 %v3382_v20, %v966_v43  ;;  %v1047_v41 = vsub.f32 %v3384_v21, %v966_v43 }
 0x2f8   : > { %v1731_v44 = vrot.slane %v1730_v4, 4 }
 0x2f9   : > { %v1768_v8 = vrot.slane %v1767_v6, 4  ;;  %v1138_v48 = vmul.f32 1.442695, %v1046_v12 }
 0x2fa   : > { %v1732_v61 = vmax.f32 %v1730_v4, %v1731_v44 }
 0x2fb   : > { %v1769_v36 = vmax.f32 %v1767_v6, %v1768_v8  ;;  %2630 = vpow2.f32 %v1138_v48  ;;  %v4896_v48 = vld [vmem:[#allocation29_spill] sm:$0xff] }
 0x2fc   : > { %v1733_v19 = vrot.slane %v1732_v61, 2 }
 0x2fd   : > { %v1770_v22 = vrot.slane %v1769_v36, 2 }
 0x2fe   : > { %v1734_v42 = vmax.f32 %v1732_v61, %v1733_v19  ;;  %v969_v61 = vpop.xlane.xlu0 %968  ;;  %v972_v19 = vpop.xlane.xlu2 %971 }
 0x2ff   : > { %v1771_v53 = vmax.f32 %v1769_v36, %v1770_v22  ;;  %v1050_v3 = vsub.f32 %v3400_v57, %v972_v19  ;;  %v1051_v36 = vsub.f32 %v3402_v58, %v972_v19 }
 0x300   : > { %v1735_v30 = vrot.slane %v1734_v42, 1 }
 0x301   : > { %v1772_v54 = vrot.slane %v1771_v53, 1  ;;  %v1148_v12 = vmul.f32 1.442695, %v1051_v36  ;;  %v4899_v36 = vld [vmem:[#allocation32_spill] sm:$0xff] }
 0x302   : > { %v1736_v28 = vmax.f32 %v1734_v42, %v1735_v30  ;;  %v1140_v42 = vmul.f32 1.442695, %v1047_v41  ;;  %v1048_v30 = vsub.f32 %v3390_v31, %v969_v61 }
 0x303   : > { %v1773_v27 = vmax.f32 %v1771_v53, %v1772_v54  ;;  %v1146_v53 = vmul.f32 1.442695, %v1050_v3  ;;  %v3716_v54 = vpop.eup %2630 }
 0x304   : > { %2632 = vpow2.f32 %v1140_v42  ;;  %v1142_v8 = vmul.f32 1.442695, %v1048_v30 }
 0x305   : > { %v1776_v37 = vrot.slane %v1773_v27, 7  ;;  %v1049_v27 = vsub.f32 %v3392_v32, %v969_v61 }
 0x306   : > { %2634 = vpow2.f32 %v1142_v8 }
 0x307   : > { %v1777_v16 = vsel %vm538_vm2, %v1736_v28, %v1776_v37  ;;  %v1144_v22 = vmul.f32 1.442695, %v1049_v27 }
 0x308   : > { %v3699_v44 = vmax.f32 %v3695_v24, %v1777_v16 }
 0x309   : > { %2636 = vpow2.f32 %v1144_v22 }
 0x30a   : > { %4895 = vst [vmem:[#allocation91_spill] sm:$0xff] %v3699_v44  ;;  %v3710_v4 = vperm.slane %v3699_v44, 0  ;;  %v3713_v6 = vperm.slane %v3699_v44, 1  ;;  %v3724_v16 = vpop.eup %2632  ;;  %2638 = vpow2.f32 %v1146_v53 }
 0x30b   : > { %2173 = vst.msk [vmem:[#allocation3] sm:$0x3] %vm3608_vm4, %v3699_v44  ;;  %v1252_v27 = vadd.f32 %v3724_v16, %v3716_v54  ;;  %2640 = vpow2.f32 %v1148_v12 }
 0x30c   : > { %v1788_v28 = vsub.f32 %v3284_v9, %v3710_v4  ;;  %v1789_v37 = vsub.f32 %v3286_v10, %v3713_v6  ;;  %v1790_v43 = vsub.f32 %v3292_v14, %v3710_v4  ;;  %v1791_v41 = vsub.f32 %v3294_v15, %v3713_v6  ;;  %v4897_v9 = vld [vmem:[#allocation30_spill] sm:$0xff]  ;;  %v4898_v15 = vld [vmem:[#allocation31_spill] sm:$0xff] }
 0x30d   : > { %v1792_v61 = vsub.f32 %v4896_v48, %v3710_v4  ;;  %v1793_v42 = vsub.f32 %v4897_v9, %v3713_v6  ;;  %v1794_v10 = vsub.f32 %v3306_v23, %v3710_v4  ;;  %v1795_v3 = vsub.f32 %v4898_v15, %v3713_v6  ;;  %1253 = vadd.xlane.f32.xlu0 %v1252_v27  ;;  %v3740_v48 = vpop.eup %2634 }
 0x30e   : > { %v1852_v19 = vmul.f32 1.442695, %v1788_v28  ;;  %v1854_v14 = vmul.f32 1.442695, %v1789_v37  ;;  %v1856_v30 = vmul.f32 1.442695, %v1790_v43  ;;  %v1796_v22 = vsub.f32 %v4899_v36, %v3710_v4 }
 0x30f   : > { %v1858_v8 = vmul.f32 1.442695, %v1791_v41  ;;  %v1860_v53 = vmul.f32 1.442695, %v1792_v61  ;;  %4900 = vst [vmem:[#allocation29_spill] sm:$0xff] %v3740_v48  ;;  %v1797_v23 = vsub.f32 %v3314_v29, %v3713_v6  ;;  %v3744_v37 = vpop.eup %2636  ;;  %v4902_v43 = vld [vmem:[#allocation33_spill] sm:$0xff]  ;;  %v1799_v61 = vsub.f32 %v3322_v35, %v3713_v6 }
 0x310   : > { %2642 = vpow2.f32 %v1852_v19  ;;  %v1862_v28 = vmul.f32 1.442695, %v1793_v42  ;;  %4901 = vst [vmem:[#allocation30_spill] sm:$0xff] %v3744_v37  ;;  %v1798_v12 = vsub.f32 %v4902_v43, %v3710_v4  ;;  %v1864_v41 = vmul.f32 1.442695, %v1794_v10  ;;  %v3748_v9 = vpop.eup %2638 }
 0x311   : > { %2644 = vpow2.f32 %v1854_v14  ;;  %v1866_v19 = vmul.f32 1.442695, %v1795_v3  ;;  %v1800_v27 = vsub.f32 %v3326_v38, %v3710_v4  ;;  %v1868_v29 = vmul.f32 1.442695, %v1796_v22  ;;  %v3754_v42 = vpop.eup %2640 }
 0x312   : > { %2646 = vpow2.f32 %v1856_v30  ;;  %v1801_v14 = vsub.f32 %v3328_v39, %v3713_v6  ;;  %v1870_v30 = vmul.f32 1.442695, %v1797_v23  ;;  %v1802_v15 = vsub.f32 %v3334_v45, %v3710_v4 }
 0x313   : > { %2648 = vpow2.f32 %v1858_v8  ;;  %v1872_v35 = vmul.f32 1.442695, %v1798_v12  ;;  %v1803_v38 = vsub.f32 %v3336_v47, %v3713_v6  ;;  %v1874_v8 = vmul.f32 1.442695, %v1799_v61 }
 0x314   : > { %2650 = vpow2.f32 %v1860_v53  ;;  %v1804_v39 = vsub.f32 %v3340_v50, %v3710_v4  ;;  %v1876_v22 = vmul.f32 1.442695, %v1800_v27  ;;  %v1805_v45 = vsub.f32 %v3342_v51, %v3713_v6 }
 0x315   : > { %2652 = vpow2.f32 %v1862_v28  ;;  %v1878_v23 = vmul.f32 1.442695, %v1801_v14  ;;  %v1806_v47 = vsub.f32 %v3348_v55, %v3710_v4  ;;  %v1880_v43 = vmul.f32 1.442695, %v1802_v15 }
 0x316   : > { %v3758_v10 = vpop.eup %2642  ;;  %2654 = vpow2.f32 %v1864_v41  ;;  %v1807_v50 = vsub.f32 %v3350_v56, %v3713_v6  ;;  %v1882_v41 = vmul.f32 1.442695, %v1803_v38  ;;  %v1808_v51 = vsub.f32 %v3354_v59, %v3710_v4 }
 0x317   : > { %4903 = vst [vmem:[#allocation31_spill] sm:$0xff] %v3758_v10  ;;  %v3762_v3 = vpop.eup %2644  ;;  %2656 = vpow2.f32 %v1866_v19  ;;  %v1884_v19 = vmul.f32 1.442695, %v1804_v39  ;;  %v1809_v55 = vsub.f32 %v3356_v60, %v3713_v6  ;;  %v1886_v14 = vmul.f32 1.442695, %v1805_v45  ;;  %v4915_v45 = vld [vmem:[#allocation34_spill] sm:$0xff] }
 0x318   : > { %4904 = vst [vmem:[#allocation32_spill] sm:$0xff] %v3762_v3  ;;  %v3766_v36 = vpop.eup %2646  ;;  %2658 = vpow2.f32 %v1868_v29  ;;  %v1810_v29 = vsub.f32 %v3362_v0, %v3710_v4  ;;  %v1888_v15 = vmul.f32 1.442695, %v1806_v47  ;;  %v1015_v59 = vmax.f32 %v3683_v18, %v3685_v13 }
 0x319   : > { %4905 = vst [vmem:[#allocation33_spill] sm:$0xff] %v3766_v36  ;;  %v3770_v53 = vpop.eup %2648  ;;  %2660 = vpow2.f32 %v1870_v30  ;;  %v1811_v30 = vsub.f32 %v3364_v2, %v3713_v6  ;;  %v1890_v38 = vmul.f32 1.442695, %v1807_v50  ;;  %v1320_v60 = vpack.c.bf16 %v3740_v48, %v3716_v54  ;;  %v4916_v54 = vld [vmem:[#allocation79_spill] sm:$0xff]  ;;  %v4935_v48 = vld [vmem:[#allocation44_spill] sm:$0xff] }
 0x31a   : > { %4906 = vst [vmem:[#allocation92_spill] sm:$0xff] %v3770_v53  ;;  %v3774_v28 = vpop.eup %2650  ;;  %2662 = vpow2.f32 %v1872_v35  ;;  %v1321_v0 = vpack.c.bf16 %v3744_v37, %v3724_v16  ;;  %v1812_v2 = vsub.f32 %v3368_v5, %v3710_v4  ;;  %v1892_v39 = vmul.f32 1.442695, %v1808_v51  ;;  %1016 = vmax.xlane.f32.xlu2 %v1015_v59  ;;  %v4920_v59 = vld [vmem:[#allocation36_spill] sm:$0xff]  ;;  %v4933_v37 = vld [vmem:[#allocation42_spill] sm:$0xff] }
 0x31b   : > { %4907 = vst [vmem:[#allocation93_spill] sm:$0xff] %v3774_v28  ;;  %v3778_v12 = vpop.eup %2652  ;;  %2664 = vpow2.f32 %v1874_v8  ;;  %v1894_v47 = vmul.f32 1.442695, %v1809_v55  ;;  %1386 = vmatmul.bf16.gmra.mxu2 %v1320_v60  ;;  %v1896_v51 = vmul.f32 1.442695, %v1810_v29  ;;  %v1815_v62 = vsub.f32 %v4920_v59, %v3713_v6 }
 0x31c   : > { %4908 = vst [vmem:[#allocation94_spill] sm:$0xff] %v3778_v12  ;;  %v3782_v61 = vpop.eup %2654  ;;  %2666 = vpow2.f32 %v1876_v22  ;;  %1475 = vmatmul.bf16.gmra.mxu3 %v1321_v0  ;;  %v1816_v60 = vsub.f32 %v3382_v20, %v3710_v4  ;;  %v1900_v0 = vmul.f32 1.442695, %v1812_v2  ;;  %v1818_v20 = vsub.f32 %v3390_v31, %v3710_v4 }
 0x31d   : > { %4909 = vst [vmem:[#allocation95_spill] sm:$0xff] %v3782_v61  ;;  %v3786_v27 = vpop.eup %2656  ;;  %2668 = vpow2.f32 %v1878_v23  ;;  %v1813_v23 = vsub.f32 %v4915_v45, %v3713_v6  ;;  %v4921_v45 = vld [vmem:[#allocation55_spill] sm:$0xff]  ;;  %v1821_v31 = vsub.f32 %v3402_v58, %v3713_v6  ;;  %v1824_v58 = vsub.f32 %v3428_v49, %v3710_v4 }
 0x31e   : > { %4910 = vst [vmem:[#allocation96_spill] sm:$0xff] %v3786_v27  ;;  %v3792_v56 = vpop.eup %2658  ;;  %2670 = vpow2.f32 %v1880_v43  ;;  %v4917_v43 = vld [vmem:[#allocation80_spill] sm:$0xff] }
 0x31f   : > { %4911 = vst [vmem:[#allocation97_spill] sm:$0xff] %v3792_v56  ;;  %v3798_v35 = vpop.eup %2660  ;;  %2672 = vpow2.f32 %v1882_v41  ;;  %v1246_v16 = vadd.f32 %v4917_v43, %v4916_v54  ;;  %v4918_v41 = vld [vmem:[#allocation35_spill] sm:$0xff]  ;;  %v4922_v54 = vld [vmem:[#allocation58_spill] sm:$0xff] }
 0x320   : > { %4912 = vst [vmem:[#allocation98_spill] sm:$0xff] %v3798_v35  ;;  %v3804_v8 = vpop.eup %2662  ;;  %2674 = vpow2.f32 %v1884_v19  ;;  %v1814_v5 = vsub.f32 %v4918_v41, %v3710_v4  ;;  %v3828_v43 = vadd.f32 %v4922_v54, %v4921_v45  ;;  %v4927_v45 = vld [vmem:[#allocation84_spill] sm:$0xff] }
 0x321   : > { %4913 = vst [vmem:[#allocation99_spill] sm:$0xff] %v3804_v8  ;;  %v3808_v22 = vpop.eup %2664  ;;  %2676 = vpow2.f32 %v1886_v14  ;;  %v1898_v14 = vmul.f32 1.442695, %v1811_v30  ;;  %1247 = vadd.xlane.f32.xlu0 %v1246_v16  ;;  %v4924_v30 = vld [vmem:[#allocation62_spill] sm:$0xff]  ;;  %v4925_v16 = vld [vmem:[#allocation65_spill] sm:$0xff] }
 0x322   : > { %4914 = vst [vmem:[#allocation100_spill] sm:$0xff] %v3808_v22  ;;  %v3814_v50 = vpop.eup %2666  ;;  %2678 = vpow2.f32 %v1888_v15  ;;  %v1817_v15 = vsub.f32 %v3384_v21, %v3713_v6  ;;  %v3836_v41 = vadd.f32 %v4925_v16, %v4924_v30  ;;  %v1904_v2 = vmul.f32 1.442695, %v1814_v5  ;;  %v4929_v5 = vld [vmem:[#allocation38_spill] sm:$0xff] }
 0x323   : > { %v3818_v19 = vpop.eup %2668  ;;  %2680 = vpow2.f32 %v1890_v38  ;;  %v1902_v38 = vmul.f32 1.442695, %v1813_v23  ;;  %v1819_v21 = vsub.f32 %v3392_v32, %v3713_v6  ;;  %v1820_v23 = vsub.f32 %v3400_v57, %v3710_v4 }
 0x324   : > { %4919 = vst [vmem:[#allocation34_spill] sm:$0xff] %v3818_v19  ;;  %v3822_v55 = vpop.eup %2670  ;;  %2682 = vpow2.f32 %v1892_v39  ;;  %v4926_v39 = vld [vmem:[#allocation81_spill] sm:$0xff]  ;;  %v1908_v16 = vmul.f32 1.442695, %v1816_v60  ;;  %v1823_v32 = vsub.f32 %v3415_v11, %v3713_v6  ;;  %v1910_v57 = vmul.f32 1.442695, %v1817_v15 }
 0x325   : > { %v3830_v29 = vpop.eup %2672  ;;  %2684 = vpow2.f32 %v1894_v47  ;;  %v1249_v54 = vadd.f32 %v4927_v45, %v4926_v39  ;;  %v1906_v47 = vmul.f32 1.442695, %v1815_v62  ;;  %v4932_v62 = vld [vmem:[#allocation70_spill] sm:$0xff]  ;;  %v1912_v60 = vmul.f32 1.442695, %v1818_v20 }
 0x326   : > { %4923 = vst [vmem:[#allocation79_spill] sm:$0xff] %v3830_v29  ;;  %v3838_v59 = vpop.eup %2674  ;;  %2686 = vpow2.f32 %v1896_v51  ;;  %v1822_v51 = vsub.f32 %v4929_v5, %v3710_v4  ;;  %v1827_v15 = vsub.f32 %v3443_v26, %v3713_v6  ;;  %v1916_v20 = vmul.f32 1.442695, %v1820_v23  ;;  %v4941_v26 = vld [vmem:[#allocation51_spill] sm:$0xff] }
 0x327   : > { %v3844_v24 = vpop.eup %2676  ;;  %2688 = vpow2.f32 %v1898_v14  ;;  %1250 = vadd.xlane.f32.xlu2 %v1249_v54  ;;  %v4931_v14 = vld [vmem:[#allocation69_spill] sm:$0xff] }
 0x328   : > { %4928 = vst [vmem:[#allocation80_spill] sm:$0xff] %v3844_v24  ;;  %v3850_v30 = vpop.eup %2678  ;;  %2690 = vpow2.f32 %v1900_v0  ;;  %v1240_v45 = vadd.f32 %v4932_v62, %v4931_v14  ;;  %v1825_v0 = vsub.f32 %v4933_v37, %v3713_v6  ;;  %v4937_v62 = vld [vmem:[#allocation47_spill] sm:$0xff]  ;;  %v4938_v37 = vld [vmem:[#allocation48_spill] sm:$0xff]  ;;  %v1920_v11 = vmul.f32 1.442695, %v1822_v51 }
 0x329   : > { %v3856_v39 = vpop.eup %2680  ;;  %2692 = vpow2.f32 %v1902_v38  ;;  %v1914_v38 = vmul.f32 1.442695, %v1819_v21  ;;  %v1828_v49 = vsub.f32 %v4937_v62, %v3710_v4  ;;  %v1918_v21 = vmul.f32 1.442695, %v1821_v31 }
 0x32a   : > { %4930 = vst [vmem:[#allocation35_spill] sm:$0xff] %v3856_v39  ;;  %v3862_v44 = vpop.eup %2682  ;;  %2694 = vpow2.f32 %v1904_v2  ;;  %v1826_v39 = vsub.f32 %v4935_v48, %v3710_v4  ;;  %1241 = vadd.xlane.f32.xlu0 %v1240_v45  ;;  %v1829_v2 = vsub.f32 %v4938_v37, %v3713_v6  ;;  %v4940_v48 = vld [vmem:[#allocation50_spill] sm:$0xff]  ;;  %v4943_v37 = vld [vmem:[#allocation71_spill] sm:$0xff]  ;;  %v1982_v31 = vadd.f32 %v3766_v36, %v3758_v10 }
 0x32b   : > { %v3868_v54 = vpop.eup %2684  ;;  %2696 = vpow2.f32 %v1906_v47  ;;  %v1830_v24 = vsub.f32 %v4940_v48, %v3710_v4  ;;  %v1831_v47 = vsub.f32 %v4941_v26, %v3713_v6  ;;  %v1833_v48 = vsub.f32 %v4884_v33, %v3713_v6 }
 0x32c   : > { %4934 = vst [vmem:[#allocation36_spill] sm:$0xff] %v3868_v54  ;;  %v3874_v14 = vpop.eup %2686  ;;  %2698 = vpow2.f32 %v1908_v16  ;;  %v4944_v16 = vld [vmem:[#allocation74_spill] sm:$0xff]  ;;  %v1924_v51 = vmul.f32 1.442695, %v1824_v58  ;;  %v1983_v33 = vadd.f32 %v3774_v28, %v1982_v31  ;;  %v1837_v58 = vsub.f32 %v4889_v46, %v3713_v6 }
 0x32d   : > { %4936 = vst [vmem:[#allocation55_spill] sm:$0xff] %v3874_v14  ;;  %v3880_v54 = vpop.eup %2688  ;;  %2700 = vpow2.f32 %v1910_v57  ;;  %v4942_v14 = vld [vmem:[#allocation53_spill] sm:$0xff]  ;;  %v1243_v23 = vadd.f32 %v4944_v16, %v4943_v37  ;;  %v3904_v37 = vadd.f32 %v3754_v42, %v3748_v9  ;;  %v1926_v16 = vmul.f32 1.442695, %v1825_v0  ;;  %v4956_v28 = vld [vmem:[#allocation82_spill] sm:$0xff] }
 0x32e   : > { %4939 = vst [vmem:[#allocation58_spill] sm:$0xff] %v3880_v54  ;;  %v3886_v45 = vpop.eup %2690  ;;  %v1832_v62 = vsub.f32 %v4942_v14, %v3710_v4  ;;  %2702 = vpow2.f32 %v1912_v60  ;;  %v1922_v54 = vmul.f32 1.442695, %v1823_v32  ;;  %v1834_v14 = vsub.f32 %v4885_v52, %v3710_v4 }
 0x32f   : > { %v3892_v29 = vpop.eup %2692  ;;  %2704 = vpow2.f32 %v1914_v38  ;;  %1244 = vadd.xlane.f32.xlu2 %v1243_v23  ;;  %4946 = vst [vmem:[#allocation65_spill] sm:$0xff] %v3904_v37  ;;  %v4948_v38 = vld [vmem:[#allocation57_spill] sm:$0xff]  ;;  %v1928_v23 = vmul.f32 1.442695, %v1826_v39  ;;  %v1838_v52 = vsub.f32 %v4890_v7, %v3710_v4  ;;  %v1984_v0 = vadd.f32 %v3782_v61, %v1983_v33  ;;  %v4955_v61 = vld [vmem:[#allocation76_spill] sm:$0xff] }
 0x330   : > { %4945 = vst [vmem:[#allocation62_spill] sm:$0xff] %v3892_v29  ;;  %v3898_v57 = vpop.eup %2694  ;;  %2706 = vpow2.f32 %v1916_v20  ;;  %v1835_v32 = vsub.f32 %v4948_v38, %v3713_v6  ;;  %v1836_v20 = vsub.f32 %v4888_v63, %v3710_v4  ;;  %v1839_v38 = vsub.f32 %v4891_v25, %v3713_v6 }
 0x331   : > { %v3906_v60 = vpop.eup %2696  ;;  %2708 = vpow2.f32 %v1918_v21  ;;  %v1930_v21 = vmul.f32 1.442695, %v1827_v15  ;;  %v1932_v39 = vmul.f32 1.442695, %v1828_v49  ;;  %v1934_v15 = vmul.f32 1.442695, %v1829_v2 }
 0x332   : > { %4947 = vst [vmem:[#allocation81_spill] sm:$0xff] %v3906_v60  ;;  %v3911_v36 = vpop.eup %2698  ;;  %2710 = vpow2.f32 %v1920_v11  ;;  %1235 = vadd.xlane.f32.xlu0 %v3693_v1  ;;  %v1985_v33 = vadd.f32 %v3792_v56, %v1984_v0  ;;  %v1936_v25 = vmul.f32 1.442695, %v1830_v24  ;;  %v4952_v11 = vld [vmem:[#allocation73_spill] sm:$0xff]  ;;  %v1845_v46 = vsub.f32 %v4955_v61, %v3713_v6  ;;  %v1441_v56 = vpop.f32.mrf.mxu3 }
 0x333   : > { %v3917_v37 = vpop.eup %2700  ;;  %2712 = vpow2.f32 %v1922_v54  ;;  %v4953_v54 = vld [vmem:[#allocation75_spill] sm:$0xff]  ;;  %v1846_v63 = vsub.f32 %v4956_v28, %v3710_v4  ;;  %v1946_v61 = vmul.f32 1.442695, %v1835_v32 }
 0x334   : > { %4949 = vst [vmem:[#allocation84_spill] sm:$0xff] %v3917_v37  ;;  %v3923_v31 = vpop.eup %2702  ;;  %2714 = vpow2.f32 %v1924_v51  ;;  %v2019_v51 = vadd.f32 %v3770_v53, %v3762_v3  ;;  %v1986_v2 = vadd.f32 %v3804_v8, %v1985_v33  ;;  %v4960_v3 = vld [vmem:[#allocation85_spill] sm:$0xff] }
 0x335   : > { %v3929_v10 = vpop.eup %2704  ;;  %2716 = vpow2.f32 %v1926_v16  ;;  %v1938_v16 = vmul.f32 1.442695, %v1831_v47  ;;  %v1942_v47 = vmul.f32 1.442695, %v1833_v48 }
 0x336   : > { %4950 = vst [vmem:[#allocation38_spill] sm:$0xff] %v3929_v10  ;;  %v3934_v1 = vpop.eup %2706  ;;  %2718 = vpow2.f32 %v1928_v23  ;;  %v1940_v23 = vmul.f32 1.442695, %v1832_v62  ;;  %v2020_v24 = vadd.f32 %v3778_v12, %v2019_v51  ;;  %v1944_v62 = vmul.f32 1.442695, %v1834_v14 }
 0x337   : > { %v3940_v49 = vpop.eup %2708  ;;  %2720 = vpow2.f32 %v1930_v21  ;;  %1238 = vadd.xlane.f32.xlu2 %v3836_v41  ;;  %v1987_v21 = vadd.f32 %v3814_v50, %v1986_v2  ;;  %v4958_v41 = vld [vmem:[#allocation83_spill] sm:$0xff]  ;;  %v1954_v12 = vmul.f32 1.442695, %v1839_v38  ;;  %v1851_v38 = vsub.f32 %v3685_v13, %v3713_v6 }
 0x338   : > { %4951 = vst [vmem:[#allocation69_spill] sm:$0xff] %v3940_v49  ;;  %v3945_v0 = vpop.eup %2710  ;;  %2722 = vpow2.f32 %v1932_v39  ;;  %v2021_v39 = vadd.f32 %v3786_v27, %v2020_v24  ;;  %v1847_v53 = vsub.f32 %v4958_v41, %v3713_v6  ;;  %v3972_v24 = vpop.xlane.xlu0 %974  ;;  %v4970_v13 = vld [vmem:[#allocation39_spill] sm:$0xff] }
 0x339   : > { %v3951_v7 = vpop.eup %2712  ;;  %2724 = vpow2.f32 %v1934_v15  ;;  %v1988_v48 = vadd.f32 %v3822_v55, %v1987_v21  ;;  %v4959_v15 = vld [vmem:[#allocation87_spill] sm:$0xff]  ;;  %v1950_v21 = vmul.f32 1.442695, %v1837_v58  ;;  %v1352_v41 = vpop.f32.mrf.mxu2  ;;  %v1052_v58 = vsub.f32 %v4929_v5, %v3972_v24 }
 0x33a   : > { %4954 = vst [vmem:[#allocation70_spill] sm:$0xff] %v3951_v7  ;;  %v3956_v33 = vpop.eup %2714  ;;  %2726 = vpow2.f32 %v1936_v25  ;;  %1229 = vadd.xlane.f32.xlu0 %v4959_v15  ;;  %v1948_v25 = vmul.f32 1.442695, %v1836_v20  ;;  %v2022_v14 = vadd.f32 %v3798_v35, %v2021_v39  ;;  %v3982_v39 = vadd.f32 %v1441_v56, %v1352_v41 }
 0x33b   : > { %v3961_v51 = vpop.eup %2716  ;;  %2728 = vpow2.f32 %v1938_v16  ;;  %v4962_v16 = vld [vmem:[#allocation86_spill] sm:$0xff]  ;;  %v1989_v15 = vadd.f32 %v3838_v59, %v1988_v48  ;;  %v1850_v48 = vsub.f32 %v3683_v18, %v3710_v4  ;;  %v4967_v5 = vsub.f32 %v3546_v40, %v3713_v6  ;;  %v4973_v40 = vld [vmem:[#allocation55_spill] sm:$0xff] }
 0x33c   : > { %4957 = vst [vmem:[#allocation51_spill] sm:$0xff] %v3961_v51  ;;  %v3967_v2 = vpop.eup %2718  ;;  %2730 = vpow2.f32 %v1940_v23  ;;  %v1849_v32 = vsub.f32 %v4962_v16, %v3713_v6  ;;  %v1952_v23 = vmul.f32 1.442695, %v1838_v52  ;;  %v2023_v20 = vadd.f32 %v3808_v22, %v2022_v14  ;;  %v4006_v14 = vpop.xlane.xlu2 %977 }
 0x33d   : > { %v3974_v8 = vpop.eup %2720  ;;  %2732 = vpow2.f32 %v1942_v47  ;;  %4963 = vst [vmem:[#allocation74_spill] sm:$0xff] %v3982_v39  ;;  %v1990_v16 = vadd.f32 %v3850_v30, %v1989_v15  ;;  %v4965_v52 = vsub.f32 %v3544_v17, %v3710_v4  ;;  %v1958_v41 = vmul.f32 1.442695, %v4967_v5 }
 0x33e   : > { %4961 = vst [vmem:[#allocation71_spill] sm:$0xff] %v3974_v8  ;;  %v3979_v27 = vpop.eup %2722  ;;  %2734 = vpow2.f32 %v1944_v62  ;;  %v2024_v62 = vadd.f32 %v3818_v19, %v2023_v20 }
 0x33f   : > { %v3984_v28 = vpop.eup %2724  ;;  %2736 = vpow2.f32 %v1946_v61  ;;  %v1956_v56 = vmul.f32 1.442695, %v4965_v52  ;;  %1232 = vadd.xlane.f32.xlu2 %v3828_v43  ;;  %v4968_v43 = vsub.f32 %v3561_v34, %v3710_v4  ;;  %v4969_v52 = vld [vmem:[#allocation79_spill] sm:$0xff]  ;;  %v1966_v34 = vmul.f32 1.442695, %v1845_v46 }
 0x340   : > { %4964 = vst [vmem:[#allocation87_spill] sm:$0xff] %v3984_v28  ;;  %v3989_v47 = vpop.eup %2726  ;;  %2738 = vpow2.f32 %v1948_v25  ;;  %v1991_v25 = vadd.f32 %v3862_v44, %v1990_v16  ;;  %v2025_v39 = vadd.f32 %v4969_v52, %v2024_v62  ;;  %v4972_v16 = vsub.f32 %v4952_v11, %v3713_v6  ;;  %v4037_v11 = vpop.f32.mrf.mxu3  ;;  %v4983_v28 = vld [vmem:[#allocation29_spill] sm:$0xff]  ;;  %v5016_v52 = vld [vmem:[#allocation31_spill] sm:$0xff] }
 0x341   : > { %v3998_v61 = vpop.eup %2728  ;;  %2740 = vpow2.f32 %v1950_v21  ;;  %v1960_v20 = vmul.f32 1.442695, %v4968_v43  ;;  %v1053_v21 = vsub.f32 %v4970_v13, %v3972_v24  ;;  %v4975_v62 = vsub.f32 %v4953_v54, %v3710_v4  ;;  %v4976_v13 = vld [vmem:[#allocation80_spill] sm:$0xff]  ;;  %4979 = vst [vmem:[#allocation104_spill] sm:$0xff] %v4037_v11 }
 0x342   : > { %4966 = vst [vmem:[#allocation101_spill] sm:$0xff] %v3998_v61  ;;  %v4008_v15 = vpop.eup %2730  ;;  %2742 = vpow2.f32 %v1952_v23  ;;  %v1962_v5 = vmul.f32 1.442695, %v4972_v16  ;;  %v1992_v17 = vadd.f32 %v4973_v40, %v1991_v25  ;;  %v4022_v61 = vmul.f32 1.442695, %v1052_v58  ;;  %v4035_v25 = vpop.f32.mrf.mxu2 }
 0x343   : > { %v4016_v18 = vpop.eup %2732  ;;  %2744 = vpow2.f32 %v1954_v12  ;;  %v1964_v43 = vmul.f32 1.442695, %v4975_v62  ;;  %v2026_v24 = vadd.f32 %v4976_v13, %v2025_v39  ;;  %v1968_v6 = vmul.f32 1.442695, %v1846_v63  ;;  %4978 = vst [vmem:[#allocation103_spill] sm:$0xff] %v4035_v25  ;;  %v4981_v62 = vld [vmem:[#allocation35_spill] sm:$0xff] }
 0x344   : > { %4971 = vst [vmem:[#allocation39_spill] sm:$0xff] %v4016_v18  ;;  %v4024_v23 = vpop.eup %2734  ;;  %2746 = vpow2.f32 %v1956_v56  ;;  %v4030_v18 = vpop.xlane.xlu0 %980  ;;  %v1970_v16 = vmul.f32 1.442695, %v1847_v53  ;;  %v1993_v58 = vadd.f32 %v3886_v45, %v1992_v17  ;;  %v4982_v39 = vld [vmem:[#allocation41_spill] sm:$0xff]  ;;  %v4986_v17 = vsub.f32 %v4960_v3, %v3710_v4  ;;  %v5010_v13 = vld [vmem:[#allocation95_spill] sm:$0xff] }
 0x345   : > { %4974 = vst [vmem:[#allocation55_spill] sm:$0xff] %v4024_v23  ;;  %v4032_v12 = vpop.eup %2736  ;;  %2748 = vpow2.f32 %v1958_v41  ;;  %v2027_v46 = vadd.f32 %v4981_v62, %v2026_v24  ;;  %v1054_v54 = vsub.f32 %v4982_v39, %v4006_v14  ;;  %v4984_v23 = vld [vmem:[#allocation30_spill] sm:$0xff]  ;;  %v1974_v53 = vmul.f32 1.442695, %v1849_v32 }
 0x346   : > { %4977 = vst [vmem:[#allocation102_spill] sm:$0xff] %v4032_v12  ;;  %v4039_v56 = vpop.eup %2738  ;;  %2750 = vpow2.f32 %v1960_v20  ;;  %v1255_v12 = vadd.f32 %v4984_v23, %v4983_v28  ;;  %v1972_v63 = vmul.f32 1.442695, %v4986_v17  ;;  %v1994_v11 = vadd.f32 %v3898_v57, %v1993_v58  ;;  %v984_v23 = vpop.xlane.xlu2 %983 }
 0x347   : > { %4980 = vst [vmem:[#allocation105_spill] sm:$0xff] %v4039_v56  ;;  %v4046_v41 = vpop.eup %2740  ;;  %2752 = vpow2.f32 %v1962_v5  ;;  %v1976_v20 = vmul.f32 1.442695, %v1850_v48  ;;  %v1978_v24 = vmul.f32 1.442695, %v1851_v38  ;;  %v4987_v56 = vld [vmem:[#allocation36_spill] sm:$0xff]  ;;  %v2095_v32 = vpack.c.bf16 %v3923_v31, %v3911_v36 }
 0x348   : > { %4985 = vst [vmem:[#allocation41_spill] sm:$0xff] %v4046_v41  ;;  %v4052_v25 = vpop.eup %2742  ;;  %2754 = vpow2.f32 %v1964_v43  ;;  %v2028_v39 = vadd.f32 %v4987_v56, %v2027_v46  ;;  %1256 = vadd.xlane.f32.xlu2 %v1255_v12  ;;  %v1995_v28 = vadd.f32 %v3911_v36, %v1994_v11  ;;  %v4989_v5 = vld [vmem:[#allocation42_spill] sm:$0xff]  ;;  %v1152_v43 = vmul.f32 1.442695, %v1053_v21  ;;  %v4991_v11 = vld [vmem:[#allocation44_spill] sm:$0xff]  ;;  %v1446_v41 = vpop.f32.mrf.mxu3  ;;  %v5009_v56 = vld [vmem:[#allocation93_spill] sm:$0xff] }
 0x349   : > { %v4055_v22 = vpop.eup %2744  ;;  %2756 = vpow2.f32 %v1966_v34  ;;  %v1055_v4 = vsub.f32 %v4989_v5, %v4006_v14  ;;  %v4990_v48 = vld [vmem:[#allocation58_spill] sm:$0xff]  ;;  %v1154_v46 = vmul.f32 1.442695, %v1054_v54  ;;  %v1056_v17 = vsub.f32 %v4991_v11, %v4030_v18  ;;  %v4992_v14 = vld [vmem:[#allocation45_spill] sm:$0xff]  ;;  %2113 = vmatpush.bf16.msra.mxu2 %v2095_v32  ;;  %v4994_v54 = vld [vmem:[#allocation48_spill] sm:$0xff] }
 0x34a   : > { %4988 = vst [vmem:[#allocation29_spill] sm:$0xff] %v4055_v22  ;;  %v4062_v58 = vpop.eup %2746  ;;  %2758 = vpow2.f32 %v1968_v6  ;;  %v2029_v38 = vadd.f32 %v4990_v48, %v2028_v39  ;;  %v1996_v34 = vadd.f32 %v3923_v31, %v1995_v28  ;;  %v1057_v5 = vsub.f32 %v4992_v14, %v4030_v18  ;;  %v4993_v39 = vld [vmem:[#allocation47_spill] sm:$0xff]  ;;  %v1357_v11 = vpop.f32.mrf.mxu2 }
 0x34b   : > { %v4065_v12 = vpop.eup %2748  ;;  %2760 = vpow2.f32 %v1970_v16  ;;  %v1058_v21 = vsub.f32 %v4993_v39, %v984_v23  ;;  %v1059_v3 = vsub.f32 %v4994_v54, %v984_v23  ;;  %v1156_v28 = vmul.f32 1.442695, %v1055_v4 }
 0x34c   : > { %v4072_v36 = vpop.eup %2750  ;;  %2762 = vpow2.f32 %v1972_v63  ;;  %v2030_v6 = vadd.f32 %v3892_v29, %v2029_v38  ;;  %v987_v22 = vpop.xlane.xlu0 %986  ;;  %v1997_v31 = vadd.f32 %v3934_v1, %v1996_v34  ;;  %v2093_v18 = vpack.c.bf16 %v3898_v57, %v3886_v45  ;;  %v4995_v38 = vld [vmem:[#allocation50_spill] sm:$0xff] }
 0x34d   : > { %v4077_v16 = vpop.eup %2752  ;;  %2764 = vpow2.f32 %v1974_v53  ;;  %v1060_v14 = vsub.f32 %v4995_v38, %v987_v22  ;;  %v4086_v23 = vadd.f32 %v1446_v41, %v1357_v11  ;;  %v1158_v4 = vmul.f32 1.442695, %v1056_v17  ;;  %v5013_v48 = vld [vmem:[#allocation102_spill] sm:$0xff] }
 0x34e   : > { %v4082_v32 = vpop.eup %2754  ;;  %2766 = vpow2.f32 %v1976_v20  ;;  %v2031_v63 = vadd.f32 %v3906_v60, %v2030_v6  ;;  %v1998_v53 = vadd.f32 %v3945_v0, %v1997_v31  ;;  %v1160_v34 = vmul.f32 1.442695, %v1057_v5  ;;  %2114 = vmatpush.bf16.msra.mxu2 %v2093_v18 }
 0x34f   : > { %4996 = vst [vmem:[#allocation30_spill] sm:$0xff] %v4086_v23  ;;  %v4088_v39 = vpop.eup %2756  ;;  %2768 = vpow2.f32 %v1978_v24  ;;  %v1162_v57 = vmul.f32 1.442695, %v1058_v21  ;;  %v1164_v20 = vmul.f32 1.442695, %v1059_v3  ;;  %v1061_v24 = vsub.f32 %v4941_v26, %v987_v22  ;;  %v5004_v26 = vld [vmem:[#allocation99_spill] sm:$0xff] }
 0x350   : > { %v4091_v54 = vpop.eup %2758  ;;  %v2032_v45 = vadd.f32 %v3917_v37, %v2031_v63  ;;  %2770 = vpow2.f32 %v4022_v61  ;;  %v1999_v41 = vadd.f32 %v3956_v33, %v1998_v53  ;;  %v2091_v17 = vpack.c.bf16 %v4973_v40, %v3862_v44  ;;  %v4127_v38 = vpop.f32.mrf.mxu3  ;;  %v5034_v23 = vld [vmem:[#allocation85_spill] sm:$0xff] }
 0x351   : > { %v4095_v6 = vpop.eup %2760  ;;  %2772 = vpow2.f32 %v1152_v43  ;;  %v1166_v11 = vmul.f32 1.442695, %v1060_v14  ;;  %v2089_v61 = vpack.c.bf16 %v3850_v30, %v3838_v59  ;;  %v1168_v18 = vmul.f32 1.442695, %v1061_v24  ;;  %v5002_v59 = vld [vmem:[#allocation105_spill] sm:$0xff] }
 0x352   : > { %v4101_v5 = vpop.eup %2762  ;;  %v2033_v31 = vadd.f32 %v3929_v10, %v2032_v45  ;;  %2774 = vpow2.f32 %v1154_v46  ;;  %v2000_v21 = vadd.f32 %v3967_v2, %v1999_v41  ;;  %2115 = vmatpush.bf16.msra.mxu2 %v2091_v17  ;;  %v4125_v63 = vpop.f32.mrf.mxu2  ;;  %v2083_v19 = vpack.c.bf16 %v5010_v13, %v5009_v56  ;;  %v5014_v13 = vld [vmem:[#allocation59_spill] sm:$0xff]  ;;  %v5017_v10 = vld [vmem:[#allocation33_spill] sm:$0xff] }
 0x353   : > { %v4106_v3 = vpop.eup %2764  ;;  %2776 = vpow2.f32 %v1156_v28 }
 0x354   : > { %v4113_v44 = vpop.eup %2766  ;;  %v2034_v22 = vadd.f32 %v3940_v49, %v2033_v31  ;;  %2778 = vpow2.f32 %v1158_v4  ;;  %v2001_v46 = vadd.f32 %v3979_v27, %v2000_v21  ;;  %v4206_v29 = vpop.xlane.xlu0 %992 }
 0x355   : > { %v4120_v43 = vpop.eup %2768  ;;  %2780 = vpow2.f32 %v1160_v34  ;;  %v2111_v28 = vpack.c.bf16 %v4113_v44, %v4101_v5  ;;  %v2087_v34 = vpack.c.bf16 %v3822_v55, %v3814_v50 }
 0x356   : > { %v2771_v14 = vpop.eup %2770  ;;  %v2035_v53 = vadd.f32 %v3951_v7, %v2034_v22  ;;  %2782 = vpow2.f32 %v1162_v57  ;;  %v2002_v45 = vadd.f32 %v3989_v47, %v2001_v46  ;;  %2116 = vmatpush.bf16.msra.mxu2 %v2089_v61  ;;  %v2109_v57 = vpack.c.bf16 %v4091_v54, %v4082_v32 }
 0x357   : > { %v2773_v4 = vpop.eup %2772  ;;  %v1322_v41 = vpack.c.bf16 %v2771_v14, %v3748_v9  ;;  %2784 = vpow2.f32 %v1164_v20  ;;  %2126 = vmatpush.bf16.msra.mxu3 %v2111_v28  ;;  %v2107_v46 = vpack.c.bf16 %v4072_v36, %v4062_v58 }
 0x358   : > { %v4134_v24 = vpop.eup %2774  ;;  %v2036_v17 = vadd.f32 %v3961_v51, %v2035_v53  ;;  %v1323_v31 = vpack.c.bf16 %v2773_v4, %v3754_v42  ;;  %2786 = vpow2.f32 %v1166_v11  ;;  %v2003_v9 = vadd.f32 %v4008_v15, %v2002_v45  ;;  %v4150_v42 = vpop.xlane.xlu2 %989 }
 0x359   : > { %v4140_v21 = vpop.eup %2776  ;;  %1391 = vmatmul.bf16.gmra.mxu2 %v1322_v41  ;;  %2788 = vpow2.f32 %v1168_v18  ;;  %v4143_v20 = vadd.f32 %v2773_v4, %v2771_v14  ;;  %v4998_v18 = vld [vmem:[#allocation55_spill] sm:$0xff]  ;;  %v2105_v45 = vpack.c.bf16 %v4052_v25, %v5002_v59 }
 0x35a   : > { %v4147_v55 = vpop.eup %2778  ;;  %v2037_v61 = vadd.f32 %v3974_v8, %v2036_v17  ;;  %1480 = vmatmul.bf16.gmra.mxu3 %v1323_v31  ;;  %v4154_v11 = vadd.f32 %v4140_v21, %v4134_v24  ;;  %v2004_v14 = vadd.f32 %v4998_v18, %v2003_v9  ;;  %2117 = vmatpush.bf16.msra.mxu2 %v2087_v34  ;;  %v5001_v17 = vld [vmem:[#allocation87_spill] sm:$0xff]  ;;  %v1362_v9 = vpop.f32.mrf.mxu2  ;;  %v5003_v34 = vld [vmem:[#allocation97_spill] sm:$0xff] }
 0x35b   : > { %v2781_v28 = vpop.eup %2780  ;;  %2127 = vmatpush.bf16.msra.mxu3 %v2109_v57  ;;  %v1451_v57 = vpop.f32.mrf.mxu3  ;;  %v2085_v35 = vpack.c.bf16 %v5004_v26, %v5003_v34  ;;  %v5008_v26 = vld [vmem:[#allocation39_spill] sm:$0xff] }
 0x35c   : > { %v4161_v41 = vpop.eup %2782  ;;  %v2038_v31 = vadd.f32 %v5001_v17, %v2037_v61  ;;  %v4165_v50 = vadd.f32 %v2781_v28, %v4147_v55  ;;  %v2005_v40 = vadd.f32 %v5002_v59, %v2004_v14  ;;  %v5005_v61 = vld [vmem:[#allocation101_spill] sm:$0xff]  ;;  %v4179_v22 = vadd.f32 %v1451_v57, %v1362_v9 }
 0x35d   : > { %v4167_v30 = vpop.eup %2784 }
 0x35e   : > { %v4176_v53 = vpop.eup %2786  ;;  %v2039_v4 = vadd.f32 %v5005_v61, %v2038_v31  ;;  %v4183_v14 = vadd.f32 %v4167_v30, %v4161_v41  ;;  %2118 = vmatpush.bf16.msra.mxu2 %v2085_v35  ;;  %v2006_v57 = vadd.f32 %v4052_v25, %v2005_v40  ;;  %v2103_v25 = vpack.c.bf16 %v4998_v18, %v4008_v15  ;;  %v5015_v40 = vld [vmem:[#allocation60_spill] sm:$0xff] }
 0x35f   : > { %v4187_v62 = vpop.eup %2788  ;;  %2128 = vmatpush.bf16.msra.mxu3 %v2107_v46  ;;  %v5011_v46 = vld [vmem:[#allocation41_spill] sm:$0xff] }
 0x360   : > { %v2040_v34 = vadd.f32 %v5008_v26, %v2039_v4  ;;  %v4194_v31 = vadd.f32 %v4187_v62, %v4176_v53  ;;  %v5012_v4 = vld [vmem:[#allocation29_spill] sm:$0xff]  ;;  %v996_v60 = vpop.xlane.xlu2 %995 }
 0x361   : > { %v1066_v56 = vsub.f32 %v5014_v13, %v996_v60  ;;  %v1067_v35 = vsub.f32 %v5015_v40, %v996_v60  ;;  %v5020_v40 = vld [vmem:[#allocation66_spill] sm:$0xff] }
 0x362   : > { %v2041_v59 = vadd.f32 %v5013_v48, %v2040_v34  ;;  %2119 = vmatpush.bf16.msra.mxu2 %v2083_v19  ;;  %v2081_v34 = vpack.c.bf16 %v5017_v10, %v5016_v52  ;;  %v1324_v19 = vpack.c.bf16 %v4147_v55, %v4134_v24  ;;  %v4224_v13 = vpop.f32.mrf.mxu2  ;;  %v1325_v10 = vpack.c.bf16 %v2781_v28, %v4140_v21  ;;  %v5018_v28 = vld [vmem:[#allocation63_spill] sm:$0xff] }
 0x363   : > { %2129 = vmatpush.bf16.msra.mxu3 %v2105_v45  ;;  %v2007_v45 = vadd.f32 %v4062_v58, %v2006_v57  ;;  %v1178_v15 = vmul.f32 1.442695, %v1066_v56  ;;  %v1180_v18 = vmul.f32 1.442695, %v1067_v35  ;;  %v4226_v60 = vpop.f32.mrf.mxu3  ;;  %v2101_v55 = vpack.c.bf16 %v3989_v47, %v3979_v27  ;;  %v5033_v52 = vld [vmem:[#allocation83_spill] sm:$0xff] }
 0x364   : > { %v2042_v9 = vadd.f32 %v5011_v46, %v2041_v59  ;;  %v2099_v47 = vpack.c.bf16 %v3967_v2, %v3956_v33  ;;  %v2097_v33 = vpack.c.bf16 %v3945_v0, %v3934_v1  ;;  %v5024_v1 = vld [vmem:[#allocation57_spill] sm:$0xff] }
 0x365   : > { %2790 = vpow2.f32 %v1178_v15  ;;  %v2008_v24 = vadd.f32 %v4072_v36, %v2007_v45  ;;  %v1065_v0 = vsub.f32 %v5024_v1, %v4206_v29 }
 0x366   : > { %v2043_v59 = vadd.f32 %v5012_v4, %v2042_v9  ;;  %2120 = vmatpush.bf16.msra.mxu2 %v2081_v34  ;;  %2792 = vpow2.f32 %v1180_v18  ;;  %v999_v9 = vpop.xlane.xlu0 %998  ;;  %v5021_v18 = vld [vmem:[#allocation67_spill] sm:$0xff] }
 0x367   : > { %2130 = vmatpush.bf16.msra.mxu3 %v2103_v25  ;;  %v1068_v35 = vsub.f32 %v5018_v28, %v999_v9  ;;  %v5019_v25 = vld [vmem:[#allocation64_spill] sm:$0xff]  ;;  %v2009_v27 = vadd.f32 %v4082_v32, %v2008_v24 }
 0x368   : > { %v2044_v58 = vadd.f32 %v4065_v12, %v2043_v59  ;;  %v1002_v21 = vpop.xlane.xlu2 %1001  ;;  %v1069_v56 = vsub.f32 %v5019_v25, %v999_v9 }
 0x369   : > { %1396 = vmatmul.bf16.gmra.mxu2 %v1324_v19  ;;  %v1070_v34 = vsub.f32 %v5020_v40, %v1002_v21  ;;  %v1071_v36 = vsub.f32 %v5021_v18, %v1002_v21  ;;  %v1182_v19 = vmul.f32 1.442695, %v1068_v35  ;;  %v2010_v2 = vadd.f32 %v4091_v54, %v2009_v27  ;;  %v5022_v21 = vld [vmem:[#allocation53_spill] sm:$0xff]  ;;  %v5023_v40 = vld [vmem:[#allocation56_spill] sm:$0xff] }
 0x36a   : > { %v2045_v57 = vadd.f32 %v4077_v16, %v2044_v58  ;;  %1485 = vmatmul.bf16.gmra.mxu3 %v1325_v10  ;;  %v1184_v59 = vmul.f32 1.442695, %v1069_v56  ;;  %v1367_v10 = vpop.f32.mrf.mxu2  ;;  %v1062_v35 = vsub.f32 %v5022_v21, %v4150_v42  ;;  %v1326_v18 = vpack.c.bf16 %v4176_v53, %v4161_v41 }
 0x36b   : > { %2131 = vmatpush.bf16.msra.mxu3 %v2101_v55  ;;  %v4242_v45 = vpop.eup %2790  ;;  %v1456_v58 = vpop.f32.mrf.mxu3  ;;  %v1188_v25 = vmul.f32 1.442695, %v1071_v36  ;;  %2794 = vpow2.f32 %v1182_v19  ;;  %v5025_v19 = vld [vmem:[#allocation54_spill] sm:$0xff] }
 0x36c   : > { %v2046_v15 = vadd.f32 %v4088_v39, %v2045_v57  ;;  %v4247_v55 = vpop.eup %2792  ;;  %v4250_v28 = vadd.f32 %v1456_v58, %v1367_v10  ;;  %v1186_v57 = vmul.f32 1.442695, %v1070_v34  ;;  %2796 = vpow2.f32 %v1184_v59 }
 0x36d   : > { %v1282_v32 = vadd.f32 %v4247_v55, %v4242_v45  ;;  %v1064_v34 = vsub.f32 %v5023_v40, %v4206_v29  ;;  %v1063_v59 = vsub.f32 %v5025_v19, %v4150_v42  ;;  %v1170_v10 = vmul.f32 1.442695, %v1062_v35  ;;  %v5028_v35 = vld [vmem:[#allocation75_spill] sm:$0xff] }
 0x36e   : > { %v2047_v9 = vadd.f32 %v4095_v6, %v2046_v15  ;;  %2798 = vpow2.f32 %v1186_v57  ;;  %v1327_v58 = vpack.c.bf16 %v4187_v62, %v4167_v30  ;;  %v1005_v42 = vpop.xlane.xlu0 %1004  ;;  %v1008_v30 = vpop.xlane.xlu1 %1007 }
 0x36f   : > { %2132 = vmatpush.bf16.msra.mxu3 %v2099_v47  ;;  %1283 = vadd.xlane.f32.xlu0 %v1282_v32  ;;  %2800 = vpow2.f32 %v1188_v25  ;;  %v2011_v47 = vadd.f32 %v4101_v5, %v2010_v2  ;;  %v1174_v41 = vmul.f32 1.442695, %v1064_v34  ;;  %v1176_v25 = vmul.f32 1.442695, %v1065_v0  ;;  %v5027_v2 = vld [vmem:[#allocation73_spill] sm:$0xff]  ;;  %v5029_v34 = vld [vmem:[#allocation76_spill] sm:$0xff] }
 0x370   : > { %v2048_v24 = vadd.f32 %v4106_v3, %v2047_v9  ;;  %2802 = vpow2.f32 %v1170_v10  ;;  %v1172_v32 = vmul.f32 1.442695, %v1063_v59  ;;  %v1073_v21 = vsub.f32 %v5027_v2, %v1005_v42 }
 0x371   : > { %v4263_v15 = vpop.eup %2794  ;;  %v2012_v5 = vadd.f32 %v4113_v44, %v2011_v47  ;;  %v1074_v40 = vsub.f32 %v5028_v35, %v1008_v30  ;;  %2804 = vpow2.f32 %v1174_v41 }
 0x372   : > { %v2049_v56 = vadd.f32 %v4120_v43, %v2048_v24  ;;  %v4269_v36 = vpop.f32.mrf.mxu2  ;;  %v4273_v27 = vpop.eup %2796  ;;  %v5026_v24 = vld [vmem:[#allocation72_spill] sm:$0xff]  ;;  %2806 = vpow2.f32 %v1176_v25  ;;  %v1192_v0 = vmul.f32 1.442695, %v1073_v21 }
 0x373   : > { %2133 = vmatpush.bf16.msra.mxu3 %v2097_v33  ;;  %v4271_v54 = vpop.f32.mrf.mxu3  ;;  %v1285_v57 = vadd.f32 %v4273_v27, %v4263_v15  ;;  %v1072_v33 = vsub.f32 %v5026_v24, %v1005_v42  ;;  %v1194_v59 = vmul.f32 1.442695, %v1074_v40  ;;  %v2013_v10 = vrot.slane %v2012_v5, 4 }
 0x374   : > { %v4280_v9 = vpop.eup %2798  ;;  %v2050_v29 = vrot.slane %v2049_v56, 4  ;;  %2808 = vpow2.f32 %v1172_v32  ;;  %v5031_v32 = vld [vmem:[#allocation90_spill] sm:$0xff] }
 0x375   : > { %v4282_v53 = vpop.eup %2800  ;;  %1286 = vadd.xlane.f32.xlu2 %v1285_v57  ;;  %v1190_v44 = vmul.f32 1.442695, %v1072_v33 }
 0x376   : > { %v1288_v62 = vadd.f32 %v4282_v53, %v4280_v9  ;;  %v2051_v1 = vadd.f32 %v2050_v29, %v2049_v56  ;;  %v4295_v42 = vpop.eup %2802  ;;  %v2014_v29 = vadd.f32 %v2013_v10, %v2012_v5  ;;  %v1014_v10 = vpop.xlane.xlu0 %1013 }
 0x377   : > { %2810 = vpow2.f32 %v1190_v44  ;;  %v4297_v56 = vpop.eup %2804  ;;  %v1078_v49 = vsub.f32 %v5034_v23, %v1014_v10 }
 0x378   : > { %1289 = vadd.xlane.f32.xlu0 %v1288_v62  ;;  %v2052_v24 = vrot.slane %v2051_v1, 2  ;;  %2812 = vpow2.f32 %v1192_v0  ;;  %v4299_v41 = vpop.eup %2806  ;;  %v1328_v21 = vpack.c.bf16 %v4297_v56, %v4295_v42  ;;  %v2015_v40 = vrot.slane %v2014_v29, 2 }
 0x379   : > { %1401 = vmatmul.bf16.gmra.mxu2 %v1326_v18  ;;  %v1075_v18 = vsub.f32 %v5029_v34, %v1008_v30  ;;  %2814 = vpow2.f32 %v1194_v59  ;;  %v5030_v30 = vld [vmem:[#allocation91_spill] sm:$0xff] }
 0x37a   : > { %1490 = vmatmul.bf16.gmra.mxu3 %v1327_v58  ;;  %v1372_v47 = vpop.f32.mrf.mxu2  ;;  %v4301_v25 = vpop.eup %2808  ;;  %v2053_v62 = vadd.f32 %v2052_v24, %v2051_v1  ;;  %v1780_v33 = vsub.f32 %v5031_v32, %v5030_v30  ;;  %v5032_v30 = vld [vmem:[#allocation82_spill] sm:$0xff] }
 0x37b   : > { %v1461_v19 = vpop.f32.mrf.mxu3  ;;  %v1196_v57 = vmul.f32 1.442695, %v1075_v18  ;;  %v1329_v5 = vpack.c.bf16 %v4299_v41, %v4301_v25 }
 0x37c   : > { %v4293_v58 = vadd.f32 %v1461_v19, %v1372_v47  ;;  %v2054_v44 = vrot.slane %v2053_v62, 1  ;;  %v1781_v0 = vmul.f32 1.442695, %v1780_v33  ;;  %v2016_v47 = vadd.f32 %v2015_v40, %v2014_v29  ;;  %v1011_v19 = vpop.xlane.xlu2 %1010  ;;  %v5035_v33 = vld [vmem:[#allocation86_spill] sm:$0xff] }
 0x37d   : > { %2816 = vpow2.f32 %v1196_v57  ;;  %v4305_v2 = vpop.eup %2810  ;;  %v1076_v32 = vsub.f32 %v5032_v30, %v1011_v19  ;;  %v1077_v37 = vsub.f32 %v5033_v52, %v1011_v19  ;;  %v1980_v52 = vld [vmem:[#allocation4] sm:$0x3] }
 0x37e   : > { %v4309_v35 = vpop.eup %2812  ;;  %v2055_v29 = vadd.f32 %v2054_v44, %v2053_v62  ;;  %2818 = vpow2.f32 %v1781_v0  ;;  %v2017_v7 = vrot.slane %v2016_v47, 1  ;;  %v1330_v62 = vpack.c.bf16 %v4263_v15, %v4242_v45 }
 0x37f   : > { %v4313_v34 = vpop.eup %2814  ;;  %v1291_v1 = vadd.f32 %v4309_v35, %v4305_v2  ;;  %v1198_v40 = vmul.f32 1.442695, %v1076_v32  ;;  %v5037_v32 = vld [vmem:[#allocation88_spill] sm:$0xff] }
 0x380   : > { %v2058_v8 = vrot.slane %v2055_v29, 7  ;;  %v2018_v30 = vadd.f32 %v2017_v7, %v2016_v47 }
 0x381   : > { %1292 = vadd.xlane.f32.xlu2 %v1291_v1  ;;  %v1202_v1 = vmul.f32 1.442695, %v1078_v49  ;;  %2820 = vpow2.f32 %v1198_v40 }
 0x382   : > { %v4321_v57 = vpop.f32.mrf.mxu2  ;;  %v2059_v23 = vsel %vm538_vm2, %v2018_v30, %v2058_v8  ;;  %v1276_v30 = vadd.f32 %v4301_v25, %v4295_v42  ;;  %v1279_v42 = vadd.f32 %v4299_v41, %v4297_v56  ;;  %v1254_v25 = vpop.xlane.xlu0 %1253  ;;  %v5042_v41 = vld [vmem:[#allocation68_spill] sm:$0xff] }
 0x383   : > { %v4315_v18 = vpop.eup %2816  ;;  %v4323_v24 = vpop.f32.mrf.mxu3 }
 0x384   : > { %v1294_v59 = vadd.f32 %v4315_v18, %v4313_v34  ;;  %v4329_v17 = vpop.eup %2818 }
 0x385   : > { %v1981_v49 = vmul.f32 %v4329_v17, %v1980_v52 }
 0x386   : > { %1295 = vadd.xlane.f32.xlu0 %v1294_v59  ;;  %v1331_v59 = vpack.c.bf16 %v4273_v27, %v4247_v55 }
 0x387   : > { %v2821_v19 = vpop.eup %2820 }
 0x389   : > { %1406 = vmatmul.bf16.gmra.mxu2 %v1328_v21  ;;  %v1079_v21 = vsub.f32 %v5035_v33, %v1014_v10 }
 0x38a   : > { %1495 = vmatmul.bf16.gmra.mxu3 %v1329_v5  ;;  %v1200_v5 = vmul.f32 1.442695, %v1077_v37  ;;  %v4334_v44 = vpop.f32.mrf.mxu2 }
 0x38b   : > { %v1204_v51 = vmul.f32 1.442695, %v1079_v21  ;;  %v4336_v37 = vpop.f32.mrf.mxu3  ;;  %v5038_v21 = vld [vmem:[#allocation89_spill] sm:$0xff] }
 0x38c   : > { %2822 = vpow2.f32 %v1200_v5 }
 0x38d   : > { %2824 = vpow2.f32 %v1202_v1  ;;  %v1017_v45 = vpop.xlane.xlu2 %1016 }
 0x38e   : > { %2826 = vpow2.f32 %v1204_v51  ;;  %v2061_v51 = vadd.f32 %v2059_v23, %v1981_v49  ;;  %v1080_v33 = vsub.f32 %v5037_v32, %v1017_v45  ;;  %v1081_v55 = vsub.f32 %v5038_v21, %v1017_v45  ;;  %v5039_v45 = vld [vmem:[#allocation77_spill] sm:$0xff] }
 0x38f   : > { %v1332_v23 = vpack.c.bf16 %v4305_v2, %v4280_v9  ;;  %v1333_v49 = vpack.c.bf16 %v4309_v35, %v4282_v53  ;;  %v1334_v53 = vpack.c.bf16 %v2821_v19, %v4313_v34  ;;  %v5040_v32 = vld [vmem:[#allocation49_spill] sm:$0xff] }
 0x390   : > { %2066 = vst.msk [vmem:[#allocation4] sm:$0x3] %vm3608_vm4, %v2061_v51  ;;  %v1206_v27 = vmul.f32 1.442695, %v1080_v33  ;;  %v1208_v29 = vmul.f32 1.442695, %v1081_v55 }
 0x391   : > { %v5041_v33 = vld [vmem:[#allocation52_spill] sm:$0xff] }
 0x392   : > { %v2823_v0 = vpop.eup %2822  ;;  %v4351_v40 = vpop.f32.mrf.mxu2  ;;  %2828 = vpow2.f32 %v1206_v27  ;;  %v1225_v21 = vadd.f32 %v5041_v33, %v5040_v32 }
 0x393   : > { %v4341_v10 = vpop.eup %2824  ;;  %v1297_v7 = vadd.f32 %v2823_v0, %v2821_v19  ;;  %v4353_v5 = vpop.f32.mrf.mxu3  ;;  %2830 = vpow2.f32 %v1208_v29  ;;  %v1335_v35 = vpack.c.bf16 %v2823_v0, %v4315_v18 }
 0x394   : > { %v4343_v47 = vpop.eup %2826  ;;  %v1248_v56 = vpop.xlane.xlu0 %1247 }
 0x395   : > { %1298 = vadd.xlane.f32.xlu2 %v1297_v7  ;;  %v1300_v15 = vadd.f32 %v4343_v47, %v4341_v10 }
 0x397   : > { %1301 = vadd.xlane.f32.xlu0 %v1300_v15 }
 0x398   : > { %v2829_v52 = vpop.eup %2828 }
 0x399   : > { %1411 = vmatmul.bf16.gmra.mxu2 %v1330_v62  ;;  %v2831_v62 = vpop.eup %2830  ;;  %v1336_v34 = vpack.c.bf16 %v2829_v52, %v4341_v10 }
 0x39a   : > { %1500 = vmatmul.bf16.gmra.mxu3 %v1331_v59  ;;  %v1251_v1 = vpop.xlane.xlu2 %1250  ;;  %v1303_v59 = vadd.f32 %v2831_v62, %v2829_v52  ;;  %v1382_v7 = vpop.f32.mrf.mxu2  ;;  %v1337_v18 = vpack.c.bf16 %v2831_v62, %v4343_v47  ;;  %v5045_v52 = vld [vmem:[#allocation61_spill] sm:$0xff] }
 0x39b   : > { %v1471_v51 = vpop.f32.mrf.mxu3 }
 0x39c   : > { %v1472_v62 = vadd.f32 %v1471_v51, %v1382_v7  ;;  %v1467_v7 = vadd.f32 %v4336_v37, %v4334_v44  ;;  %v1469_v51 = vadd.f32 %v4353_v5, %v4351_v40 }
 0x39d   : > { %1304 = vadd.xlane.f32.xlu2 %v1303_v59  ;;  %v1242_v19 = vpop.xlane.xlu0 %1241 }
 0x39f   : > { %1277 = vadd.xlane.f32.xlu0 %v1276_v30 }
 0x3a2   : > { %v1245_v8 = vpop.xlane.xlu2 %1244  ;;  %v1384_v9 = vpop.f32.mrf.mxu2 }
 0x3a3   : > { %v1473_v2 = vpop.f32.mrf.mxu3 }
 0x3a5   : > { %1280 = vadd.xlane.f32.xlu2 %v1279_v42 }
 0x3a7   : > { %1223 = vadd.xlane.f32.xlu0 %v5039_v45 }
 0x3a9   : > { %1416 = vmatmul.bf16.gmra.mxu2 %v1332_v23  ;;  %v5043_v23 = vld [vmem:[#allocation43_spill] sm:$0xff] }
 0x3aa   : > { %1505 = vmatmul.bf16.gmra.mxu3 %v1333_v49  ;;  %v1239_v15 = vpop.xlane.xlu2 %1238  ;;  %v1387_v27 = vpop.f32.mrf.mxu2  ;;  %v5044_v49 = vld [vmem:[#allocation46_spill] sm:$0xff] }
 0x3ab   : > { %v1476_v29 = vpop.f32.mrf.mxu3  ;;  %v1219_v59 = vadd.f32 %v5044_v49, %v5043_v23 }
 0x3ac   : > { %v1477_v45 = vadd.f32 %v1476_v29, %v1387_v27  ;;  %v5046_v29 = vld [vmem:[#allocation65_spill] sm:$0xff] }
 0x3ad   : > { %1226 = vadd.xlane.f32.xlu2 %v1225_v21 }
 0x3af   : > { %1271 = vadd.xlane.f32.xlu0 %v4183_v14 }
 0x3b2   : > { %v4369_v55 = vpop.xlane.xlu2 %1232  ;;  %v1389_v0 = vpop.f32.mrf.mxu2 }
 0x3b3   : > { %v1478_v30 = vpop.f32.mrf.mxu3 }
 0x3b5   : > { %1274 = vadd.xlane.f32.xlu2 %v4194_v31  ;;  %v1479_v31 = vadd.f32 %v1478_v30, %v1389_v0 }
 0x3b7   : > { %1217 = vadd.xlane.f32.xlu0 %v5042_v41 }
 0x3b9   : > { %1421 = vmatmul.bf16.gmra.mxu2 %v1334_v53 }
 0x3ba   : > { %1510 = vmatmul.bf16.gmra.mxu3 %v1335_v35 }
 0x3bb   : > { %v1257_v14 = vpop.xlane.xlu2 %1256 }
 0x3bc   : > { %2832 = vrcp.f32 %v1257_v14 }
 0x3bd   : > { %2834 = vrcp.f32 %v1254_v25  ;;  %1220 = vadd.xlane.f32.xlu2 %v1219_v59 }
 0x3be   : > { %2836 = vrcp.f32 %v1248_v56  ;;  %v1236_v56 = vpop.xlane.xlu0 %1235 }
 0x3bf   : > { %1265 = vadd.xlane.f32.xlu0 %v4154_v11  ;;  %2838 = vrcp.f32 %v1251_v1  ;;  %v1474_v1 = vadd.f32 %v1473_v2, %v1384_v9  ;;  %v5048_v2 = vld [vmem:[#allocation28_spill] sm:$0xff] }
 0x3c0   : > { %2840 = vrcp.f32 %v1242_v19  ;;  %v5050_v19 = vld [vmem:[#allocation40_spill] sm:$0xff] }
 0x3c1   : > { %2842 = vrcp.f32 %v1245_v8  ;;  %v5047_v8 = vld [vmem:[#allocation25_spill] sm:$0xff] }
 0x3c2   : > { %v2833_v42 = vpop.eup %2832  ;;  %2844 = vrcp.f32 %v1236_v56  ;;  %v4388_v9 = vpack.c.bf16 %v5047_v8, %v5047_v8 }
 0x3c3   : > { %v2835_v11 = vpop.eup %2834  ;;  %v1568_v10 = vmul.f32 %v2833_v42, %v1479_v31  ;;  %2846 = vrcp.f32 %v1239_v15  ;;  %v1464_v15 = vadd.f32 %v4323_v24, %v4321_v57  ;;  %v1459_v57 = vadd.f32 %v4271_v54, %v4269_v36 }
 0x3c4   : > { %v2837_v25 = vpop.eup %2836  ;;  %v1567_v53 = vmul.f32 %v2835_v11, %v1477_v45 }
 0x3c5   : > { %v2839_v47 = vpop.eup %2838  ;;  %v1565_v21 = vmul.f32 %v2837_v25, %v1472_v62  ;;  %1268 = vadd.xlane.f32.xlu2 %v4165_v50 }
 0x3c6   : > { %v1593_v35 = vpack.c.bf16 %v1568_v10, %v1567_v53  ;;  %v1566_v32 = vmul.f32 %v2839_v47, %v1474_v1  ;;  %v2841_v41 = vpop.eup %2840  ;;  %v1230_v37 = vpop.xlane.xlu0 %1229 }
 0x3c7   : > { %1211 = vadd.xlane.f32.xlu0 %v5045_v52  ;;  %v2843_v14 = vpop.eup %2842  ;;  %v1563_v30 = vmul.f32 %v2841_v41, %v1467_v7  ;;  %2848 = vrcp.f32 %v1230_v37 }
 0x3c8   : > { %v1633_v33 = vsel %vm690_vm3, %v1593_v35, 0  ;;  %v1592_v27 = vpack.c.bf16 %v1566_v32, %v1565_v21  ;;  %v1564_v44 = vmul.f32 %v2843_v14, %v1469_v51  ;;  %v2845_v40 = vpop.eup %2844  ;;  %2850 = vrcp.f32 %v4369_v55 }
 0x3c9   : > { %1426 = vmatmul.bf16.gmra.mxu2 %v1336_v34  ;;  %1659 = vmatpush.bf16.xpose.msra.mxu0 %v1633_v33  ;;  %v4392_v34 = vpack.c.bf16 %v5048_v2, %v5048_v2  ;;  %v2847_v49 = vpop.eup %2846  ;;  %v1561_v31 = vmul.f32 %v2845_v40, %v4293_v58  ;;  %v1602_v33 = vld [vmem:[%s4647_s7] sm:$0xf] }
 0x3ca   : > { %1515 = vmatmul.bf16.gmra.mxu3 %v1337_v18  ;;  %v1630_v50 = vsel %vm690_vm3, %v1592_v27, 0  ;;  %v5049_v18 = vld [vmem:[#allocation37_spill] sm:$0xff]  ;;  %v1591_v23 = vpack.c.bf16 %v1564_v44, %v1563_v30  ;;  %v1562_v11 = vmul.f32 %v2847_v49, %v1464_v15 }
 0x3cb   : > { %v1213_v0 = vadd.f32 %v5050_v19, %v5049_v18 }
 0x3cc   : > { %v1627_v42 = vsel %vm690_vm3, %v1591_v23, 0  ;;  %v1590_v10 = vpack.c.bf16 %v1562_v11, %v1561_v31 }
 0x3cd   : > { %1214 = vadd.xlane.f32.xlu2 %v1213_v0  ;;  %v2849_v25 = vpop.eup %2848 }
 0x3ce   : > { %v2851_v52 = vpop.eup %2850  ;;  %v1624_v55 = vsel %vm690_vm3, %v1590_v10, 0  ;;  %v1559_v62 = vmul.f32 %v2849_v25, %v4250_v28 }
 0x3cf   : > { %1259 = vadd.xlane.f32.xlu0 %v5046_v29  ;;  %v1560_v1 = vmul.f32 %v2851_v52, %v1459_v57 }
 0x3d1   : > { %1660 = vmatpush.bf16.xpose.msra.mxu0 %v1630_v50  ;;  %v1589_v35 = vpack.c.bf16 %v1560_v1, %v1559_v62 }
 0x3d3   : > { %v1621_v36 = vsel %vm690_vm3, %v1589_v35, 0 }
 0x3d5   : > { %1262 = vadd.xlane.f32.xlu2 %v4143_v20 }
 0x3d9   : > { %2121 = vmatmul.bf16.vlgmr.msra.gmra.mxu2 %v4388_v9  ;;  %1661 = vmatpush.bf16.xpose.msra.mxu0 %v1627_v42 }
 0x3da   : > { %2134 = vmatmul.bf16.vlgmr.msra.gmra.mxu3 %v4392_v34 }
 0x3dc   : > { %v1392_v5 = vpop.f32.mrf.mxu2 }
 0x3dd   : > { %v1481_v59 = vpop.f32.mrf.mxu3 }
 0x3de   : > { %v4401_v45 = vadd.f32 %v1481_v59, %v1392_v5 }
 0x3e1   : > { %1662 = vmatpush.bf16.xpose.msra.mxu0 %v1624_v55 }
 0x3e2   : > { %v1284_v29 = vpop.xlane.xlu0 %1283 }
 0x3e3   : > { %1605 = vperm.xlu0 %2572, %v1602_v33   ;;  %2852 = vrcp.f32 %v1284_v29 }
 0x3e4   : > { %v1394_v53 = vpop.f32.mrf.mxu2 }
 0x3e5   : > { %v1483_v47 = vpop.f32.mrf.mxu3 }
 0x3e6   : > { %v4409_v24 = vadd.f32 %v1483_v47, %v1394_v53 }
 0x3e8   : > { %v1287_v7 = vpop.xlane.xlu2 %1286 }
 0x3e9   : > { %1663 = vmatpush.bf16.xpose.msra.mxu0 %v1621_v36  ;;  %v2853_v11 = vpop.eup %2852 }
 0x3eb   : > { %v1290_v2 = vpop.xlane.xlu0 %1289 }
 0x3ec   : > { %v1397_v58 = vpop.f32.mrf.mxu2 }
 0x3ed   : > { %v1486_v32 = vpop.f32.mrf.mxu3 }
 0x3ee   : > { %v4413_v20 = vadd.f32 %v1486_v32, %v1397_v58 }
 0x3f4   : > { %v1399_v54 = vpop.f32.mrf.mxu2  ;;  %v1293_v18 = vpop.xlane.xlu2 %1292 }
 0x3f5   : > { %v1488_v21 = vpop.f32.mrf.mxu3 }
 0x3f6   : > { %v4419_v56 = vadd.f32 %v1488_v21, %v1399_v54 }
 0x3f9   : > { %v4425_v30 = vpop.xlane.xlu0 %1295 }
 0x3fc   : > { %v1402_v28 = vpop.f32.mrf.mxu2 }
 0x3fd   : > { %v1491_v41 = vpop.f32.mrf.mxu3 }
 0x3fe   : > { %v4421_v27 = vadd.f32 %v1491_v41, %v1402_v28 }
 0x404   : > { %v1404_v14 = vpop.f32.mrf.mxu2 }
 0x405   : > { %v1493_v51 = vpop.f32.mrf.mxu3 }
 0x406   : > { %v4423_v8 = vadd.f32 %v1493_v51, %v1404_v14 }
 0x408   : > { %v4427_v37 = vpop.xlane.xlu2 %1298 }
 0x40a   : > { %v4429_v23 = vpop.xlane.xlu0 %1301 }
 0x40c   : > { %v1407_v50 = vpop.f32.mrf.mxu2 }
 0x40d   : > { %v1496_v19 = vpop.f32.mrf.mxu3 }
 0x40e   : > { %v1497_v0 = vadd.f32 %v1496_v19, %v1407_v50 }
 0x410   : > { %v4431_v59 = vpop.xlane.xlu2 %1304 }
 0x412   : > { %v1278_v31 = vpop.xlane.xlu0 %1277 }
 0x413   : > { %2854 = vrcp.f32 %v1278_v31 }
 0x414   : > { %v1409_v44 = vpop.f32.mrf.mxu2  ;;  %2856 = vrcp.f32 %v1287_v7  ;;  %v1454_v7 = vadd.f32 %v4226_v60, %v4224_v13 }
 0x415   : > { %v1498_v40 = vpop.f32.mrf.mxu3 }
 0x416   : > { %v1499_v5 = vadd.f32 %v1498_v40, %v1409_v44 }
 0x418   : > { %v1281_v10 = vpop.xlane.xlu2 %1280 }
 0x419   : > { %v2855_v52 = vpop.eup %2854  ;;  %2858 = vrcp.f32 %v1281_v10 }
 0x41a   : > { %v1224_v55 = vpop.xlane.xlu0 %1223  ;;  %v4435_v62 = vmul.f32 %v2855_v52, %v1497_v0  ;;  %v2857_v1 = vpop.eup %2856 }
 0x41b   : > { %2860 = vrcp.f32 %v1224_v55 }
 0x41c   : > { %v1412_v49 = vpop.f32.mrf.mxu2 }
 0x41d   : > { %v1501_v15 = vpop.f32.mrf.mxu3 }
 0x41e   : > { %v1502_v42 = vadd.f32 %v1501_v15, %v1412_v49 }
 0x41f   : > { %v2859_v32 = vpop.eup %2858 }
 0x420   : > { %v4433_v25 = vmul.f32 %v2853_v11, %v1502_v42  ;;  %v1227_v36 = vpop.xlane.xlu2 %1226  ;;  %v4441_v28 = vmul.f32 %v2859_v32, %v1499_v5 }
 0x421   : > { %2862 = vrcp.f32 %v1227_v36  ;;  %v2861_v29 = vpop.eup %2860 }
 0x422   : > { %v1272_v21 = vpop.xlane.xlu0 %1271  ;;  %v1597_v41 = vpack.c.bf16 %v4441_v28, %v4435_v62  ;;  %v5080_v62 = vpack.c.bf16 %v4095_v6, %v4088_v39  ;;  %v5081_v28 = vpack.c.bf16 %v4077_v16, %v4065_v12  ;;  %v5086_v39 = vld [vmem:[#allocation71_spill] sm:$0xff] }
 0x423   : > { %2864 = vrcp.f32 %v1272_v21  ;;  %v5087_v6 = vld [vmem:[#allocation51_spill] sm:$0xff] }
 0x424   : > { %v1414_v53 = vpop.f32.mrf.mxu2  ;;  %2866 = vrcp.f32 %v1290_v2  ;;  %v1557_v2 = vmul.f32 %v2861_v29, %v4179_v22 }
 0x425   : > { %v1503_v47 = vpop.f32.mrf.mxu3  ;;  %2868 = vrcp.f32 %v1293_v18 }
 0x426   : > { %v1504_v57 = vadd.f32 %v1503_v47, %v1414_v53 }
 0x427   : > { %v2863_v14 = vpop.eup %2862 }
 0x428   : > { %v4437_v58 = vmul.f32 %v2857_v1, %v1504_v57  ;;  %v1275_v19 = vpop.xlane.xlu2 %1274  ;;  %v1558_v15 = vmul.f32 %v2863_v14, %v1454_v7 }
 0x429   : > { %v2865_v0 = vpop.eup %2864  ;;  %2870 = vrcp.f32 %v1275_v19 }
 0x42a   : > { %v1598_v35 = vpack.c.bf16 %v4437_v58, %v4433_v25  ;;  %v2867_v40 = vpop.eup %2866  ;;  %v1218_v49 = vpop.xlane.xlu0 %1217  ;;  %v4449_v42 = vmul.f32 %v2865_v0, %v4421_v27  ;;  %v1588_v13 = vpack.c.bf16 %v1558_v15, %v1557_v2 }
 0x42b   : > { %v2869_v18 = vpop.eup %2868  ;;  %2872 = vrcp.f32 %v1218_v49 }
 0x42c   : > { %v1417_v33 = vpop.f32.mrf.mxu2  ;;  %v1618_v60 = vsel %vm690_vm3, %v1588_v13, 0 }
 0x42d   : > { %v1506_v54 = vpop.f32.mrf.mxu3  ;;  %1664 = vmatpush.bf16.xpose.msra.mxu0 %v1618_v60 }
 0x42e   : > { %v1507_v51 = vadd.f32 %v1506_v54, %v1417_v33  ;;  %v1449_v33 = vadd.f32 %v4127_v38, %v4125_v63 }
 0x42f   : > { %v2871_v10 = vpop.eup %2870 }
 0x430   : > { %v4451_v31 = vmul.f32 %v2867_v40, %v1507_v51  ;;  %v1221_v22 = vpop.xlane.xlu2 %1220  ;;  %v4459_v57 = vmul.f32 %v2871_v10, %v4423_v8  ;;  %v5051_v8 = vld [vmem:[#allocation30_spill] sm:$0xff] }
 0x431   : > { %2874 = vrcp.f32 %v1221_v22  ;;  %v2873_v1 = vpop.eup %2872  ;;  %v5052_v22 = vld [vmem:[#allocation103_spill] sm:$0xff] }
 0x432   : > { %v1266_v27 = vpop.xlane.xlu0 %1265  ;;  %2876 = vrcp.f32 %v4425_v30  ;;  %v1596_v55 = vpack.c.bf16 %v4459_v57, %v4449_v42  ;;  %v1555_v14 = vmul.f32 %v2873_v1, %v5051_v8  ;;  %v5083_v42 = vpack.c.bf16 %v5013_v48, %v5008_v26  ;;  %v5089_v57 = vld [vmem:[#allocation70_spill] sm:$0xff] }
 0x433   : > { %2878 = vrcp.f32 %v4427_v37 }
 0x434   : > { %v1419_v50 = vpop.f32.mrf.mxu2  ;;  %2880 = vrcp.f32 %v1266_v27  ;;  %v1642_v25 = vsel %vm690_vm3, %v1596_v55, 0  ;;  %v5090_v55 = vld [vmem:[#allocation69_spill] sm:$0xff] }
 0x435   : > { %v1508_v44 = vpop.f32.mrf.mxu3  ;;  %v5091_v12 = vpack.c.bf16 %v5089_v57, %v5090_v55 }
 0x436   : > { %v1509_v5 = vadd.f32 %v1508_v44, %v1419_v50 }
 0x437   : > { %v2875_v32 = vpop.eup %2874 }
 0x438   : > { %v4453_v11 = vmul.f32 %v2869_v18, %v1509_v5  ;;  %v1269_v21 = vpop.xlane.xlu2 %1268  ;;  %v1556_v7 = vmul.f32 %v2875_v32, %v1449_v33  ;;  %v2877_v30 = vpop.eup %2876 }
 0x439   : > { %2882 = vrcp.f32 %v1269_v21  ;;  %v2879_v50 = vpop.eup %2878 }
 0x43a   : > { %v1599_v53 = vpack.c.bf16 %v4453_v11, %v4451_v31  ;;  %v1587_v19 = vpack.c.bf16 %v1556_v7, %v1555_v14  ;;  %v1212_v44 = vpop.xlane.xlu0 %1211  ;;  %v2881_v5 = vpop.eup %2880  ;;  %v1645_v11 = vsel %vm690_vm3, %v1597_v41, 0  ;;  %v5082_v41 = vpack.c.bf16 %v5012_v4, %v5011_v46 }
 0x43b   : > { %2884 = vrcp.f32 %v1212_v44  ;;  %v4470_v18 = vmul.f32 %v2881_v5, %v4413_v20  ;;  %v5056_v44 = vld [vmem:[#allocation84_spill] sm:$0xff] }
 0x43c   : > { %v1422_v52 = vpop.f32.mrf.mxu2  ;;  %v1615_v40 = vsel %vm690_vm3, %v1587_v19, 0 }
 0x43d   : > { %v1511_v47 = vpop.f32.mrf.mxu3  ;;  %1665 = vmatpush.bf16.xpose.msra.mxu0 %v1615_v40 }
 0x43e   : > { %v1512_v36 = vadd.f32 %v1511_v47, %v1422_v52  ;;  %v5053_v47 = vld [vmem:[#allocation104_spill] sm:$0xff] }
 0x43f   : > { %v2883_v38 = vpop.eup %2882  ;;  %v1444_v27 = vadd.f32 %v5053_v47, %v5052_v22  ;;  %v5058_v22 = vld [vmem:[#allocation81_spill] sm:$0xff]  ;;  %v5059_v47 = vld [vmem:[#allocation62_spill] sm:$0xff] }
 0x440   : > { %v1581_v0 = vmul.f32 %v2877_v30, %v1512_v36  ;;  %v1215_v15 = vpop.xlane.xlu2 %1214  ;;  %v4473_v13 = vmul.f32 %v2883_v38, %v4419_v56  ;;  %v5054_v56 = vld [vmem:[#allocation74_spill] sm:$0xff] }
 0x441   : > { %2886 = vrcp.f32 %v1215_v15  ;;  %v2885_v10 = vpop.eup %2884 }
 0x442   : > { %2888 = vrcp.f32 %v4429_v23  ;;  %v1595_v60 = vpack.c.bf16 %v4473_v13, %v4470_v18  ;;  %v1260_v52 = vpop.xlane.xlu0 %1259  ;;  %v1585_v13 = vld [vmem:[%s4646_s6] sm:$0x3] }
 0x443   : > { %2890 = vrcp.f32 %v4431_v59 }
 0x444   : > { %v1424_v54 = vpop.f32.mrf.mxu2  ;;  %2892 = vrcp.f32 %v1260_v52  ;;  %v1639_v58 = vsel %vm690_vm3, %v1595_v60, 0 }
 0x445   : > { %v1513_v29 = vpop.f32.mrf.mxu3 }
 0x446   : > { %v1514_v51 = vadd.f32 %v1513_v29, %v1424_v54  ;;  %v1553_v54 = vmul.f32 %v2885_v10, %v5054_v56 }
 0x447   : > { %v2887_v1 = vpop.eup %2886 }
 0x448   : > { %v1582_v37 = vmul.f32 %v2879_v50, %v1514_v51  ;;  %v1263_v36 = vpop.xlane.xlu2 %1262  ;;  %v1554_v21 = vmul.f32 %v2887_v1, %v1444_v27  ;;  %v2889_v23 = vpop.eup %2888  ;;  %v2069_v50 = vperm.slane %v4329_v17, 0  ;;  %v5060_v27 = vpack.c.bf16 %v5058_v22, %v5059_v47  ;;  %v2196_v47 = vld [vmem:[%s4649_s9] sm:$0xf] }
 0x449   : > { %2894 = vrcp.f32 %v1263_v36  ;;  %v2891_v8 = vpop.eup %2890  ;;  %2199 = vperm.xlu2 %2573, %v2196_v47  }
 0x44a   : > { %v1600_v63 = vpack.c.bf16 %v1582_v37, %v1581_v0  ;;  %v1586_v14 = vpack.c.bf16 %v1554_v21, %v1553_v54  ;;  %v2893_v19 = vpop.eup %2892  ;;  %v2075_v0 = vld.sshfl [vmem:[#allocation1] sm:$0xff pattern:$0x73625140]  ;;  %v5064_v21 = vld [vmem:[#allocation35_spill] sm:$0xff] }
 0x44b   : > { %v5055_v37 = vld [vmem:[#allocation38_spill] sm:$0xff]  ;;  %v2079_v15 = vmul.f32 %v2075_v0, %v2069_v50  ;;  %v1569_v10 = vmul.f32 %v2893_v19, %v4401_v45  ;;  %v1648_v0 = vsel %vm690_vm3, %v1598_v35, 0 }
 0x44c   : > { %v1427_v49 = vpop.f32.mrf.mxu2  ;;  %v1612_v30 = vsel %vm690_vm3, %v1586_v14, 0  ;;  %v5057_v40 = vpack.c.bf16 %v5055_v37, %v5056_v44  ;;  %v1654_v56 = vsel %vm690_vm3, %v1600_v63, 0  ;;  %v5074_v50 = vld [vmem:[#allocation94_spill] sm:$0xff]  ;;  %v5076_v37 = vld [vmem:[#allocation92_spill] sm:$0xff] }
 0x44d   : > { %v1516_v2 = vpop.f32.mrf.mxu3  ;;  %1666 = vmatpush.bf16.xpose.msra.mxu0 %v1612_v30  ;;  %v5071_v30 = vld [vmem:[#allocation98_spill] sm:$0xff]  ;;  %v5077_v44 = vld [vmem:[#allocation32_spill] sm:$0xff] }
 0x44e   : > { %v1517_v32 = vadd.f32 %v1516_v2, %v1427_v49  ;;  %v5078_v31 = vpack.c.bf16 %v5076_v37, %v5077_v44 }
 0x44f   : > { %v2895_v5 = vpop.eup %2894 }
 0x450   : > { %v1583_v59 = vmul.f32 %v2889_v23, %v1517_v32  ;;  %v1570_v52 = vmul.f32 %v2895_v5, %v4409_v24  ;;  %v5065_v24 = vld [vmem:[#allocation80_spill] sm:$0xff]  ;;  %v5092_v5 = vld [vmem:[#allocation27_spill] sm:$0xff] }
 0x451   : > { %v5066_v23 = vpack.c.bf16 %v5064_v21, %v5065_v24 }
 0x452   : > { %v1594_v32 = vpack.c.bf16 %v1570_v52, %v1569_v10  ;;  %v2070_v10 = vperm.slane %v4329_v17, 1  ;;  %v2076_v52 = vld.sshfl [vmem:[#allocation1 + $0x8] sm:$0xff pattern:$0x73625140] }
 0x454   : > { %v1429_v33 = vpop.f32.mrf.mxu2  ;;  %2481 = vmatmul.msk.bf16.vlgmr.msra.gmra.mxu0 %vm690_vm3, %v1585_v13  ;;  %v1636_v35 = vsel %vm690_vm3, %v1594_v32, 0 }
 0x455   : > { %v1518_v20 = vpop.f32.mrf.mxu3  ;;  %2139 = vmatpush.bf16.msrb.mxu0 %v5057_v40  ;;  %v1606_v4 = vpop.permute.xlu0 %1605 }
 0x456   : > { %v1519_v29 = vadd.f32 %v1518_v20, %v1429_v33  ;;  %v5061_v33 = vld [vmem:[#allocation58_spill] sm:$0xff]  ;;  %v5062_v20 = vld [vmem:[#allocation36_spill] sm:$0xff] }
 0x457   : > { %v5063_v36 = vpack.c.bf16 %v5061_v33, %v5062_v20 }
 0x458   : > { %v1584_v7 = vmul.f32 %v2891_v8, %v1519_v29  ;;  %v5067_v29 = vld [vmem:[#allocation79_spill] sm:$0xff]  ;;  %v5068_v8 = vld [vmem:[#allocation34_spill] sm:$0xff] }
 0x459   : > { %2140 = vmatpush.bf16.msrb.mxu0 %v5060_v27  ;;  %v5069_v14 = vpack.c.bf16 %v5067_v29, %v5068_v8  ;;  %v2080_v27 = vmul.f32 %v2076_v52, %v2070_v10 }
 0x45a   : > { %v1601_v51 = vpack.c.bf16 %v1584_v7, %v1583_v59  ;;  %v1651_v59 = vsel %vm690_vm3, %v1599_v53, 0  ;;  %v5070_v7 = vld [vmem:[#allocation100_spill] sm:$0xff]  ;;  %v5088_v53 = vpack.c.bf16 %v5086_v39, %v5087_v6 }
 0x45b   : > { %v5072_v63 = vpack.c.bf16 %v5070_v7, %v5071_v30  ;;  %v5094_v30 = vld [vmem:[#allocation24_spill] sm:$0xff] }
 0x45c   : > { %v1657_v38 = vsel %vm690_vm3, %v1601_v51, 0  ;;  %v2122_v49 = vpop.f32.mrf.mxu2  ;;  %v5073_v51 = vld [vmem:[#allocation96_spill] sm:$0xff] }
 0x45d   : > { %1672 = vmatpush.bf16.xpose.msra.mxu1 %v1657_v38  ;;  %v2135_v2 = vpop.f32.mrf.mxu3  ;;  %2141 = vmatpush.bf16.msrb.mxu0 %v5063_v36  ;;  %v5075_v19 = vpack.c.bf16 %v5073_v51, %v5074_v50  ;;  %v2187_v51 = vld [vmem:[%s4648_s8] sm:$0x3] }
 0x45e   : > { %v2136_v18 = vadd.f32 %v2135_v2, %v2122_v49  ;;  %v5093_v49 = vld [vmem:[#allocation26_spill] sm:$0xff] }
 0x460   : > { %v4496_v1 = vadd.f32 %v2136_v18, %v2079_v15 }
 0x461   : > { %2142 = vmatpush.bf16.msrb.mxu0 %v5066_v23 }
 0x464   : > { %v2124_v54 = vpop.f32.mrf.mxu2 }
 0x465   : > { %1673 = vmatpush.bf16.xpose.msra.mxu1 %v1654_v56  ;;  %v2137_v45 = vpop.f32.mrf.mxu3  ;;  %2143 = vmatpush.bf16.msrb.mxu0 %v5069_v14 }
 0x469   : > { %2144 = vmatpush.bf16.msrb.mxu0 %v5072_v63 }
 0x46d   : > { %1674 = vmatpush.bf16.xpose.msra.mxu1 %v1651_v59  ;;  %2145 = vmatpush.bf16.msrb.mxu0 %v5075_v19 }
 0x471   : > { %2146 = vmatpush.bf16.msrb.mxu0 %v5078_v31 }
 0x474   : > { %2147 = vmatmul.bf16.vlgmr.msrb.gmra.mxu0 %v4388_v9  ;;  %v5079_v9 = vpack.c.bf16 %v4120_v43, %v4106_v3  ;;  %v5084_v3 = vld [vmem:[#allocation87_spill] sm:$0xff] }
 0x475   : > { %1675 = vmatpush.bf16.xpose.msra.mxu1 %v1648_v0  ;;  %v5085_v43 = vpack.c.bf16 %v5005_v61, %v5084_v3 }
 0x47d   : > { %1676 = vmatpush.bf16.xpose.msra.mxu1 %v1645_v11 }
 0x485   : > { %1677 = vmatpush.bf16.xpose.msra.mxu1 %v1642_v25 }
 0x48d   : > { %1678 = vmatpush.bf16.xpose.msra.mxu1 %v1639_v58 }
 0x495   : > { %1679 = vmatpush.bf16.xpose.msra.mxu1 %v1636_v35 }
 0x49c   : > { %2482 = vmatmul.msk.bf16.vlgmr.msra.gmra.mxu1 %vm690_vm3, %v1585_v13 }
 0x49d   : > { %2152 = vmatpush.bf16.msrb.mxu1 %v5079_v9 }
 0x4a1   : > { %2153 = vmatpush.bf16.msrb.mxu1 %v5080_v62 }
 0x4a5   : > { %2154 = vmatpush.bf16.msrb.mxu1 %v5081_v28 }
 0x4a9   : > { %2155 = vmatpush.bf16.msrb.mxu1 %v5082_v41 }
 0x4ad   : > { %2156 = vmatpush.bf16.msrb.mxu1 %v5083_v42 }
 0x4b1   : > { %2157 = vmatpush.bf16.msrb.mxu1 %v5085_v43 }
 0x4b5   : > { %2158 = vmatpush.bf16.msrb.mxu1 %v5088_v53 }
 0x4b9   : > { %2159 = vmatpush.bf16.msrb.mxu1 %v5091_v12 }
 0x4bc   : > { %2160 = vmatmul.bf16.vlgmr.msrb.gmra.mxu1 %v4392_v34  ;;  %v2178_v34 = vld [vmem:[#allocation4] sm:$0x3] }
 0x4bd   : > { %2896 = vrcp.f32 %v2178_v34 }
 0x4c3   : > { %v2897_v20 = vpop.eup %2896 }
 0x4c4   : > { %v2182_v54 = vperm.slane %v2897_v20, 1  ;;  %v2181_v21 = vperm.slane %v2897_v20, 0 }
 0x4c6   : > { %v2183_v17 = vrot.slane %v2182_v54, 6 }
 0x4c8   : > { %v2184_v23 = vsel %vm502_vm0, %v2181_v21, %v2183_v17 }
 0x4d1   : > { %v1668_v16 = vpop.f32.mrf.mxu0 }
 0x4d2   : > { %v1669_v61 = vadd.f32 %v1668_v16, %v1606_v4 }
 0x4d4   : > { %v1690_v2 = vadd.f32 %v5093_v49, %v1669_v61 }
 0x4d9   : > { %v1670_v46 = vpop.f32.mrf.mxu0 }
 0x4f1   : > { %v2148_v48 = vpop.f32.mrf.mxu0 }
 0x4f9   : > { %v2150_v26 = vpop.f32.mrf.mxu0 }
 0x519   : > { %v1681_v60 = vpop.f32.mrf.mxu1 }
 0x51a   : > { %v1682_v40 = vadd.f32 %v1681_v60, %v1606_v4 }
 0x51c   : > { %v1691_v38 = vadd.f32 %v5092_v5, %v1682_v40 }
 0x51e   : > { %v1694_v15 = vrot.slane %v1691_v38, 4 }
 0x520   : > { %v1696_v18 = vsel %vm1695_vm5, %v1690_v2, %v1694_v15 }
 0x521   : > { %v1683_v13 = vpop.f32.mrf.mxu1  ;;  %1698 = vst [vmem:[%s466_s27] sm:$0xff] %v1696_v18 }
 0x539   : > { %v2161_v22 = vpop.f32.mrf.mxu1 }
 0x53a   : > { %v2162_v32 = vadd.f32 %v2161_v22, %v2148_v48 }
 0x53c   : > { %v2166_v33 = vadd.f32 %v2162_v32, %v2080_v27 }
 0x53e   : > { %v2169_v36 = vrot.slane %v2166_v33, 6 }
 0x540   : > { %v2170_v56 = vsel %vm502_vm0, %v4496_v1, %v2169_v36 }
 0x541   : > { %2172 = vst [vmem:[#allocation5] sm:$0xf] %v2170_v56  ;;  %v2163_v45 = vpop.f32.mrf.mxu1 }
 0x548   : > { %v2177_v24 = vld [vmem:[#allocation5] sm:$0xf] }
 0x549   : > { %v2186_v29 = vmul.f32 %v2184_v23, %v2177_v24 }
 0x54b   : > { %2189 = vst [vmem:[#allocation1] ss:$4 sm:$0xff] %v2186_v29 }
 0x552   : > { %v2190_v8 = vld.sshfl [vmem:[#allocation1] sm:$0xff pattern:$0x73625140]  ;;  %v2191_v14 = vld.sshfl [vmem:[#allocation1 + $0x8] sm:$0xff pattern:$0x73625140] }
 0x553   : > { %v2194_v59 = vpack.c.bf16 %v2190_v8, %v2190_v8  ;;  %v2195_v7 = vpack.c.bf16 %v2191_v14, %v2191_v14  ;;  %2238 = vst [vmem:[#allocation1] ss:$2 sm:$0xff] %v5094_v30 }
 0x555   : > { %v2206_v1 = vsel %vm538_vm2, %v2194_v59, 0  ;;  %v2209_v63 = vsel %vm538_vm2, %v2195_v7, 0 }
 0x556   : > { %2218 = vmatpush.bf16.msrb.mxu2 %v2206_v1  ;;  %2231 = vmatpush.bf16.msrb.mxu3 %v2209_v63 }
 0x559   : > { %2484 = vmatmul.msk.bf16.vlgmr.msrb.gmra.mxu3 %vm690_vm3, %v2187_v51  ;;  %2483 = vmatmul.msk.bf16.vlgmr.msrb.gmra.mxu2 %vm690_vm3, %v2187_v51 }
 0x55a   : > { %2985 = shalt.err (!%p2982_p13)
}
 0x55b   : > { %2501 = dma.vmem_to_hbm [thread:$0]  (%p3192_p9), %s2273_s24, 128, %s2275_s26, %s2252_s23   ;;  %v2200_v50 = vpop.permute.xlu2 %2199  ;;  %v2240_v31 = vld.sshfl [vmem:[#allocation1 + $0x8] sm:$0xff pattern:$0x75316420] }
 0x55c   : > { %s5096_s29 = sld [smem:[#allocation107_spill]]  ;;  %v2239_v11 = vld.sshfl [vmem:[#allocation1] sm:$0xff pattern:$0x75316420]  ;;  %s473_s17 = scalar_lea.vmem [#allocation12], %s3221_s10 }
 0x55d   : > { %s2287_s11 = sshll.u32 %s473_s17, 4  ;;  %s2288_s11 = int_to_ptr.vmem [resolvable:$true] %s2287_s11 }
 0x562   : > { %s2285_s28 = scalar_lea.hbm %s5096_s29, %s2495_s14  ;;  %s2257_s14 = scalar_lea.sflag [#allocation13], %s3218_s25 }
 0x563   : > { %s2289_s19 = sshll.u32 %s2285_s28, 4  ;;  %s3006_s21 = scalar_lea.hbm %s5096_s29, 16  ;;  %s2290_s19 = int_to_ptr.hbm [resolvable:$true] %s2289_s19 }
 0x564   : > { %s3000_s24 = sshra.s32 %s2290_s19, 4  ;;  %s3001_s24 = int_to_ptr.hbm [resolvable:$true] %s3000_s24 }
 0x565   : > { %s3002_s26 = scalar_lea.hbm %s3001_s24, 8  ;;  %p3007_p3 = scmp.lt.s32.totalorder %s3001_s24, %s5096_s29 }
 0x566   : > { %p3003_p0 = scmp.ne.s32.totalorder %s3001_s24, %s3002_s26  ;;  %p3008_p4 = scmp.lt.s32.totalorder %s3006_s21, %s3002_s26 }
 0x568   : > { %p3004_p1 = pnand %p3003_p0, %p3192_p9  ;;  %p3009_p5 = por %p3008_p4, %p3007_p3 }
 0x56a   : > { %p3005_p2 = pneg %p3004_p1 }
 0x56c   : > { %p3010_p6 = pnand %p3009_p5, %p3005_p2 }
 0x5dc   : > { %v2233_v19 = vpop.f32.mrf.mxu3  ;;  %v2220_v0 = vpop.f32.mrf.mxu2 }
 0x5dd   : > { %v2234_v37 = vadd.f32 %v2233_v19, %v2200_v50  ;;  %v2221_v44 = vadd.f32 %v2220_v0, %v2200_v50 }
 0x5df   : > { %v2244_v25 = vadd.f32 %v2240_v31, %v2234_v37  ;;  %v2243_v35 = vadd.f32 %v2239_v11, %v2221_v44 }
 0x5e1   : > { %v2247_v58 = vrot.slane %v2244_v25, 4 }
 0x5e3   : > { %v2248_v9 = vsel %vm1695_vm5, %v2243_v35, %v2247_v58 }
 0x5e4   : > { %v2235_v62 = vpop.f32.mrf.mxu3  ;;  %v2222_v28 = vpop.f32.mrf.mxu2  ;;  %2250 = vst [vmem:[%s473_s17] sm:$0xff] %v2248_v9 }
 0x5e5   : > { %3013 = shalt.err (!%p3010_p6)
}
 0x5e6   : > { %2502 = dma.vmem_to_hbm [thread:$0]  (%p3192_p9), %s2288_s11, 128, %s2290_s19, %s2257_s14  }
 0x5e7 PF: > { %s5097_s25 = sld [smem:[#allocation18_spill]]  ;;  %p2513_p7 = pnand %p2433_p12, %p3199_p11 }
 0x5e9   : > { %p2514_p8 = pneg %p2513_p7 }
 0x5ed   : > { %s2301_s27 = sand.u32 1, %s5097_s25  }
 0x5ee   : > { %s2302_s15 = scalar_lea.sflag [#allocation8], %s2301_s27 }
 0x5ef   : > { %3047 = dma.done.wait (%p2514_p8), %s2302_s15, 128  }
 0x5f0   : > { %3049 = vsyncadd (%p2514_p8), %s2302_s15, 4294967168  ;;  %s2312_s28 = scalar_lea.sflag [#allocation13], %s2301_s27 }
 0x5f1   : > { %3051 = dma.done.wait (%p2514_p8), %s2312_s28, 128  }
 0x5f2   : > { %3053 = vsyncadd (%p2514_p8), %s2312_s28, 4294967168  ;;  %s34_s22 = sadd.s32 1, %s3076_s22   ;;  %s5099_s30 = sld [smem:[#allocation19_spill]] }
 0x5f3   : > { %p31_p10 = scmp.ge.s32.totalorder %s34_s22, 4   ;;  %s5100_s19 = sld [smem:[#allocation22_spill]] }
 0x5f4   : > { %s5101_s20 = sld [smem:[#allocation20_spill]]  ;;  %s5103_s17 = smov %s3060_s18 }
 0x5f5   : > { %s5102_s21 = sld [smem:[#allocation21_spill]]  ;;  %33 = sbr.rel (!%p31_p10) target bundleno = 13 (0xd), region = 143 }
 0x5f8   : > { %s5104_s18 = smov %s5099_s30 }
 0x5fa   :  { %2318 = vsyncpa [#allocation7], 1 }
 0x5fb   :  { %2320 = vsyncpa [#allocation7 + $0x1], 1 }
 0x5fc   :  { %2321 = vsyncpa [#allocation10], 1 }
 0x5fd   :  { %2323 = vsyncpa [#allocation10 + $0x1], 1 }
 0x5fe   :  { %2324 = vsyncpa [#allocation8], 1 }
 0x5ff   :  { %2326 = vsyncpa [#allocation8 + $0x1], 1 }
 0x600   :  { %2327 = vsyncpa [#allocation13], 1 }
 0x601   :  { %2329 = vsyncpa [#allocation13 + $0x1], 1 }

</bundles_post_ra>
